<compile_context>
chip_gen: v6e
topology: v6e:2x2x1
jax: 0.10.0
libtpu: 0.0.40
codegen_flags: <defaults>
</compile_context>

<pallas_src>
import functools

import jax
import jax.numpy as jnp
import numpy as np
from jax.experimental import pallas as pl
from jax.experimental.pallas import tpu as pltpu

EPS = 1e-5


# --------------------------------------------------------------------------
# tiling helpers
# --------------------------------------------------------------------------
def _pick_div(n, target):
    """Largest divisor of n that is <= target (used for non-minor dims)."""
    t = max(1, min(target, n))
    while n % t:
        t -= 1
    return t


def _pick_row_tile(n, target=512):
    """Row tile: a multiple of 8 dividing n (or n itself).

    Prefers >= 2 tiles so the BlockSpec pipeline has steps to overlap DMAs and
    both v7x TensorCores get work.
    """
    target = min(target, max(8, n // 2))
    best = n
    t = 8
    while t <= min(target, n):
        if n % t == 0:
            best = t
        t += 8
    return best


# --------------------------------------------------------------------------
# 3x3 convolution (pad=1, stride handled in-kernel) with fused BN statistics
# --------------------------------------------------------------------------
def _conv3x3_bn_stats_kernel(xp_ref, w_ref, o_ref, stat_ref, *, stride):
    """One output row-tile of one image.

    xp_ref  : (1, H+2, W+2, Cin) bf16 zero-padded image (resident across tiles)
    w_ref   : (9*Cin, Cout)      bf16 weights, tap-major ((ky*3+kx)*Cin + ci)
    o_ref   : (1, TH, Wo, Cout)  f32 conv output row tile
    stat_ref: (1, 1, 2, Cout)    f32 per-tile [sum, sum-of-squares]
    """
    TH, Wo, Cout = o_ref.shape[1], o_ref.shape[2], o_ref.shape[3]
    Cin = xp_ref.shape[3]

    t = pl.program_id(1)
    row0 = pl.multiple_of(t * (TH * stride), TH * stride)

    # im2col: gather the nine (strided) taps and fold them into K, so the MXU
    # sees a single (TH*Wo, 9*Cin) @ (9*Cin, Cout) matmul.
    taps = []
    for dy in range(3):
        for dx in range(3):
            if stride == 1:
                p = xp_ref[:, pl.ds(row0 + dy, TH), pl.ds(dx, Wo), :]
            else:
                # Strided reads: only the required output pixels are computed.
                p = xp_ref[:, pl.ds(row0 + dy, TH, stride),
                           pl.ds(dx, Wo, stride), :]
            taps.append(p)                               # (1, TH, Wo, Cin) bf16
    patches = jnp.concatenate(taps, axis=-1).reshape(TH * Wo, 9 * Cin)

    acc = jnp.dot(patches, w_ref[...],
                  preferred_element_type=jnp.float32)    # (TH*Wo, Cout) f32

    o_ref[...] = acc.reshape(1, TH, Wo, Cout).astype(o_ref.dtype)

    # Fused BN statistics: the normalize pass never re-reads activations just
    # to compute mean/var.
    s = jnp.sum(acc, axis=0, keepdims=True)
    ss = jnp.sum(acc * acc, axis=0, keepdims=True)
    stat_ref[...] = jnp.concatenate([s, ss], axis=0).reshape(1, 1, 2, Cout)


def conv3x3_bn_stats(x_bf, w2d_bf, stride):
    """x_bf: (N,H,W,Cin) bf16, w2d_bf: (9*Cin,Cout) bf16.

    Returns (conv_out f32 (N,Ho,Wo,Cout), partial stats f32 (N,nt,2,Cout)).
    """
    N, H, W, Cin = x_bf.shape
    Cout = w2d_bf.shape[1]
    Ho = (H - 1) // stride + 1
    Wo = (W - 1) // stride + 1

    # 1-px zero halo (single cheap bf16 XLA pad; an in-kernel halo via masked
    # edge taps would remove this extra HBM pass -- left as a follow-up).
    xp = jnp.pad(x_bf, ((0, 0), (1, 1), (1, 1), (0, 0)))
    Hp, Wp = H + 2, W + 2

    TH = _pick_div(Ho, 8)            # output rows per grid step
    nt = Ho // TH

    kernel = functools.partial(_conv3x3_bn_stats_kernel, stride=stride)
    return pl.pallas_call(
        kernel,
        out_shape=(jax.ShapeDtypeStruct((N, Ho, Wo, Cout), jnp.float32),
                   jax.ShapeDtypeStruct((N, nt, 2, Cout), jnp.float32)),
        grid=(N, nt),
        in_specs=[
            # Full padded image per n; the block index ignores t, so it stays
            # resident in VMEM across that image's row tiles (no re-DMA).
            pl.BlockSpec((1, Hp, Wp, Cin), lambda n, t: (n, 0, 0, 0)),
            pl.BlockSpec((9 * Cin, Cout), lambda n, t: (0, 0)),
        ],
        out_specs=(
            pl.BlockSpec((1, TH, Wo, Cout), lambda n, t: (n, t, 0, 0)),
            pl.BlockSpec((1, 1, 2, Cout), lambda n, t: (n, t, 0, 0)),
        ),
        compiler_params=pltpu.CompilerParams(
            dimension_semantics=("parallel", "parallel"),
            vmem_limit_bytes=32 * 1024 * 1024),
    )(xp, w2d_bf)


# --------------------------------------------------------------------------
# 1x1 convolution (shortcut) with fused BN statistics, row-tiled
# --------------------------------------------------------------------------
def _conv1x1_bn_stats_kernel(x_ref, w_ref, o_ref, stat_ref):
    acc = jnp.dot(x_ref[...], w_ref[...],
                  preferred_element_type=jnp.float32)    # (TM, Cout) f32
    o_ref[...] = acc.astype(o_ref.dtype)
    s = jnp.sum(acc, axis=0, keepdims=True)
    ss = jnp.sum(acc * acc, axis=0, keepdims=True)
    stat_ref[...] = jnp.concatenate([s, ss], axis=0).reshape(1, 2, o_ref.shape[1])


def conv1x1_bn_stats(x_rows_bf, w_bf):
    """x_rows_bf: (R, Cin) bf16, w_bf: (Cin, Cout) bf16."""
    R, Cin = x_rows_bf.shape
    Cout = w_bf.shape[1]
    TM = _pick_row_tile(R)
    nt = R // TM
    return pl.pallas_call(
        _conv1x1_bn_stats_kernel,
        out_shape=(jax.ShapeDtypeStruct((R, Cout), jnp.float32),
                   jax.ShapeDtypeStruct((nt, 2, Cout), jnp.float32)),
        grid=(nt,),
        in_specs=[pl.BlockSpec((TM, Cin), lambda i: (i, 0)),
                  pl.BlockSpec((Cin, Cout), lambda i: (0, 0))],
        out_specs=(pl.BlockSpec((TM, Cout), lambda i: (i, 0)),
                   pl.BlockSpec((1, 2, Cout), lambda i: (i, 0, 0))),
        compiler_params=pltpu.CompilerParams(
            dimension_semantics=("parallel",)),
    )(x_rows_bf, w_bf)


# --------------------------------------------------------------------------
# BN apply: y = x*scale + shift (+ residual) (+ ReLU), row-tiled & parallel
# --------------------------------------------------------------------------
def _scale_shift_kernel(x_ref, sc_ref, sh_ref, o_ref, *, relu):
    y = x_ref[...].astype(jnp.float32) * sc_ref[...] + sh_ref[...]
    if relu:
        y = jnp.maximum(y, 0.0)
    o_ref[...] = y.astype(o_ref.dtype)


def _scale_shift_add_relu_kernel(x_ref, r_ref, sc_ref, sh_ref, o_ref):
    y = x_ref[...].astype(jnp.float32) * sc_ref[...] + sh_ref[...]
    y = y + r_ref[...].astype(jnp.float32)               # residual add in f32
    o_ref[...] = jnp.maximum(y, 0.0).astype(o_ref.dtype)


def bn_apply(x_rows, scale, shift, *, relu, out_dtype, residual=None):
    R, C = x_rows.shape
    TM = _pick_row_tile(R)
    nt = R // TM
    sc = scale.reshape(1, C).astype(jnp.float32)
    sh = shift.reshape(1, C).astype(jnp.float32)
    row_spec = pl.BlockSpec((TM, C), lambda i: (i, 0))
    vec_spec = pl.BlockSpec((1, C), lambda i: (0, 0))
    if residual is None:
        kernel = functools.partial(_scale_shift_kernel, relu=relu)
        in_specs = [row_spec, vec_spec, vec_spec]
        args = (x_rows, sc, sh)
    else:
        assert relu
        kernel = _scale_shift_add_relu_kernel
        in_specs = [row_spec, row_spec, vec_spec, vec_spec]
        args = (x_rows, residual, sc, sh)
    return pl.pallas_call(
        kernel,
        out_shape=jax.ShapeDtypeStruct((R, C), out_dtype),
        grid=(nt,),
        in_specs=in_specs,
        out_specs=row_spec,
        compiler_params=pltpu.CompilerParams(
            dimension_semantics=("parallel",)),
    )(*args)


def _bn_scale_shift(partial_stats, count, gamma, beta):
    """Reduce per-tile [sum, sumsq] partials (tiny) -> per-channel scale/shift."""
    C = partial_stats.shape[-1]
    tot = partial_stats.reshape(-1, 2, C).sum(axis=0)     # (2, C), tiny
    mean = tot[0] / count
    var = jnp.maximum(tot[1] / count - mean * mean, 0.0)  # biased (training) var
    inv = jax.lax.rsqrt(var + EPS)
    scale = gamma.astype(jnp.float32) * inv
    shift = beta.astype(jnp.float32) - mean * scale
    return scale, shift


# --------------------------------------------------------------------------
# BasicBlock: params + forward
# --------------------------------------------------------------------------
def make_basic_block_params(key, in_planes, planes, stride):
    ks = jax.random.split(key, 7)
    params = {
        "w1": 0.1 * jax.random.normal(ks[0], (3, 3, in_planes, planes), jnp.float32),
        "g1": 1.0 + 0.1 * jax.random.normal(ks[1], (planes,), jnp.float32),
        "b1": 0.1 * jax.random.normal(ks[2], (planes,), jnp.float32),
        "w2": 0.1 * jax.random.normal(ks[3], (3, 3, planes, planes), jnp.float32),
        "g2": 1.0 + 0.1 * jax.random.normal(ks[4], (planes,), jnp.float32),
        "b2": 0.1 * jax.random.normal(ks[5], (planes,), jnp.float32),
    }
    if stride != 1 or in_planes != planes:
        ks2 = jax.random.split(ks[6], 3)
        params["ws"] = 0.1 * jax.random.normal(ks2[0], (in_planes, planes), jnp.float32)
        params["gs"] = 1.0 + 0.1 * jax.random.normal(ks2[1], (planes,), jnp.float32)
        params["bs"] = 0.1 * jax.random.normal(ks2[2], (planes,), jnp.float32)
    return params


def basic_block_forward(x_nchw, params, *, in_planes, planes, stride):
    # NCHW (PyTorch) -> NHWC (kernels); bf16 activations feed the MXU
    # (note: v7x MXU is bf16/fp8 only -- int8 weights would not map there).
    x = jnp.transpose(x_nchw, (0, 2, 3, 1)).astype(jnp.float32)
    x_bf = x.astype(jnp.bfloat16)
    N, H, W, _ = x.shape

    w1 = params["w1"].reshape(9 * in_planes, planes).astype(jnp.bfloat16)
    w2 = params["w2"].reshape(9 * planes, planes).astype(jnp.bfloat16)

    # conv1 (3x3, stride s, pad 1) with fused BN stats
    c1, st1 = conv3x3_bn_stats(x_bf, w1, stride)
    _, Ho, Wo, _ = c1.shape
    cnt = N * Ho * Wo
    sc1, sh1 = _bn_scale_shift(st1, cnt, params["g1"], params["b1"])
    # bn1 + relu; output in bf16 (it is conv2's MXU input anyway)
    h1 = bn_apply(c1.reshape(cnt, planes), sc1, sh1,
                  relu=True, out_dtype=jnp.bfloat16)
    h1 = h1.reshape(N, Ho, Wo, planes)

    # conv2 (3x3, stride 1, pad 1) with fused BN stats
    c2, st2 = conv3x3_bn_stats(h1, w2, 1)
    sc2, sh2 = _bn_scale_shift(st2, cnt, params["g2"], params["b2"])

    # shortcut
    if stride != 1 or in_planes != planes:
        xs = x_bf if stride == 1 else x_bf[:, ::stride, ::stride, :]
        xs_rows = xs.reshape(cnt, in_planes)
        ws = params["ws"].astype(jnp.bfloat16)
        s_out, st_s = conv1x1_bn_stats(xs_rows, ws)
        scs, shs = _bn_scale_shift(st_s, cnt, params["gs"], params["bs"])
        res = bn_apply(s_out, scs, shs, relu=False, out_dtype=jnp.float32)
    else:
        res = x.reshape(cnt, planes)   # identity residual kept in f32

    # bn2 + residual add + relu (fused, row-tiled, parallel)
    out = bn_apply(c2.reshape(cnt, planes), sc2, sh2,
                   relu=True, out_dtype=jnp.float32, residual=res)
    out = out.reshape(N, Ho, Wo, planes)
    return jnp.transpose(out, (0, 3, 1, 2))               # back to NCHW


# --------------------------------------------------------------------------
# Pure-JAX references for correctness checks
# --------------------------------------------------------------------------
def _ref_bn(x_nchw, g, b):
    mean = x_nchw.mean(axis=(0, 2, 3), keepdims=True)
    var = ((x_nchw - mean) ** 2).mean(axis=(0, 2, 3), keepdims=True)
    y = (x_nchw - mean) * jax.lax.rsqrt(var + EPS)
    return y * g.reshape(1, -1, 1, 1) + b.reshape(1, -1, 1, 1)


def reference_forward(x_nchw, params, *, in_planes, planes, stride,
                      mxu_dtype=jnp.float32):
    """mxu_dtype=bf16 mirrors the kernel's quantization points exactly."""
    def conv(x, w, s, pad):
        return jax.lax.conv_general_dilated(
            x.astype(mxu_dtype), w.astype(mxu_dtype), (s, s), pad,
            dimension_numbers=("NCHW", "HWIO", "NCHW"),
            preferred_element_type=jnp.float32)

    out = jax.nn.relu(_ref_bn(conv(x_nchw, params["w1"], stride, ((1, 1), (1, 1))),
                              params["g1"], params["b1"]))
    out = _ref_bn(conv(out, params["w2"], 1, ((1, 1), (1, 1))),
                  params["g2"], params["b2"])
    if stride != 1 or in_planes != planes:
        w1x1 = params["ws"].reshape(1, 1, in_planes, planes)
        sc = _ref_bn(conv(x_nchw, w1x1, stride, ((0, 0), (0, 0))),
                     params["gs"], params["bs"])
    else:
        sc = x_nchw
    return jax.nn.relu(out + sc)


# --------------------------------------------------------------------------
if __name__ == "__main__":
    key = jax.random.PRNGKey(0)
    k_x, k_p = jax.random.split(key)

    N, in_planes, planes, H, W, stride = 2, 4, 8, 16, 16, 1
    x = jax.random.normal(k_x, (N, in_planes, H, W), jnp.float32)   # NCHW
    params = make_basic_block_params(k_p, in_planes, planes, stride)

    fwd = jax.jit(functools.partial(basic_block_forward, in_planes=in_planes,
                                    planes=planes, stride=stride))
    out = jax.block_until_ready(fwd(x, params))

    Ho = (H - 1) // stride + 1
    Wo = (W - 1) // stride + 1
    assert out.shape == (N, planes, Ho, Wo)

    # Tight check vs. a reference that quantizes conv inputs to bf16 exactly
    # like the kernels (f32 accumulation, f32 BN) ...
    ref_bf = reference_forward(x, params, in_planes=in_planes, planes=planes,
                               stride=stride, mxu_dtype=jnp.bfloat16)
    np.testing.assert_allclose(np.asarray(out), np.asarray(ref_bf),
                               rtol=5e-3, atol=5e-3)
    # ... and a loose sanity check vs. a pure-f32 reference.
    ref_f32 = reference_forward(x, params, in_planes=in_planes, planes=planes,
                                stride=stride, mxu_dtype=jnp.float32)
    np.testing.assert_allclose(np.asarray(out), np.asarray(ref_f32),
                               rtol=5e-2, atol=5e-2)

    print("KERNEL_OK")
</pallas_src>

<mosaic_0001>
module attributes {stable_mosaic.version = 11 : i64} {
  func.func @_scale_shift_kernel(%arg0: i32, %arg1: memref<256x8xf32, #tpu.memory_space<vmem>>, %arg2: memref<1x8xf32, #tpu.memory_space<vmem>>, %arg3: memref<1x8xf32, #tpu.memory_space<vmem>>, %arg4: memref<256x8xbf16, #tpu.memory_space<vmem>>) attributes {dimension_semantics = [#tpu.dimension_semantics<parallel>], iteration_bounds = array<i64: 2>, scalar_prefetch = 0 : i64, scratch_operands = 0 : i64, tpu.core_type = #tpu.core_type<tc>, window_params = [{transform_indices = @transform_0, window_bounds = array<i64: 256, 8>}, {pipeline_mode = #tpu.pipeline_mode<synchronous>, transform_indices = @transform_1, window_bounds = array<i64: 1, 8>}, {pipeline_mode = #tpu.pipeline_mode<synchronous>, transform_indices = @transform_2, window_bounds = array<i64: 1, 8>}, {transform_indices = @transform_3, window_bounds = array<i64: 256, 8>}]} {
    %c0 = arith.constant 0 : index
    %c0_0 = arith.constant 0 : index
    %0 = vector.load %arg1[%c0, %c0_0] : memref<256x8xf32, #tpu.memory_space<vmem>>, vector<256x8xf32>
    %c0_1 = arith.constant 0 : index
    %c0_2 = arith.constant 0 : index
    %1 = vector.load %arg2[%c0_1, %c0_2] : memref<1x8xf32, #tpu.memory_space<vmem>>, vector<1x8xf32>
    %2 = vector.broadcast %1 : vector<1x8xf32> to vector<256x8xf32>
    %3 = arith.mulf %0, %2 : vector<256x8xf32>
    %c0_3 = arith.constant 0 : index
    %c0_4 = arith.constant 0 : index
    %4 = vector.load %arg3[%c0_3, %c0_4] : memref<1x8xf32, #tpu.memory_space<vmem>>, vector<1x8xf32>
    %5 = vector.broadcast %4 : vector<1x8xf32> to vector<256x8xf32>
    %6 = arith.addf %3, %5 : vector<256x8xf32>
    %cst = arith.constant 0.000000e+00 : f32
    %7 = vector.broadcast %cst : f32 to vector<256x8xf32>
    %8 = arith.maximumf %6, %7 : vector<256x8xf32>
    %9 = arith.truncf %8 : vector<256x8xf32> to vector<256x8xbf16>
    %c0_5 = arith.constant 0 : index
    %c0_6 = arith.constant 0 : index
    %10 = vector.load %arg4[%c0_5, %c0_6] : memref<256x8xbf16, #tpu.memory_space<vmem>>, vector<256x8xbf16>
    tpu.vector_store %arg4[%c0_5, %c0_6], %9 {strides = array<i32>} : memref<256x8xbf16, #tpu.memory_space<vmem>>, vector<256x8xbf16>,
    return
  }
  func.func @transform_0(%arg0: i32) -> (i32, i32) {
    %c0_i32 = arith.constant 0 : i32
    %c0_i32_0 = arith.constant 0 : i32
    return %arg0, %c0_i32 : i32, i32
  }
  func.func @transform_1(%arg0: i32) -> (i32, i32) {
    %c0_i32 = arith.constant 0 : i32
    %c0_i32_0 = arith.constant 0 : i32
    %c0_i32_1 = arith.constant 0 : i32
    return %c0_i32, %c0_i32_0 : i32, i32
  }
  func.func @transform_2(%arg0: i32) -> (i32, i32) {
    %c0_i32 = arith.constant 0 : i32
    %c0_i32_0 = arith.constant 0 : i32
    %c0_i32_1 = arith.constant 0 : i32
    return %c0_i32, %c0_i32_0 : i32, i32
  }
  func.func @transform_3(%arg0: i32) -> (i32, i32) {
    %c0_i32 = arith.constant 0 : i32
    %c0_i32_0 = arith.constant 0 : i32
    return %arg0, %c0_i32 : i32, i32
  }
}

module attributes {stable_mosaic.version = 11 : i64} {
  func.func @_conv3x3_bn_stats_kernel(%arg0: i32, %arg1: i32, %arg2: memref<1x18x18x4xbf16, #tpu.memory_space<vmem>>, %arg3: memref<36x8xbf16, #tpu.memory_space<vmem>>, %arg4: memref<1x8x16x8xf32, #tpu.memory_space<vmem>>, %arg5: memref<1x1x2x8xf32, #tpu.memory_space<vmem>>) attributes {dimension_semantics = [#tpu.dimension_semantics<parallel>, #tpu.dimension_semantics<parallel>], iteration_bounds = array<i64: 2, 2>, scalar_prefetch = 0 : i64, scratch_operands = 0 : i64, tpu.core_type = #tpu.core_type<tc>, window_params = [{transform_indices = @transform_0, window_bounds = array<i64: 1, 18, 18, 4>}, {pipeline_mode = #tpu.pipeline_mode<synchronous>, transform_indices = @transform_1, window_bounds = array<i64: 36, 8>}, {transform_indices = @transform_2, window_bounds = array<i64: 1, 8, 16, 8>}, {transform_indices = @transform_3, window_bounds = array<i64: 1, 1, 2, 8>}]} {
    %c8_i32 = arith.constant 8 : i32
    %0 = arith.muli %arg1, %c8_i32 : i32
    %1 = tpu.assume_multiple %0, 8 : i32
    %c0_i32 = arith.constant 0 : i32
    %2 = arith.addi %1, %c0_i32 : i32
    %c0 = arith.constant 0 : index
    %3 = arith.index_cast %2 : i32 to index
    %c0_0 = arith.constant 0 : index
    %c0_1 = arith.constant 0 : index
    %4 = vector.load %arg2[%c0, %3, %c0_0, %c0_1] : memref<1x18x18x4xbf16, #tpu.memory_space<vmem>>, vector<1x8x16x4xbf16>
    %c0_i32_2 = arith.constant 0 : i32
    %5 = arith.addi %1, %c0_i32_2 : i32
    %c0_3 = arith.constant 0 : index
    %6 = arith.index_cast %5 : i32 to index
    %c1 = arith.constant 1 : index
    %c0_4 = arith.constant 0 : index
    %7 = vector.load %arg2[%c0_3, %6, %c1, %c0_4] : memref<1x18x18x4xbf16, #tpu.memory_space<vmem>>, vector<1x8x16x4xbf16>
    %c0_i32_5 = arith.constant 0 : i32
    %8 = arith.addi %1, %c0_i32_5 : i32
    %c0_6 = arith.constant 0 : index
    %9 = arith.index_cast %8 : i32 to index
    %c2 = arith.constant 2 : index
    %c0_7 = arith.constant 0 : index
    %10 = vector.load %arg2[%c0_6, %9, %c2, %c0_7] : memref<1x18x18x4xbf16, #tpu.memory_space<vmem>>, vector<1x8x16x4xbf16>
    %c1_i32 = arith.constant 1 : i32
    %11 = arith.addi %1, %c1_i32 : i32
    %c0_8 = arith.constant 0 : index
    %12 = arith.index_cast %11 : i32 to index
    %c0_9 = arith.constant 0 : index
    %c0_10 = arith.constant 0 : index
    %13 = vector.load %arg2[%c0_8, %12, %c0_9, %c0_10] : memref<1x18x18x4xbf16, #tpu.memory_space<vmem>>, vector<1x8x16x4xbf16>
    %c1_i32_11 = arith.constant 1 : i32
    %14 = arith.addi %1, %c1_i32_11 : i32
    %c0_12 = arith.constant 0 : index
    %15 = arith.index_cast %14 : i32 to index
    %c1_13 = arith.constant 1 : index
    %c0_14 = arith.constant 0 : index
    %16 = vector.load %arg2[%c0_12, %15, %c1_13, %c0_14] : memref<1x18x18x4xbf16, #tpu.memory_space<vmem>>, vector<1x8x16x4xbf16>
    %c1_i32_15 = arith.constant 1 : i32
    %17 = arith.addi %1, %c1_i32_15 : i32
    %c0_16 = arith.constant 0 : index
    %18 = arith.index_cast %17 : i32 to index
    %c2_17 = arith.constant 2 : index
    %c0_18 = arith.constant 0 : index
    %19 = vector.load %arg2[%c0_16, %18, %c2_17, %c0_18] : memref<1x18x18x4xbf16, #tpu.memory_space<vmem>>, vector<1x8x16x4xbf16>
    %c2_i32 = arith.constant 2 : i32
    %20 = arith.addi %1, %c2_i32 : i32
    %c0_19 = arith.constant 0 : index
    %21 = arith.index_cast %20 : i32 to index
    %c0_20 = arith.constant 0 : index
    %c0_21 = arith.constant 0 : index
    %22 = vector.load %arg2[%c0_19, %21, %c0_20, %c0_21] : memref<1x18x18x4xbf16, #tpu.memory_space<vmem>>, vector<1x8x16x4xbf16>
    %c2_i32_22 = arith.constant 2 : i32
    %23 = arith.addi %1, %c2_i32_22 : i32
    %c0_23 = arith.constant 0 : index
    %24 = arith.index_cast %23 : i32 to index
    %c1_24 = arith.constant 1 : index
    %c0_25 = arith.constant 0 : index
    %25 = vector.load %arg2[%c0_23, %24, %c1_24, %c0_25] : memref<1x18x18x4xbf16, #tpu.memory_space<vmem>>, vector<1x8x16x4xbf16>
    %c2_i32_26 = arith.constant 2 : i32
    %26 = arith.addi %1, %c2_i32_26 : i32
    %c0_27 = arith.constant 0 : index
    %27 = arith.index_cast %26 : i32 to index
    %c2_28 = arith.constant 2 : index
    %c0_29 = arith.constant 0 : index
    %28 = vector.load %arg2[%c0_27, %27, %c2_28, %c0_29] : memref<1x18x18x4xbf16, #tpu.memory_space<vmem>>, vector<1x8x16x4xbf16>
    %29 = tpu.concatenate %4, %7, %10, %13, %16, %19, %22, %25, %28 in 3 : vector<1x8x16x4xbf16>, vector<1x8x16x4xbf16>, vector<1x8x16x4xbf16>, vector<1x8x16x4xbf16>, vector<1x8x16x4xbf16>, vector<1x8x16x4xbf16>, vector<1x8x16x4xbf16>, vector<1x8x16x4xbf16>, vector<1x8x16x4xbf16> -> vector<1x8x16x36xbf16>
    %30 = vector.shape_cast %29 : vector<1x8x16x36xbf16> to vector<128x36xbf16>
    %c0_30 = arith.constant 0 : index
    %c0_31 = arith.constant 0 : index
    %31 = vector.load %arg3[%c0_30, %c0_31] : memref<36x8xbf16, #tpu.memory_space<vmem>>, vector<36x8xbf16>
    %cst = arith.constant dense<0.000000e+00> : vector<128x8xf32>
    %32 = tpu.matmul %30, %31, %cst {dimension_numbers = #tpu.dot_dimension_numbers<[1], [0], [0], [1], [0, 0, 1, 1], [], []>} : vector<128x36xbf16>, vector<36x8xbf16>, vector<128x8xf32> -> vector<128x8xf32>
    %33 = vector.shape_cast %32 : vector<128x8xf32> to vector<1x8x16x8xf32>
    %c0_32 = arith.constant 0 : index
    %c0_33 = arith.constant 0 : index
    %c0_34 = arith.constant 0 : index
    %c0_35 = arith.constant 0 : index
    %34 = vector.load %arg4[%c0_32, %c0_33, %c0_34, %c0_35] : memref<1x8x16x8xf32, #tpu.memory_space<vmem>>, vector<1x8x16x8xf32>
    tpu.vector_store %arg4[%c0_32, %c0_33, %c0_34, %c0_35], %33 {strides = array<i32>} : memref<1x8x16x8xf32, #tpu.memory_space<vmem>>, vector<1x8x16x8xf32>,
    %cst_36 = arith.constant dense<0.000000e+00> : vector<8xf32>
    %35 = vector.multi_reduction <add>, %32, %cst_36 [0] : vector<128x8xf32> to vector<8xf32>
    %36 = vector.shape_cast %35 : vector<8xf32> to vector<1x8xf32>
    %37 = arith.mulf %32, %32 : vector<128x8xf32>
    %cst_37 = arith.constant dense<0.000000e+00> : vector<8xf32>
    %38 = vector.multi_reduction <add>, %37, %cst_37 [0] : vector<128x8xf32> to vector<8xf32>
    %39 = vector.shape_cast %38 : vector<8xf32> to vector<1x8xf32>
    %40 = tpu.concatenate %36, %39 in 0 : vector<1x8xf32>, vector<1x8xf32> -> vector<2x8xf32>
    %41 = vector.shape_cast %40 : vector<2x8xf32> to vector<1x1x2x8xf32>
    %c0_38 = arith.constant 0 : index
    %c0_39 = arith.constant 0 : index
    %c0_40 = arith.constant 0 : index
    %c0_41 = arith.constant 0 : index
    %42 = vector.load %arg5[%c0_38, %c0_39, %c0_40, %c0_41] : memref<1x1x2x8xf32, #tpu.memory_space<vmem>>, vector<1x1x2x8xf32>
    tpu.vector_store %arg5[%c0_38, %c0_39, %c0_40, %c0_41], %41 {strides = array<i32>} : memref<1x1x2x8xf32, #tpu.memory_space<vmem>>, vector<1x1x2x8xf32>,
    return
  }
  func.func @transform_0(%arg0: i32, %arg1: i32) -> (i32, i32, i32, i32) {
    %c0_i32 = arith.constant 0 : i32
    %c0_i32_0 = arith.constant 0 : i32
    %c0_i32_1 = arith.constant 0 : i32
    %c0_i32_2 = arith.constant 0 : i32
    return %arg0, %c0_i32, %c0_i32_0, %c0_i32_1 : i32, i32, i32, i32
  }
  func.func @transform_1(%arg0: i32, %arg1: i32) -> (i32, i32) {
    %c0_i32 = arith.constant 0 : i32
    %c0_i32_0 = arith.constant 0 : i32
    %c0_i32_1 = arith.constant 0 : i32
    return %c0_i32, %c0_i32_0 : i32, i32
  }
  func.func @transform_2(%arg0: i32, %arg1: i32) -> (i32, i32, i32, i32) {
    %c0_i32 = arith.constant 0 : i32
    %c0_i32_0 = arith.constant 0 : i32
    %c0_i32_1 = arith.constant 0 : i32
    return %arg0, %arg1, %c0_i32, %c0_i32_0 : i32, i32, i32, i32
  }
  func.func @transform_3(%arg0: i32, %arg1: i32) -> (i32, i32, i32, i32) {
    %c0_i32 = arith.constant 0 : i32
    %c0_i32_0 = arith.constant 0 : i32
    %c0_i32_1 = arith.constant 0 : i32
    return %arg0, %arg1, %c0_i32, %c0_i32_0 : i32, i32, i32, i32
  }
}

module attributes {stable_mosaic.version = 11 : i64} {
  func.func @_conv3x3_bn_stats_kernel(%arg0: i32, %arg1: i32, %arg2: memref<1x18x18x8xbf16, #tpu.memory_space<vmem>>, %arg3: memref<72x8xbf16, #tpu.memory_space<vmem>>, %arg4: memref<1x8x16x8xf32, #tpu.memory_space<vmem>>, %arg5: memref<1x1x2x8xf32, #tpu.memory_space<vmem>>) attributes {dimension_semantics = [#tpu.dimension_semantics<parallel>, #tpu.dimension_semantics<parallel>], iteration_bounds = array<i64: 2, 2>, scalar_prefetch = 0 : i64, scratch_operands = 0 : i64, tpu.core_type = #tpu.core_type<tc>, window_params = [{transform_indices = @transform_0, window_bounds = array<i64: 1, 18, 18, 8>}, {pipeline_mode = #tpu.pipeline_mode<synchronous>, transform_indices = @transform_1, window_bounds = array<i64: 72, 8>}, {transform_indices = @transform_2, window_bounds = array<i64: 1, 8, 16, 8>}, {transform_indices = @transform_3, window_bounds = array<i64: 1, 1, 2, 8>}]} {
    %c8_i32 = arith.constant 8 : i32
    %0 = arith.muli %arg1, %c8_i32 : i32
    %1 = tpu.assume_multiple %0, 8 : i32
    %c0_i32 = arith.constant 0 : i32
    %2 = arith.addi %1, %c0_i32 : i32
    %c0 = arith.constant 0 : index
    %3 = arith.index_cast %2 : i32 to index
    %c0_0 = arith.constant 0 : index
    %c0_1 = arith.constant 0 : index
    %4 = vector.load %arg2[%c0, %3, %c0_0, %c0_1] : memref<1x18x18x8xbf16, #tpu.memory_space<vmem>>, vector<1x8x16x8xbf16>
    %c0_i32_2 = arith.constant 0 : i32
    %5 = arith.addi %1, %c0_i32_2 : i32
    %c0_3 = arith.constant 0 : index
    %6 = arith.index_cast %5 : i32 to index
    %c1 = arith.constant 1 : index
    %c0_4 = arith.constant 0 : index
    %7 = vector.load %arg2[%c0_3, %6, %c1, %c0_4] : memref<1x18x18x8xbf16, #tpu.memory_space<vmem>>, vector<1x8x16x8xbf16>
    %c0_i32_5 = arith.constant 0 : i32
    %8 = arith.addi %1, %c0_i32_5 : i32
    %c0_6 = arith.constant 0 : index
    %9 = arith.index_cast %8 : i32 to index
    %c2 = arith.constant 2 : index
    %c0_7 = arith.constant 0 : index
    %10 = vector.load %arg2[%c0_6, %9, %c2, %c0_7] : memref<1x18x18x8xbf16, #tpu.memory_space<vmem>>, vector<1x8x16x8xbf16>
    %c1_i32 = arith.constant 1 : i32
    %11 = arith.addi %1, %c1_i32 : i32
    %c0_8 = arith.constant 0 : index
    %12 = arith.index_cast %11 : i32 to index
    %c0_9 = arith.constant 0 : index
    %c0_10 = arith.constant 0 : index
    %13 = vector.load %arg2[%c0_8, %12, %c0_9, %c0_10] : memref<1x18x18x8xbf16, #tpu.memory_space<vmem>>, vector<1x8x16x8xbf16>
    %c1_i32_11 = arith.constant 1 : i32
    %14 = arith.addi %1, %c1_i32_11 : i32
    %c0_12 = arith.constant 0 : index
    %15 = arith.index_cast %14 : i32 to index
    %c1_13 = arith.constant 1 : index
    %c0_14 = arith.constant 0 : index
    %16 = vector.load %arg2[%c0_12, %15, %c1_13, %c0_14] : memref<1x18x18x8xbf16, #tpu.memory_space<vmem>>, vector<1x8x16x8xbf16>
    %c1_i32_15 = arith.constant 1 : i32
    %17 = arith.addi %1, %c1_i32_15 : i32
    %c0_16 = arith.constant 0 : index
    %18 = arith.index_cast %17 : i32 to index
    %c2_17 = arith.constant 2 : index
    %c0_18 = arith.constant 0 : index
    %19 = vector.load %arg2[%c0_16, %18, %c2_17, %c0_18] : memref<1x18x18x8xbf16, #tpu.memory_space<vmem>>, vector<1x8x16x8xbf16>
    %c2_i32 = arith.constant 2 : i32
    %20 = arith.addi %1, %c2_i32 : i32
    %c0_19 = arith.constant 0 : index
    %21 = arith.index_cast %20 : i32 to index
    %c0_20 = arith.constant 0 : index
    %c0_21 = arith.constant 0 : index
    %22 = vector.load %arg2[%c0_19, %21, %c0_20, %c0_21] : memref<1x18x18x8xbf16, #tpu.memory_space<vmem>>, vector<1x8x16x8xbf16>
    %c2_i32_22 = arith.constant 2 : i32
    %23 = arith.addi %1, %c2_i32_22 : i32
    %c0_23 = arith.constant 0 : index
    %24 = arith.index_cast %23 : i32 to index
    %c1_24 = arith.constant 1 : index
    %c0_25 = arith.constant 0 : index
    %25 = vector.load %arg2[%c0_23, %24, %c1_24, %c0_25] : memref<1x18x18x8xbf16, #tpu.memory_space<vmem>>, vector<1x8x16x8xbf16>
    %c2_i32_26 = arith.constant 2 : i32
    %26 = arith.addi %1, %c2_i32_26 : i32
    %c0_27 = arith.constant 0 : index
    %27 = arith.index_cast %26 : i32 to index
    %c2_28 = arith.constant 2 : index
    %c0_29 = arith.constant 0 : index
    %28 = vector.load %arg2[%c0_27, %27, %c2_28, %c0_29] : memref<1x18x18x8xbf16, #tpu.memory_space<vmem>>, vector<1x8x16x8xbf16>
    %29 = tpu.concatenate %4, %7, %10, %13, %16, %19, %22, %25, %28 in 3 : vector<1x8x16x8xbf16>, vector<1x8x16x8xbf16>, vector<1x8x16x8xbf16>, vector<1x8x16x8xbf16>, vector<1x8x16x8xbf16>, vector<1x8x16x8xbf16>, vector<1x8x16x8xbf16>, vector<1x8x16x8xbf16>, vector<1x8x16x8xbf16> -> vector<1x8x16x72xbf16>
    %30 = vector.shape_cast %29 : vector<1x8x16x72xbf16> to vector<128x72xbf16>
    %c0_30 = arith.constant 0 : index
    %c0_31 = arith.constant 0 : index
    %31 = vector.load %arg3[%c0_30, %c0_31] : memref<72x8xbf16, #tpu.memory_space<vmem>>, vector<72x8xbf16>
    %cst = arith.constant dense<0.000000e+00> : vector<128x8xf32>
    %32 = tpu.matmul %30, %31, %cst {dimension_numbers = #tpu.dot_dimension_numbers<[1], [0], [0], [1], [0, 0, 1, 1], [], []>} : vector<128x72xbf16>, vector<72x8xbf16>, vector<128x8xf32> -> vector<128x8xf32>
    %33 = vector.shape_cast %32 : vector<128x8xf32> to vector<1x8x16x8xf32>
    %c0_32 = arith.constant 0 : index
    %c0_33 = arith.constant 0 : index
    %c0_34 = arith.constant 0 : index
    %c0_35 = arith.constant 0 : index
    %34 = vector.load %arg4[%c0_32, %c0_33, %c0_34, %c0_35] : memref<1x8x16x8xf32, #tpu.memory_space<vmem>>, vector<1x8x16x8xf32>
    tpu.vector_store %arg4[%c0_32, %c0_33, %c0_34, %c0_35], %33 {strides = array<i32>} : memref<1x8x16x8xf32, #tpu.memory_space<vmem>>, vector<1x8x16x8xf32>,
    %cst_36 = arith.constant dense<0.000000e+00> : vector<8xf32>
    %35 = vector.multi_reduction <add>, %32, %cst_36 [0] : vector<128x8xf32> to vector<8xf32>
    %36 = vector.shape_cast %35 : vector<8xf32> to vector<1x8xf32>
    %37 = arith.mulf %32, %32 : vector<128x8xf32>
    %cst_37 = arith.constant dense<0.000000e+00> : vector<8xf32>
    %38 = vector.multi_reduction <add>, %37, %cst_37 [0] : vector<128x8xf32> to vector<8xf32>
    %39 = vector.shape_cast %38 : vector<8xf32> to vector<1x8xf32>
    %40 = tpu.concatenate %36, %39 in 0 : vector<1x8xf32>, vector<1x8xf32> -> vector<2x8xf32>
    %41 = vector.shape_cast %40 : vector<2x8xf32> to vector<1x1x2x8xf32>
    %c0_38 = arith.constant 0 : index
    %c0_39 = arith.constant 0 : index
    %c0_40 = arith.constant 0 : index
    %c0_41 = arith.constant 0 : index
    %42 = vector.load %arg5[%c0_38, %c0_39, %c0_40, %c0_41] : memref<1x1x2x8xf32, #tpu.memory_space<vmem>>, vector<1x1x2x8xf32>
    tpu.vector_store %arg5[%c0_38, %c0_39, %c0_40, %c0_41], %41 {strides = array<i32>} : memref<1x1x2x8xf32, #tpu.memory_space<vmem>>, vector<1x1x2x8xf32>,
    return
  }
  func.func @transform_0(%arg0: i32, %arg1: i32) -> (i32, i32, i32, i32) {
    %c0_i32 = arith.constant 0 : i32
    %c0_i32_0 = arith.constant 0 : i32
    %c0_i32_1 = arith.constant 0 : i32
    %c0_i32_2 = arith.constant 0 : i32
    return %arg0, %c0_i32, %c0_i32_0, %c0_i32_1 : i32, i32, i32, i32
  }
  func.func @transform_1(%arg0: i32, %arg1: i32) -> (i32, i32) {
    %c0_i32 = arith.constant 0 : i32
    %c0_i32_0 = arith.constant 0 : i32
    %c0_i32_1 = arith.constant 0 : i32
    return %c0_i32, %c0_i32_0 : i32, i32
  }
  func.func @transform_2(%arg0: i32, %arg1: i32) -> (i32, i32, i32, i32) {
    %c0_i32 = arith.constant 0 : i32
    %c0_i32_0 = arith.constant 0 : i32
    %c0_i32_1 = arith.constant 0 : i32
    return %arg0, %arg1, %c0_i32, %c0_i32_0 : i32, i32, i32, i32
  }
  func.func @transform_3(%arg0: i32, %arg1: i32) -> (i32, i32, i32, i32) {
    %c0_i32 = arith.constant 0 : i32
    %c0_i32_0 = arith.constant 0 : i32
    %c0_i32_1 = arith.constant 0 : i32
    return %arg0, %arg1, %c0_i32, %c0_i32_0 : i32, i32, i32, i32
  }
}

module attributes {stable_mosaic.version = 11 : i64} {
  func.func @_conv1x1_bn_stats_kernel(%arg0: i32, %arg1: memref<256x4xbf16, #tpu.memory_space<vmem>>, %arg2: memref<4x8xbf16, #tpu.memory_space<vmem>>, %arg3: memref<256x8xf32, #tpu.memory_space<vmem>>, %arg4: memref<1x2x8xf32, #tpu.memory_space<vmem>>) attributes {dimension_semantics = [#tpu.dimension_semantics<parallel>], iteration_bounds = array<i64: 2>, scalar_prefetch = 0 : i64, scratch_operands = 0 : i64, tpu.core_type = #tpu.core_type<tc>, window_params = [{transform_indices = @transform_0, window_bounds = array<i64: 256, 4>}, {pipeline_mode = #tpu.pipeline_mode<synchronous>, transform_indices = @transform_1, window_bounds = array<i64: 4, 8>}, {transform_indices = @transform_2, window_bounds = array<i64: 256, 8>}, {transform_indices = @transform_3, window_bounds = array<i64: 1, 2, 8>}]} {
    %c0 = arith.constant 0 : index
    %c0_0 = arith.constant 0 : index
    %0 = vector.load %arg1[%c0, %c0_0] : memref<256x4xbf16, #tpu.memory_space<vmem>>, vector<256x4xbf16>
    %c0_1 = arith.constant 0 : index
    %c0_2 = arith.constant 0 : index
    %1 = vector.load %arg2[%c0_1, %c0_2] : memref<4x8xbf16, #tpu.memory_space<vmem>>, vector<4x8xbf16>
    %cst = arith.constant dense<0.000000e+00> : vector<256x8xf32>
    %2 = tpu.matmul %0, %1, %cst {dimension_numbers = #tpu.dot_dimension_numbers<[1], [0], [0], [1], [0, 0, 1, 1], [], []>} : vector<256x4xbf16>, vector<4x8xbf16>, vector<256x8xf32> -> vector<256x8xf32>
    %c0_3 = arith.constant 0 : index
    %c0_4 = arith.constant 0 : index
    %3 = vector.load %arg3[%c0_3, %c0_4] : memref<256x8xf32, #tpu.memory_space<vmem>>, vector<256x8xf32>
    tpu.vector_store %arg3[%c0_3, %c0_4], %2 {strides = array<i32>} : memref<256x8xf32, #tpu.memory_space<vmem>>, vector<256x8xf32>,
    %cst_5 = arith.constant dense<0.000000e+00> : vector<8xf32>
    %4 = vector.multi_reduction <add>, %2, %cst_5 [0] : vector<256x8xf32> to vector<8xf32>
    %5 = vector.shape_cast %4 : vector<8xf32> to vector<1x8xf32>
    %6 = arith.mulf %2, %2 : vector<256x8xf32>
    %cst_6 = arith.constant dense<0.000000e+00> : vector<8xf32>
    %7 = vector.multi_reduction <add>, %6, %cst_6 [0] : vector<256x8xf32> to vector<8xf32>
    %8 = vector.shape_cast %7 : vector<8xf32> to vector<1x8xf32>
    %9 = tpu.concatenate %5, %8 in 0 : vector<1x8xf32>, vector<1x8xf32> -> vector<2x8xf32>
    %10 = vector.shape_cast %9 : vector<2x8xf32> to vector<1x2x8xf32>
    %c0_7 = arith.constant 0 : index
    %c0_8 = arith.constant 0 : index
    %c0_9 = arith.constant 0 : index
    %11 = vector.load %arg4[%c0_7, %c0_8, %c0_9] : memref<1x2x8xf32, #tpu.memory_space<vmem>>, vector<1x2x8xf32>
    tpu.vector_store %arg4[%c0_7, %c0_8, %c0_9], %10 {strides = array<i32>} : memref<1x2x8xf32, #tpu.memory_space<vmem>>, vector<1x2x8xf32>,
    return
  }
  func.func @transform_0(%arg0: i32) -> (i32, i32) {
    %c0_i32 = arith.constant 0 : i32
    %c0_i32_0 = arith.constant 0 : i32
    return %arg0, %c0_i32 : i32, i32
  }
  func.func @transform_1(%arg0: i32) -> (i32, i32) {
    %c0_i32 = arith.constant 0 : i32
    %c0_i32_0 = arith.constant 0 : i32
    %c0_i32_1 = arith.constant 0 : i32
    return %c0_i32, %c0_i32_0 : i32, i32
  }
  func.func @transform_2(%arg0: i32) -> (i32, i32) {
    %c0_i32 = arith.constant 0 : i32
    %c0_i32_0 = arith.constant 0 : i32
    return %arg0, %c0_i32 : i32, i32
  }
  func.func @transform_3(%arg0: i32) -> (i32, i32, i32) {
    %c0_i32 = arith.constant 0 : i32
    %c0_i32_0 = arith.constant 0 : i32
    %c0_i32_1 = arith.constant 0 : i32
    return %arg0, %c0_i32, %c0_i32_0 : i32, i32, i32
  }
}

module attributes {stable_mosaic.version = 11 : i64} {
  func.func @_scale_shift_kernel(%arg0: i32, %arg1: memref<256x8xf32, #tpu.memory_space<vmem>>, %arg2: memref<1x8xf32, #tpu.memory_space<vmem>>, %arg3: memref<1x8xf32, #tpu.memory_space<vmem>>, %arg4: memref<256x8xf32, #tpu.memory_space<vmem>>) attributes {dimension_semantics = [#tpu.dimension_semantics<parallel>], iteration_bounds = array<i64: 2>, scalar_prefetch = 0 : i64, scratch_operands = 0 : i64, tpu.core_type = #tpu.core_type<tc>, window_params = [{transform_indices = @transform_0, window_bounds = array<i64: 256, 8>}, {pipeline_mode = #tpu.pipeline_mode<synchronous>, transform_indices = @transform_1, window_bounds = array<i64: 1, 8>}, {pipeline_mode = #tpu.pipeline_mode<synchronous>, transform_indices = @transform_2, window_bounds = array<i64: 1, 8>}, {transform_indices = @transform_3, window_bounds = array<i64: 256, 8>}]} {
    %c0 = arith.constant 0 : index
    %c0_0 = arith.constant 0 : index
    %0 = vector.load %arg1[%c0, %c0_0] : memref<256x8xf32, #tpu.memory_space<vmem>>, vector<256x8xf32>
    %c0_1 = arith.constant 0 : index
    %c0_2 = arith.constant 0 : index
    %1 = vector.load %arg2[%c0_1, %c0_2] : memref<1x8xf32, #tpu.memory_space<vmem>>, vector<1x8xf32>
    %2 = vector.broadcast %1 : vector<1x8xf32> to vector<256x8xf32>
    %3 = arith.mulf %0, %2 : vector<256x8xf32>
    %c0_3 = arith.constant 0 : index
    %c0_4 = arith.constant 0 : index
    %4 = vector.load %arg3[%c0_3, %c0_4] : memref<1x8xf32, #tpu.memory_space<vmem>>, vector<1x8xf32>
    %5 = vector.broadcast %4 : vector<1x8xf32> to vector<256x8xf32>
    %6 = arith.addf %3, %5 : vector<256x8xf32>
    %c0_5 = arith.constant 0 : index
    %c0_6 = arith.constant 0 : index
    %7 = vector.load %arg4[%c0_5, %c0_6] : memref<256x8xf32, #tpu.memory_space<vmem>>, vector<256x8xf32>
    tpu.vector_store %arg4[%c0_5, %c0_6], %6 {strides = array<i32>} : memref<256x8xf32, #tpu.memory_space<vmem>>, vector<256x8xf32>,
    return
  }
  func.func @transform_0(%arg0: i32) -> (i32, i32) {
    %c0_i32 = arith.constant 0 : i32
    %c0_i32_0 = arith.constant 0 : i32
    return %arg0, %c0_i32 : i32, i32
  }
  func.func @transform_1(%arg0: i32) -> (i32, i32) {
    %c0_i32 = arith.constant 0 : i32
    %c0_i32_0 = arith.constant 0 : i32
    %c0_i32_1 = arith.constant 0 : i32
    return %c0_i32, %c0_i32_0 : i32, i32
  }
  func.func @transform_2(%arg0: i32) -> (i32, i32) {
    %c0_i32 = arith.constant 0 : i32
    %c0_i32_0 = arith.constant 0 : i32
    %c0_i32_1 = arith.constant 0 : i32
    return %c0_i32, %c0_i32_0 : i32, i32
  }
  func.func @transform_3(%arg0: i32) -> (i32, i32) {
    %c0_i32 = arith.constant 0 : i32
    %c0_i32_0 = arith.constant 0 : i32
    return %arg0, %c0_i32 : i32, i32
  }
}

module attributes {stable_mosaic.version = 11 : i64} {
  func.func @_scale_shift_add_relu_kernel(%arg0: i32, %arg1: memref<256x8xf32, #tpu.memory_space<vmem>>, %arg2: memref<256x8xf32, #tpu.memory_space<vmem>>, %arg3: memref<1x8xf32, #tpu.memory_space<vmem>>, %arg4: memref<1x8xf32, #tpu.memory_space<vmem>>, %arg5: memref<256x8xf32, #tpu.memory_space<vmem>>) attributes {dimension_semantics = [#tpu.dimension_semantics<parallel>], iteration_bounds = array<i64: 2>, scalar_prefetch = 0 : i64, scratch_operands = 0 : i64, tpu.core_type = #tpu.core_type<tc>, window_params = [{transform_indices = @transform_0, window_bounds = array<i64: 256, 8>}, {transform_indices = @transform_1, window_bounds = array<i64: 256, 8>}, {pipeline_mode = #tpu.pipeline_mode<synchronous>, transform_indices = @transform_2, window_bounds = array<i64: 1, 8>}, {pipeline_mode = #tpu.pipeline_mode<synchronous>, transform_indices = @transform_3, window_bounds = array<i64: 1, 8>}, {transform_indices = @transform_4, window_bounds = array<i64: 256, 8>}]} {
    %c0 = arith.constant 0 : index
    %c0_0 = arith.constant 0 : index
    %0 = vector.load %arg1[%c0, %c0_0] : memref<256x8xf32, #tpu.memory_space<vmem>>, vector<256x8xf32>
    %c0_1 = arith.constant 0 : index
    %c0_2 = arith.constant 0 : index
    %1 = vector.load %arg3[%c0_1, %c0_2] : memref<1x8xf32, #tpu.memory_space<vmem>>, vector<1x8xf32>
    %2 = vector.broadcast %1 : vector<1x8xf32> to vector<256x8xf32>
    %3 = arith.mulf %0, %2 : vector<256x8xf32>
    %c0_3 = arith.constant 0 : index
    %c0_4 = arith.constant 0 : index
    %4 = vector.load %arg4[%c0_3, %c0_4] : memref<1x8xf32, #tpu.memory_space<vmem>>, vector<1x8xf32>
    %5 = vector.broadcast %4 : vector<1x8xf32> to vector<256x8xf32>
    %6 = arith.addf %3, %5 : vector<256x8xf32>
    %c0_5 = arith.constant 0 : index
    %c0_6 = arith.constant 0 : index
    %7 = vector.load %arg2[%c0_5, %c0_6] : memref<256x8xf32, #tpu.memory_space<vmem>>, vector<256x8xf32>
    %8 = arith.addf %6, %7 : vector<256x8xf32>
    %cst = arith.constant 0.000000e+00 : f32
    %9 = vector.broadcast %cst : f32 to vector<256x8xf32>
    %10 = arith.maximumf %8, %9 : vector<256x8xf32>
    %c0_7 = arith.constant 0 : index
    %c0_8 = arith.constant 0 : index
    %11 = vector.load %arg5[%c0_7, %c0_8] : memref<256x8xf32, #tpu.memory_space<vmem>>, vector<256x8xf32>
    tpu.vector_store %arg5[%c0_7, %c0_8], %10 {strides = array<i32>} : memref<256x8xf32, #tpu.memory_space<vmem>>, vector<256x8xf32>,
    return
  }
  func.func @transform_0(%arg0: i32) -> (i32, i32) {
    %c0_i32 = arith.constant 0 : i32
    %c0_i32_0 = arith.constant 0 : i32
    return %arg0, %c0_i32 : i32, i32
  }
  func.func @transform_1(%arg0: i32) -> (i32, i32) {
    %c0_i32 = arith.constant 0 : i32
    %c0_i32_0 = arith.constant 0 : i32
    return %arg0, %c0_i32 : i32, i32
  }
  func.func @transform_2(%arg0: i32) -> (i32, i32) {
    %c0_i32 = arith.constant 0 : i32
    %c0_i32_0 = arith.constant 0 : i32
    %c0_i32_1 = arith.constant 0 : i32
    return %c0_i32, %c0_i32_0 : i32, i32
  }
  func.func @transform_3(%arg0: i32) -> (i32, i32) {
    %c0_i32 = arith.constant 0 : i32
    %c0_i32_0 = arith.constant 0 : i32
    %c0_i32_1 = arith.constant 0 : i32
    return %c0_i32, %c0_i32_0 : i32, i32
  }
  func.func @transform_4(%arg0: i32) -> (i32, i32) {
    %c0_i32 = arith.constant 0 : i32
    %c0_i32_0 = arith.constant 0 : i32
    return %arg0, %c0_i32 : i32, i32
  }
}

</mosaic_0001>

<bundles_post_ra>
// kernel: basic_block_forward.7
= control target key start
LH: loop header
LB: loop body
LE: loop exit
PB: predicated region body
PF: predicated region fallthrough
CT: control target
= control target key end

     0   :  { %s646_s12 = smov 0   ;;  %s841_s0 = inlined_call_operand.vmem [shape: f32[512,8], index: 0, kind: input, shape index: {}]   ;;  %s842_s1 = inlined_call_operand.vmem [shape: f32[1,8], index: 1, kind: input, shape index: {}]   ;;  %s843_s2 = inlined_call_operand.vmem [shape: f32[1,8], index: 2, kind: input, shape index: {}]   ;;  %s844_s3 = inlined_call_operand.vmem [shape: bf16[512,8], index: 3, kind: output, shape index: {}]  }
   0x1 LB: > { %s533_s13 = sadd.s32 4294967295, %s624_s12   ;;  %p537_p0 = scmp.ge.s32.totalorder %s624_s12, 1  ;;  %s624_s12 = sphi %s646_s12, %s13_s12  }
   0x2   : > { %p138_p1 = scmp.lt.s32.totalorder %s624_s12, 3 }
   0x4   : > { %p139_p2 = pnand %p537_p0, %p138_p1 }
   0x5   : > { %s538_s14 = sshll.u32 (!%p139_p2), %s533_s13, 5 }
   0x6   : > { %142 = sbr.rel (%p139_p2) target bundleno = 54 (0x36), region = 32  ;;  %p163_p3 = scmp.lt.s32.totalorder (!%p139_p2), %s538_s14, 63 }
   0xb   : > { %s846_s14 = smov (!%p163_p3, %s538_s14), 63  ;;  %v660_v0 = vld [vmem:[%s842_s1] ss:$0 sm:$0xff]  ;;  %vm444_vm0 = vcmask 60416  }
   0xc   : > { %s539_s15 = sshll.u32 %s846_s14, 3  ;;  %v670_v1 = vld [vmem:[%s843_s2] ss:$0 sm:$0xff]  ;;  %s541_s23 = sshll.u32 %s846_s14, 2 }
   0xd   : > { %s665_s20 = scalar_lea.vmem %s841_s0, %s539_s15  ;;  %s699_s26 = scalar_lea.vmem %s844_s3, %s541_s23 }
   0xe   : > { %v174_v2 = vld [vmem:[%s665_s20] sm:$0xff]  ;;  %v175_v3 = vld [vmem:[%s665_s20 + $0x8] sm:$0xff]  ;;  %v176_v4 = vld [vmem:[%s665_s20 + $0x10] sm:$0xff] }
   0xf   : > { %v213_v5 = vmul.f32 %v660_v0, %v174_v2  ;;  %v214_v6 = vmul.f32 %v660_v0, %v175_v3  ;;  %v215_v7 = vmul.f32 %v660_v0, %v176_v4  ;;  %v177_v8 = vld [vmem:[%s665_s20 + $0x18] sm:$0xff]  ;;  %v178_v9 = vld [vmem:[%s665_s20 + $0x20] sm:$0xff]  ;;  %v179_v10 = vld [vmem:[%s665_s20 + $0x28] sm:$0xff] }
  0x10   : > { %v216_v11 = vmul.f32 %v660_v0, %v177_v8  ;;  %v217_v12 = vmul.f32 %v660_v0, %v178_v9  ;;  %v218_v13 = vmul.f32 %v660_v0, %v179_v10  ;;  %v180_v14 = vld [vmem:[%s665_s20 + $0x30] sm:$0xff]  ;;  %v181_v15 = vld [vmem:[%s665_s20 + $0x38] sm:$0xff]  ;;  %v182_v32 = vld [vmem:[%s665_s20 + $0x40] sm:$0xff] }
  0x11   : > { %v252_v16 = vadd.f32 %v670_v1, %v213_v5  ;;  %v253_v17 = vadd.f32 %v670_v1, %v214_v6  ;;  %v254_v18 = vadd.f32 %v670_v1, %v215_v7  ;;  %v219_v19 = vmul.f32 %v660_v0, %v180_v14  ;;  %v183_v33 = vld [vmem:[%s665_s20 + $0x48] sm:$0xff]  ;;  %v184_v34 = vld [vmem:[%s665_s20 + $0x50] sm:$0xff]  ;;  %v185_v39 = vld [vmem:[%s665_s20 + $0x58] sm:$0xff] }
  0x12   : > { %v255_v20 = vadd.f32 %v670_v1, %v216_v11  ;;  %v256_v21 = vadd.f32 %v670_v1, %v217_v12  ;;  %v257_v22 = vadd.f32 %v670_v1, %v218_v13  ;;  %v220_v23 = vmul.f32 %v660_v0, %v181_v15  ;;  %v186_v40 = vld [vmem:[%s665_s20 + $0x60] sm:$0xff]  ;;  %v187_v41 = vld [vmem:[%s665_s20 + $0x68] sm:$0xff]  ;;  %v188_v46 = vld [vmem:[%s665_s20 + $0x70] sm:$0xff] }
  0x13   : > { %v284_v24 = vmax.f32 %v252_v16, 0.0  ;;  %v285_v25 = vmax.f32 %v253_v17, 0.0  ;;  %v286_v26 = vmax.f32 %v254_v18, 0.0  ;;  %v258_v27 = vadd.f32 %v670_v1, %v219_v19  ;;  %v189_v51 = vld [vmem:[%s665_s20 + $0x78] sm:$0xff]  ;;  %v190_v10 = vld [vmem:[%s665_s20 + $0x80] sm:$0xff]  ;;  %v191_v11 = vld [vmem:[%s665_s20 + $0x88] sm:$0xff] }
  0x14   : > { %v287_v28 = vmax.f32 %v255_v20, 0.0  ;;  %v288_v29 = vmax.f32 %v256_v21, 0.0  ;;  %v289_v30 = vmax.f32 %v257_v22, 0.0  ;;  %v259_v31 = vadd.f32 %v670_v1, %v220_v23  ;;  %v192_v12 = vld [vmem:[%s665_s20 + $0x90] sm:$0xff]  ;;  %v193_v17 = vld [vmem:[%s665_s20 + $0x98] sm:$0xff]  ;;  %v194_v18 = vld [vmem:[%s665_s20 + $0xa0] sm:$0xff] }
  0x15   : > { %v578_v35 = vpack.c.bf16 %v284_v24, %v284_v24  ;;  %v579_v36 = vpack.c.bf16 %v285_v25, %v285_v25  ;;  %v580_v37 = vpack.c.bf16 %v286_v26, %v286_v26  ;;  %v290_v38 = vmax.f32 %v258_v27, 0.0  ;;  %v195_v19 = vld [vmem:[%s665_s20 + $0xa8] sm:$0xff]  ;;  %v196_v24 = vld [vmem:[%s665_s20 + $0xb0] sm:$0xff] }
  0x16   : > { %v581_v42 = vpack.c.bf16 %v287_v28, %v287_v28  ;;  %v582_v43 = vpack.c.bf16 %v288_v29, %v288_v29  ;;  %v583_v44 = vpack.c.bf16 %v289_v30, %v289_v30  ;;  %v291_v45 = vmax.f32 %v259_v31, 0.0  ;;  %v197_v29 = vld [vmem:[%s665_s20 + $0xb8] sm:$0xff] }
  0x17   : > { %445 = vst.msk [vmem:[%s699_s26] sm:$0xf] %vm444_vm0, %v578_v35  ;;  %446 = vst.msk [vmem:[%s699_s26 + $0x4] sm:$0xf] %vm444_vm0, %v579_v36  ;;  %v584_v47 = vpack.c.bf16 %v290_v38, %v290_v38  ;;  %v221_v48 = vmul.f32 %v660_v0, %v182_v32  ;;  %v222_v49 = vmul.f32 %v660_v0, %v183_v33 }
  0x18   : > { %447 = vst.msk [vmem:[%s699_s26 + $0x8] sm:$0xf] %vm444_vm0, %v580_v37  ;;  %v223_v50 = vmul.f32 %v660_v0, %v184_v34  ;;  %448 = vst.msk [vmem:[%s699_s26 + $0xc] sm:$0xf] %vm444_vm0, %v581_v42  ;;  %v585_v52 = vpack.c.bf16 %v291_v45, %v291_v45  ;;  %v224_v53 = vmul.f32 %v660_v0, %v185_v39 }
  0x19   : > { %449 = vst.msk [vmem:[%s699_s26 + $0x10] sm:$0xf] %vm444_vm0, %v582_v43  ;;  %450 = vst.msk [vmem:[%s699_s26 + $0x14] sm:$0xf] %vm444_vm0, %v583_v44  ;;  %v225_v54 = vmul.f32 %v660_v0, %v186_v40  ;;  %v226_v55 = vmul.f32 %v660_v0, %v187_v41  ;;  %v260_v56 = vadd.f32 %v670_v1, %v221_v48 }
  0x1a   : > { %451 = vst.msk [vmem:[%s699_s26 + $0x18] sm:$0xf] %vm444_vm0, %v584_v47  ;;  %v261_v57 = vadd.f32 %v670_v1, %v222_v49  ;;  %v262_v58 = vadd.f32 %v670_v1, %v223_v50  ;;  %v227_v59 = vmul.f32 %v660_v0, %v188_v46  ;;  %452 = vst.msk [vmem:[%s699_s26 + $0x1c] sm:$0xf] %vm444_vm0, %v585_v52  ;;  %v198_v50 = vld [vmem:[%s665_s20 + $0xc0] sm:$0xff]  ;;  %v200_v52 = vld [vmem:[%s665_s20 + $0xd0] sm:$0xff] }
  0x1b   : > { %v263_v60 = vadd.f32 %v670_v1, %v224_v53  ;;  %v264_v61 = vadd.f32 %v670_v1, %v225_v54  ;;  %v265_v62 = vadd.f32 %v670_v1, %v226_v55  ;;  %v228_v63 = vmul.f32 %v660_v0, %v189_v51  ;;  %v199_v51 = vld [vmem:[%s665_s20 + $0xc8] sm:$0xff] }
  0x1c   : > { %v292_v2 = vmax.f32 %v260_v56, 0.0  ;;  %v293_v3 = vmax.f32 %v261_v57, 0.0  ;;  %v294_v4 = vmax.f32 %v262_v58, 0.0  ;;  %v266_v5 = vadd.f32 %v670_v1, %v227_v59  ;;  %v201_v57 = vld [vmem:[%s665_s20 + $0xd8] sm:$0xff]  ;;  %v202_v58 = vld [vmem:[%s665_s20 + $0xe0] sm:$0xff]  ;;  %v203_v59 = vld [vmem:[%s665_s20 + $0xe8] sm:$0xff] }
  0x1d   : > { %v295_v6 = vmax.f32 %v263_v60, 0.0  ;;  %v296_v7 = vmax.f32 %v264_v61, 0.0  ;;  %v297_v8 = vmax.f32 %v265_v62, 0.0  ;;  %v267_v9 = vadd.f32 %v670_v1, %v228_v63 }
  0x1e   : > { %v586_v13 = vpack.c.bf16 %v292_v2, %v292_v2  ;;  %v587_v14 = vpack.c.bf16 %v293_v3, %v293_v3  ;;  %v588_v15 = vpack.c.bf16 %v294_v4, %v294_v4  ;;  %v298_v16 = vmax.f32 %v266_v5, 0.0  ;;  %v204_v2 = vld [vmem:[%s665_s20 + $0xf0] sm:$0xff] }
  0x1f   : > { %v589_v20 = vpack.c.bf16 %v295_v6, %v295_v6  ;;  %v590_v21 = vpack.c.bf16 %v296_v7, %v296_v7  ;;  %v591_v22 = vpack.c.bf16 %v297_v8, %v297_v8  ;;  %v299_v23 = vmax.f32 %v267_v9, 0.0  ;;  %v205_v7 = vld [vmem:[%s665_s20 + $0xf8] sm:$0xff] }
  0x20   : > { %453 = vst.msk [vmem:[%s699_s26 + $0x20] sm:$0xf] %vm444_vm0, %v586_v13  ;;  %454 = vst.msk [vmem:[%s699_s26 + $0x24] sm:$0xf] %vm444_vm0, %v587_v14  ;;  %v592_v25 = vpack.c.bf16 %v298_v16, %v298_v16  ;;  %v229_v26 = vmul.f32 %v660_v0, %v190_v10  ;;  %v230_v27 = vmul.f32 %v660_v0, %v191_v11 }
  0x21   : > { %455 = vst.msk [vmem:[%s699_s26 + $0x28] sm:$0xf] %vm444_vm0, %v588_v15  ;;  %v231_v28 = vmul.f32 %v660_v0, %v192_v12  ;;  %456 = vst.msk [vmem:[%s699_s26 + $0x2c] sm:$0xf] %vm444_vm0, %v589_v20  ;;  %v593_v30 = vpack.c.bf16 %v299_v23, %v299_v23  ;;  %v232_v31 = vmul.f32 %v660_v0, %v193_v17 }
  0x22   : > { %457 = vst.msk [vmem:[%s699_s26 + $0x30] sm:$0xf] %vm444_vm0, %v590_v21  ;;  %458 = vst.msk [vmem:[%s699_s26 + $0x34] sm:$0xf] %vm444_vm0, %v591_v22  ;;  %v233_v32 = vmul.f32 %v660_v0, %v194_v18  ;;  %v234_v33 = vmul.f32 %v660_v0, %v195_v19  ;;  %v268_v34 = vadd.f32 %v670_v1, %v229_v26 }
  0x23   : > { %459 = vst.msk [vmem:[%s699_s26 + $0x38] sm:$0xf] %vm444_vm0, %v592_v25  ;;  %v269_v35 = vadd.f32 %v670_v1, %v230_v27  ;;  %v270_v36 = vadd.f32 %v670_v1, %v231_v28  ;;  %v235_v37 = vmul.f32 %v660_v0, %v196_v24  ;;  %460 = vst.msk [vmem:[%s699_s26 + $0x3c] sm:$0xf] %vm444_vm0, %v593_v30 }
  0x24   : > { %v271_v38 = vadd.f32 %v670_v1, %v232_v31  ;;  %v272_v39 = vadd.f32 %v670_v1, %v233_v32  ;;  %v273_v40 = vadd.f32 %v670_v1, %v234_v33  ;;  %v236_v41 = vmul.f32 %v660_v0, %v197_v29 }
  0x25   : > { %v300_v42 = vmax.f32 %v268_v34, 0.0  ;;  %v301_v43 = vmax.f32 %v269_v35, 0.0  ;;  %v302_v44 = vmax.f32 %v270_v36, 0.0  ;;  %v274_v45 = vadd.f32 %v670_v1, %v235_v37 }
  0x26   : > { %v303_v46 = vmax.f32 %v271_v38, 0.0  ;;  %v304_v47 = vmax.f32 %v272_v39, 0.0  ;;  %v305_v48 = vmax.f32 %v273_v40, 0.0  ;;  %v275_v49 = vadd.f32 %v670_v1, %v236_v41 }
  0x27   : > { %v594_v53 = vpack.c.bf16 %v300_v42, %v300_v42  ;;  %v595_v54 = vpack.c.bf16 %v301_v43, %v301_v43  ;;  %v596_v55 = vpack.c.bf16 %v302_v44, %v302_v44  ;;  %v306_v56 = vmax.f32 %v274_v45, 0.0 }
  0x28   : > { %v597_v60 = vpack.c.bf16 %v303_v46, %v303_v46  ;;  %v598_v61 = vpack.c.bf16 %v304_v47, %v304_v47  ;;  %v599_v62 = vpack.c.bf16 %v305_v48, %v305_v48  ;;  %v307_v63 = vmax.f32 %v275_v49, 0.0 }
  0x29   : > { %461 = vst.msk [vmem:[%s699_s26 + $0x40] sm:$0xf] %vm444_vm0, %v594_v53  ;;  %462 = vst.msk [vmem:[%s699_s26 + $0x44] sm:$0xf] %vm444_vm0, %v595_v54  ;;  %v600_v3 = vpack.c.bf16 %v306_v56, %v306_v56  ;;  %v237_v4 = vmul.f32 %v660_v0, %v198_v50  ;;  %v238_v5 = vmul.f32 %v660_v0, %v199_v51 }
  0x2a   : > { %463 = vst.msk [vmem:[%s699_s26 + $0x48] sm:$0xf] %vm444_vm0, %v596_v55  ;;  %v239_v6 = vmul.f32 %v660_v0, %v200_v52  ;;  %464 = vst.msk [vmem:[%s699_s26 + $0x4c] sm:$0xf] %vm444_vm0, %v597_v60  ;;  %v601_v8 = vpack.c.bf16 %v307_v63, %v307_v63  ;;  %v240_v9 = vmul.f32 %v660_v0, %v201_v57 }
  0x2b   : > { %465 = vst.msk [vmem:[%s699_s26 + $0x50] sm:$0xf] %vm444_vm0, %v598_v61  ;;  %466 = vst.msk [vmem:[%s699_s26 + $0x54] sm:$0xf] %vm444_vm0, %v599_v62  ;;  %v241_v10 = vmul.f32 %v660_v0, %v202_v58  ;;  %v242_v11 = vmul.f32 %v660_v0, %v203_v59  ;;  %v276_v12 = vadd.f32 %v670_v1, %v237_v4 }
  0x2c   : > { %467 = vst.msk [vmem:[%s699_s26 + $0x58] sm:$0xf] %vm444_vm0, %v600_v3  ;;  %v277_v13 = vadd.f32 %v670_v1, %v238_v5  ;;  %v278_v14 = vadd.f32 %v670_v1, %v239_v6  ;;  %v243_v15 = vmul.f32 %v660_v0, %v204_v2  ;;  %468 = vst.msk [vmem:[%s699_s26 + $0x5c] sm:$0xf] %vm444_vm0, %v601_v8 }
  0x2d   : > { %v279_v16 = vadd.f32 %v670_v1, %v240_v9  ;;  %v280_v17 = vadd.f32 %v670_v1, %v241_v10  ;;  %v281_v18 = vadd.f32 %v670_v1, %v242_v11  ;;  %v244_v19 = vmul.f32 %v660_v0, %v205_v7 }
  0x2e   : > { %v308_v20 = vmax.f32 %v276_v12, 0.0  ;;  %v309_v21 = vmax.f32 %v277_v13, 0.0  ;;  %v310_v22 = vmax.f32 %v278_v14, 0.0  ;;  %v282_v23 = vadd.f32 %v670_v1, %v243_v15 }
  0x2f   : > { %v311_v24 = vmax.f32 %v279_v16, 0.0  ;;  %v312_v25 = vmax.f32 %v280_v17, 0.0  ;;  %v313_v26 = vmax.f32 %v281_v18, 0.0  ;;  %v283_v27 = vadd.f32 %v670_v1, %v244_v19 }
  0x30   : > { %v602_v28 = vpack.c.bf16 %v308_v20, %v308_v20  ;;  %v603_v29 = vpack.c.bf16 %v309_v21, %v309_v21  ;;  %v604_v0 = vpack.c.bf16 %v310_v22, %v310_v22  ;;  %v314_v30 = vmax.f32 %v282_v23, 0.0 }
  0x31   : > { %v605_v31 = vpack.c.bf16 %v311_v24, %v311_v24  ;;  %v606_v32 = vpack.c.bf16 %v312_v25, %v312_v25  ;;  %v607_v33 = vpack.c.bf16 %v313_v26, %v313_v26  ;;  %v315_v34 = vmax.f32 %v283_v27, 0.0 }
  0x32   : > { %469 = vst.msk [vmem:[%s699_s26 + $0x60] sm:$0xf] %vm444_vm0, %v602_v28  ;;  %470 = vst.msk [vmem:[%s699_s26 + $0x64] sm:$0xf] %vm444_vm0, %v603_v29  ;;  %v608_v35 = vpack.c.bf16 %v314_v30, %v314_v30 }
  0x33   : > { %471 = vst.msk [vmem:[%s699_s26 + $0x68] sm:$0xf] %vm444_vm0, %v604_v0  ;;  %472 = vst.msk [vmem:[%s699_s26 + $0x6c] sm:$0xf] %vm444_vm0, %v605_v31  ;;  %v609_v1 = vpack.c.bf16 %v315_v34, %v315_v34 }
  0x34   : > { %473 = vst.msk [vmem:[%s699_s26 + $0x70] sm:$0xf] %vm444_vm0, %v606_v32  ;;  %474 = vst.msk [vmem:[%s699_s26 + $0x74] sm:$0xf] %vm444_vm0, %v607_v33 }
  0x35   : > { %475 = vst.msk [vmem:[%s699_s26 + $0x78] sm:$0xf] %vm444_vm0, %v608_v35  ;;  %476 = vst.msk [vmem:[%s699_s26 + $0x7c] sm:$0xf] %vm444_vm0, %v609_v1 }
  0x36 PF: > { %s13_s12 = sadd.s32 1, %s624_s12  }
  0x37   : > { %p10_p4 = scmp.ge.s32.totalorder %s13_s12, 4  }
  0x39   :  { %12 = sbr.rel (!%p10_p4) target bundleno = 1 (0x1), region = 62 }

// kernel: basic_block_forward.9
= control target key start
LH: loop header
LB: loop body
LE: loop exit
PB: predicated region body
PF: predicated region fallthrough
CT: control target
= control target key end

     0   :  { %s958_s12 = smov 0   ;;  %s1250_s0 = inlined_call_operand.vmem [shape: bf16[512,4], index: 0, kind: input, shape index: {}]   ;;  %s1251_s1 = inlined_call_operand.vmem [shape: bf16[4,8], index: 1, kind: input, shape index: {}]   ;;  %s1252_s2 = inlined_call_operand.vmem [shape: f32[512,8], index: 2, kind: output, shape index: {0}]   ;;  %s1253_s3 = inlined_call_operand.vmem [shape: f32[2,2,8], index: 3, kind: output, shape index: {1}]  }
   0x1 LB: > { %s964_s13 = sadd.s32 4294967295, %s936_s12   ;;  %p811_p0 = scmp.ge.s32.totalorder %s936_s12, 1  ;;  %s936_s12 = sphi %s958_s12, %s14_s12  }
   0x2   : > { %p141_p1 = scmp.lt.s32.totalorder %s936_s12, 3 }
   0x4   : > { %p142_p2 = pnand %p811_p0, %p141_p1 }
   0x5   : > { %s812_s16 = sshll.u32 (!%p142_p2), %s964_s13, 5  ;;  %p181_p4 = scmp.lt.s32.totalorder (!%p142_p2), %s964_s13, 1 }
   0x6   : > { %145 = sbr.rel (%p142_p2) target bundleno = 294 (0x126), region = 28  ;;  %p170_p3 = scmp.lt.s32.totalorder (!%p142_p2), %s812_s16, 63 }
   0xb   : > { %v218_v0 = vld [vmem:[%s1251_s1] sm:$0x3]  ;;  %vm348_vm0 = vcmask 1041408   ;;  %s1255_s16 = smov (!%p170_p3, %s812_s16), 63  ;;  %vm299_vm1 = vcmask 31744   ;;  %vm513_vm2 = vcmask 64512  }
   0xc   : > { %904 = vmatprep.subr.msk.bf16.mxu0 %vm348_vm0, %v218_v0  ;;  %v350_v1 = vsel %vm348_vm0, %v218_v0, 0  ;;  %905 = vmatprep.subr.msk.bf16.mxu1 %vm348_vm0, %v218_v0  ;;  %s813_s17 = sshll.u32 %s1255_s16, 2  ;;  %s815_s21 = sshll.u32 %s1255_s16, 3  ;;  %vm716_vm3 = vcmask 1040384   ;;  %vm718_vm4 = vcmask 58368  }
   0xd   : > { %869 = vmatpush3.bf16.msra.mxu0 %v350_v1  ;;  %903 = vmatpush3.bf16.msra.mxu1 %v350_v1  ;;  %s978_s20 = scalar_lea.vmem %s1250_s0, %s813_s17  ;;  %s1016_s24 = scalar_lea.vmem %s1252_s2, %s815_s21 }
   0xe   : > { %v914_v2 = vld [vmem:[%s978_s20] sm:$0xff]   ;;  %v915_v3 = vld [vmem:[%s978_s20 + $0x8] sm:$0xff]   ;;  %v916_v4 = vld [vmem:[%s978_s20 + $0x10] sm:$0xff]   ;;  %s1257_s13 = smov (!%p181_p4, %s964_s13), 1 }
   0xf   : > { %870 = vmatprep.mubr.msk.bf16.mxu0 %vm299_vm1, %v914_v2  ;;  %v917_v5 = vld [vmem:[%s978_s20 + $0x18] sm:$0xff]   ;;  %v918_v6 = vld [vmem:[%s978_s20 + $0x20] sm:$0xff]   ;;  %v923_v8 = vld [vmem:[%s978_s20 + $0x48] sm:$0xff]   ;;  %s816_s25 = sshll.u32 %s1257_s13, 1 }
  0x10   : > { %871 = vmatmul.mubr.msk.bf16.vlgmr.msra.gmra.mxu0 %vm299_vm1, %v915_v3  ;;  %v922_v7 = vld [vmem:[%s978_s20 + $0x40] sm:$0xff]   ;;  %v924_v9 = vld [vmem:[%s978_s20 + $0x50] sm:$0xff]   ;;  %v919_v10 = vld [vmem:[%s978_s20 + $0x28] sm:$0xff]   ;;  %s184_s28 = scalar_lea.vmem %s1253_s3, %s816_s25 }
  0x11   : > { %874 = vmatprep.mubr.msk.bf16.mxu0 %vm299_vm1, %v916_v4  ;;  %886 = vmatprep.mubr.msk.bf16.mxu1 %vm299_vm1, %v922_v7  ;;  %v925_v11 = vld [vmem:[%s978_s20 + $0x58] sm:$0xff]   ;;  %v920_v12 = vld [vmem:[%s978_s20 + $0x30] sm:$0xff]   ;;  %v926_v13 = vld [vmem:[%s978_s20 + $0x60] sm:$0xff]  }
  0x12   : > { %887 = vmatmul.mubr.msk.bf16.vlgmr.msra.gmra.mxu1 %vm299_vm1, %v923_v8  ;;  %v921_v14 = vld [vmem:[%s978_s20 + $0x38] sm:$0xff]   ;;  %v927_v15 = vld [vmem:[%s978_s20 + $0x68] sm:$0xff]   ;;  %v928_v16 = vld [vmem:[%s978_s20 + $0x70] sm:$0xff]  }
  0x13   : > { %890 = vmatprep.mubr.msk.bf16.mxu1 %vm299_vm1, %v924_v9  ;;  %v929_v17 = vld [vmem:[%s978_s20 + $0x78] sm:$0xff]  }
  0x18   : > { %875 = vmatmul.mubr.msk.bf16.gmra.mxu0 %vm299_vm1, %v917_v5 }
  0x19   : > { %878 = vmatprep.mubr.msk.bf16.mxu0 %vm299_vm1, %v918_v6 }
  0x1a   : > { %891 = vmatmul.mubr.msk.bf16.gmra.mxu1 %vm299_vm1, %v925_v11 }
  0x1b   : > { %894 = vmatprep.mubr.msk.bf16.mxu1 %vm299_vm1, %v926_v13 }
  0x20   : > { %879 = vmatmul.mubr.msk.bf16.gmra.mxu0 %vm299_vm1, %v919_v10 }
  0x21   : > { %882 = vmatprep.mubr.msk.bf16.mxu0 %vm299_vm1, %v920_v12 }
  0x22   : > { %895 = vmatmul.mubr.msk.bf16.gmra.mxu1 %vm299_vm1, %v927_v15 }
  0x23   : > { %898 = vmatprep.mubr.msk.bf16.mxu1 %vm299_vm1, %v928_v16 }
  0x28   : > { %883 = vmatmul.mubr.msk.bf16.gmra.mxu0 %vm299_vm1, %v921_v14 }
  0x2a   : > { %899 = vmatmul.mubr.msk.bf16.gmra.mxu1 %vm299_vm1, %v929_v17 }
  0xd0   : > { %v872_v18 = vpop.f32.mrf.mxu0 }
  0xd1   : > { %516 = vst.msk [vmem:[%s1016_s24 + $0x10] sm:$0xff] %vm513_vm2, %v872_v18  ;;  %v617_v23 = vmul.f32 %v872_v18, %v872_v18  ;;  %v549_v30 = vsel %vm513_vm2, %v872_v18, 0.0 }
  0xd2   : > { %v386_v19 = vpop.f32.mrf.mxu0  ;;  %v1028_v29 = vpop.f32.mrf.mxu1 }
  0xd3   : > { %514 = vst.msk [vmem:[%s1016_s24] sm:$0xff] %vm513_vm2, %v386_v19  ;;  %v615_v21 = vmul.f32 %v386_v19, %v386_v19  ;;  %v546_v24 = vsel %vm513_vm2, %v386_v19, 0.0  ;;  %532 = vst.msk [vmem:[%s1016_s24 + $0x90] sm:$0xff] %vm513_vm2, %v1028_v29  ;;  %v650_v38 = vsel %vm513_vm2, %v617_v23, 0.0 }
  0xd4   : > { %v873_v20 = vpop.f32.mrf.mxu0  ;;  %v1038_v37 = vpop.f32.mrf.mxu1 }
  0xd5   : > { %517 = vst.msk [vmem:[%s1016_s24 + $0x18] sm:$0xff] %vm513_vm2, %v873_v20  ;;  %v647_v31 = vsel %vm513_vm2, %v615_v21, 0.0  ;;  %v618_v32 = vmul.f32 %v873_v20, %v873_v20  ;;  %v551_v39 = vsel %vm513_vm2, %v873_v20, 0.0  ;;  %530 = vst.msk [vmem:[%s1016_s24 + $0x80] sm:$0xff] %vm513_vm2, %v1038_v37 }
  0xd6   : > { %v389_v22 = vpop.f32.mrf.mxu0  ;;  %v1047_v44 = vpop.f32.mrf.mxu1 }
  0xd7   : > { %515 = vst.msk [vmem:[%s1016_s24 + $0x8] sm:$0xff] %vm513_vm2, %v389_v22  ;;  %v547_v25 = vsel %vm513_vm2, %v389_v22, 0.0  ;;  %v616_v26 = vmul.f32 %v389_v22, %v389_v22  ;;  %v652_v45 = vsel %vm513_vm2, %v618_v32, 0.0  ;;  %533 = vst.msk [vmem:[%s1016_s24 + $0x98] sm:$0xff] %vm513_vm2, %v1047_v44 }
  0xd8   : > { %v548_v27 = vadd.f32 %v547_v25, %v546_v24  ;;  %v876_v28 = vpop.f32.mrf.mxu0  ;;  %v1056_v50 = vpop.f32.mrf.mxu1 }
  0xd9   : > { %v648_v33 = vsel %vm513_vm2, %v616_v26, 0.0  ;;  %520 = vst.msk [vmem:[%s1016_s24 + $0x30] sm:$0xff] %vm513_vm2, %v876_v28  ;;  %v621_v51 = vmul.f32 %v876_v28, %v876_v28  ;;  %531 = vst.msk [vmem:[%s1016_s24 + $0x88] sm:$0xff] %vm513_vm2, %v1056_v50  ;;  %v557_v59 = vsel %vm513_vm2, %v876_v28, 0.0 }
  0xda   : > { %v550_v34 = vadd.f32 %v549_v30, %v548_v27  ;;  %v649_v35 = vadd.f32 %v648_v33, %v647_v31  ;;  %v402_v36 = vpop.f32.mrf.mxu0  ;;  %v1065_v58 = vpop.f32.mrf.mxu1 }
  0xdb   : > { %518 = vst.msk [vmem:[%s1016_s24 + $0x20] sm:$0xff] %vm513_vm2, %v402_v36  ;;  %v619_v40 = vmul.f32 %v402_v36, %v402_v36  ;;  %v553_v46 = vsel %vm513_vm2, %v402_v36, 0.0  ;;  %536 = vst.msk [vmem:[%s1016_s24 + $0xb0] sm:$0xff] %vm513_vm2, %v1065_v58  ;;  %v658_v2 = vsel %vm513_vm2, %v621_v51, 0.0 }
  0xdc   : > { %v651_v41 = vadd.f32 %v650_v38, %v649_v35  ;;  %v552_v42 = vadd.f32 %v551_v39, %v550_v34  ;;  %v877_v43 = vpop.f32.mrf.mxu0  ;;  %v1074_v1 = vpop.f32.mrf.mxu1 }
  0xdd   : > { %521 = vst.msk [vmem:[%s1016_s24 + $0x38] sm:$0xff] %vm513_vm2, %v877_v43  ;;  %v654_v52 = vsel %vm513_vm2, %v619_v40, 0.0  ;;  %v622_v60 = vmul.f32 %v877_v43, %v877_v43  ;;  %v559_v3 = vsel %vm513_vm2, %v877_v43, 0.0  ;;  %534 = vst.msk [vmem:[%s1016_s24 + $0xa0] sm:$0xff] %vm513_vm2, %v1074_v1 }
  0xde   : > { %v554_v47 = vadd.f32 %v553_v46, %v552_v42  ;;  %v653_v48 = vadd.f32 %v652_v45, %v651_v41  ;;  %v405_v49 = vpop.f32.mrf.mxu0  ;;  %v1083_v8 = vpop.f32.mrf.mxu1 }
  0xdf   : > { %519 = vst.msk [vmem:[%s1016_s24 + $0x28] sm:$0xff] %vm513_vm2, %v405_v49  ;;  %v555_v53 = vsel %vm513_vm2, %v405_v49, 0.0  ;;  %v620_v54 = vmul.f32 %v405_v49, %v405_v49  ;;  %v660_v9 = vsel %vm513_vm2, %v622_v60, 0.0  ;;  %537 = vst.msk [vmem:[%s1016_s24 + $0xb8] sm:$0xff] %vm513_vm2, %v1083_v8 }
  0xe0   : > { %v655_v55 = vadd.f32 %v654_v52, %v653_v48  ;;  %v556_v56 = vadd.f32 %v555_v53, %v554_v47  ;;  %v880_v57 = vpop.f32.mrf.mxu0  ;;  %v1092_v14 = vpop.f32.mrf.mxu1 }
  0xe1   : > { %v656_v61 = vsel %vm513_vm2, %v620_v54, 0.0  ;;  %524 = vst.msk [vmem:[%s1016_s24 + $0x50] sm:$0xff] %vm513_vm2, %v880_v57  ;;  %v625_v15 = vmul.f32 %v880_v57, %v880_v57  ;;  %535 = vst.msk [vmem:[%s1016_s24 + $0xa8] sm:$0xff] %vm513_vm2, %v1092_v14  ;;  %v565_v23 = vsel %vm513_vm2, %v880_v57, 0.0 }
  0xe2   : > { %v558_v62 = vadd.f32 %v557_v59, %v556_v56  ;;  %v657_v63 = vadd.f32 %v656_v61, %v655_v55  ;;  %v418_v0 = vpop.f32.mrf.mxu0  ;;  %v1101_v22 = vpop.f32.mrf.mxu1 }
  0xe3   : > { %522 = vst.msk [vmem:[%s1016_s24 + $0x40] sm:$0xff] %vm513_vm2, %v418_v0  ;;  %v623_v4 = vmul.f32 %v418_v0, %v418_v0  ;;  %v561_v10 = vsel %vm513_vm2, %v418_v0, 0.0  ;;  %540 = vst.msk [vmem:[%s1016_s24 + $0xd0] sm:$0xff] %vm513_vm2, %v1101_v22  ;;  %v666_v31 = vsel %vm513_vm2, %v625_v15, 0.0 }
  0xe4   : > { %v659_v5 = vadd.f32 %v658_v2, %v657_v63  ;;  %v560_v6 = vadd.f32 %v559_v3, %v558_v62  ;;  %v881_v7 = vpop.f32.mrf.mxu0  ;;  %v1110_v30 = vpop.f32.mrf.mxu1  ;;  %v631_v63 = vmul.f32 %v1038_v37, %v1038_v37 }
  0xe5   : > { %525 = vst.msk [vmem:[%s1016_s24 + $0x58] sm:$0xff] %vm513_vm2, %v881_v7  ;;  %v662_v16 = vsel %vm513_vm2, %v623_v4, 0.0  ;;  %v626_v24 = vmul.f32 %v881_v7, %v881_v7  ;;  %v567_v32 = vsel %vm513_vm2, %v881_v7, 0.0  ;;  %538 = vst.msk [vmem:[%s1016_s24 + $0xc0] sm:$0xff] %vm513_vm2, %v1110_v30 }
  0xe6   : > { %v562_v11 = vadd.f32 %v561_v10, %v560_v6  ;;  %v661_v12 = vadd.f32 %v660_v9, %v659_v5  ;;  %v421_v13 = vpop.f32.mrf.mxu0  ;;  %v1119_v38 = vpop.f32.mrf.mxu1  ;;  %v577_v5 = vsel %vm513_vm2, %v1038_v37, 0.0  ;;  %v632_v6 = vmul.f32 %v1056_v50, %v1056_v50 }
  0xe7   : > { %523 = vst.msk [vmem:[%s1016_s24 + $0x48] sm:$0xff] %vm513_vm2, %v421_v13  ;;  %v563_v17 = vsel %vm513_vm2, %v421_v13, 0.0  ;;  %v624_v18 = vmul.f32 %v421_v13, %v421_v13  ;;  %v668_v39 = vsel %vm513_vm2, %v626_v24, 0.0  ;;  %541 = vst.msk [vmem:[%s1016_s24 + $0xd8] sm:$0xff] %vm513_vm2, %v1119_v38  ;;  %v579_v13 = vsel %vm513_vm2, %v1056_v50, 0.0 }
  0xe8   : > { %v663_v19 = vadd.f32 %v662_v16, %v661_v12  ;;  %v564_v20 = vadd.f32 %v563_v17, %v562_v11  ;;  %v884_v21 = vpop.f32.mrf.mxu0  ;;  %v1128_v45 = vpop.f32.mrf.mxu1  ;;  %v633_v11 = vmul.f32 %v1028_v29, %v1028_v29  ;;  %v678_v12 = vsel %vm513_vm2, %v631_v63, 0.0 }
  0xe9   : > { %v664_v25 = vsel %vm513_vm2, %v624_v18, 0.0  ;;  %528 = vst.msk [vmem:[%s1016_s24 + $0x70] sm:$0xff] %vm513_vm2, %v884_v21  ;;  %v629_v46 = vmul.f32 %v884_v21, %v884_v21  ;;  %539 = vst.msk [vmem:[%s1016_s24 + $0xc8] sm:$0xff] %vm513_vm2, %v1128_v45  ;;  %v573_v54 = vsel %vm513_vm2, %v884_v21, 0.0  ;;  %v581_v16 = vsel %vm513_vm2, %v1028_v29, 0.0 }
  0xea   : > { %v566_v26 = vadd.f32 %v565_v23, %v564_v20  ;;  %v665_v27 = vadd.f32 %v664_v25, %v663_v19  ;;  %v434_v28 = vpop.f32.mrf.mxu0  ;;  %v1137_v53 = vpop.f32.mrf.mxu1  ;;  %v634_v17 = vmul.f32 %v1047_v44, %v1047_v44  ;;  %v680_v18 = vsel %vm513_vm2, %v632_v6, 0.0 }
  0xeb   : > { %526 = vst.msk [vmem:[%s1016_s24 + $0x60] sm:$0xff] %vm513_vm2, %v434_v28  ;;  %v627_v33 = vmul.f32 %v434_v28, %v434_v28  ;;  %v569_v40 = vsel %vm513_vm2, %v434_v28, 0.0  ;;  %544 = vst.msk [vmem:[%s1016_s24 + $0xf0] sm:$0xff] %vm513_vm2, %v1137_v53  ;;  %v674_v61 = vsel %vm513_vm2, %v629_v46, 0.0  ;;  %v682_v21 = vsel %vm513_vm2, %v633_v11, 0.0 }
  0xec   : > { %v667_v34 = vadd.f32 %v666_v31, %v665_v27  ;;  %v568_v35 = vadd.f32 %v567_v32, %v566_v26  ;;  %v885_v36 = vpop.f32.mrf.mxu0  ;;  %v1144_v60 = vpop.f32.mrf.mxu1  ;;  %v583_v50 = vsel %vm513_vm2, %v1047_v44, 0.0  ;;  %v635_v23 = vmul.f32 %v1074_v1, %v1074_v1 }
  0xed   : > { %529 = vst.msk [vmem:[%s1016_s24 + $0x78] sm:$0xff] %vm513_vm2, %v885_v36  ;;  %v670_v47 = vsel %vm513_vm2, %v627_v33, 0.0  ;;  %v630_v55 = vmul.f32 %v885_v36, %v885_v36  ;;  %v575_v62 = vsel %vm513_vm2, %v885_v36, 0.0  ;;  %542 = vst.msk [vmem:[%s1016_s24 + $0xe0] sm:$0xff] %vm513_vm2, %v1144_v60  ;;  %v684_v26 = vsel %vm513_vm2, %v634_v17, 0.0 }
  0xee   : > { %v570_v41 = vadd.f32 %v569_v40, %v568_v35  ;;  %v669_v42 = vadd.f32 %v668_v39, %v667_v34  ;;  %v437_v43 = vpop.f32.mrf.mxu0  ;;  %v1153_v3 = vpop.f32.mrf.mxu1  ;;  %v585_v29 = vsel %vm513_vm2, %v1074_v1, 0.0  ;;  %v636_v27 = vmul.f32 %v1092_v14, %v1092_v14 }
  0xef   : > { %527 = vst.msk [vmem:[%s1016_s24 + $0x68] sm:$0xff] %vm513_vm2, %v437_v43  ;;  %v571_v48 = vsel %vm513_vm2, %v437_v43, 0.0  ;;  %v628_v49 = vmul.f32 %v437_v43, %v437_v43  ;;  %v676_v4 = vsel %vm513_vm2, %v630_v55, 0.0  ;;  %545 = vst.msk [vmem:[%s1016_s24 + $0xf8] sm:$0xff] %vm513_vm2, %v1153_v3  ;;  %v637_v32 = vmul.f32 %v1065_v58, %v1065_v58 }
  0xf0   : > { %v671_v51 = vadd.f32 %v670_v47, %v669_v42  ;;  %v572_v52 = vadd.f32 %v571_v48, %v570_v41  ;;  %v1163_v10 = vpop.f32.mrf.mxu1  ;;  %v686_v44 = vsel %vm513_vm2, %v635_v23, 0.0  ;;  %v587_v33 = vsel %vm513_vm2, %v1092_v14, 0.0 }
  0xf1   : > { %v672_v56 = vsel %vm513_vm2, %v628_v49, 0.0  ;;  %543 = vst.msk [vmem:[%s1016_s24 + $0xe8] sm:$0xff] %vm513_vm2, %v1163_v10  ;;  %v589_v36 = vsel %vm513_vm2, %v1065_v58, 0.0  ;;  %v638_v1 = vmul.f32 %v1083_v8, %v1083_v8  ;;  %v688_v39 = vsel %vm513_vm2, %v636_v27, 0.0 }
  0xf2   : > { %v574_v57 = vadd.f32 %v573_v54, %v572_v52  ;;  %v673_v59 = vadd.f32 %v672_v56, %v671_v51  ;;  %v690_v42 = vsel %vm513_vm2, %v637_v32, 0.0  ;;  %v591_v43 = vsel %vm513_vm2, %v1083_v8, 0.0 }
  0xf3   : > { %v639_v14 = vmul.f32 %v1110_v30, %v1110_v30  ;;  %v692_v48 = vsel %vm513_vm2, %v638_v1, 0.0  ;;  %v593_v58 = vsel %vm513_vm2, %v1110_v30, 0.0  ;;  %v640_v49 = vmul.f32 %v1128_v45, %v1128_v45 }
  0xf4   : > { %v576_v0 = vadd.f32 %v575_v62, %v574_v57  ;;  %v675_v2 = vadd.f32 %v674_v61, %v673_v59  ;;  %v641_v54 = vmul.f32 %v1101_v22, %v1101_v22  ;;  %v595_v55 = vsel %vm513_vm2, %v1128_v45, 0.0 }
  0xf5   : > { %v694_v8 = vsel %vm513_vm2, %v639_v14, 0.0  ;;  %v597_v59 = vsel %vm513_vm2, %v1101_v22, 0.0  ;;  %v642_v30 = vmul.f32 %v1119_v38, %v1119_v38  ;;  %v696_v61 = vsel %vm513_vm2, %v640_v49, 0.0 }
  0xf6   : > { %v677_v7 = vadd.f32 %v676_v4, %v675_v2  ;;  %v578_v9 = vadd.f32 %v577_v5, %v576_v0  ;;  %v698_v0 = vsel %vm513_vm2, %v641_v54, 0.0  ;;  %v599_v2 = vsel %vm513_vm2, %v1119_v38, 0.0 }
  0xf7   : > { %v643_v45 = vmul.f32 %v1144_v60, %v1144_v60  ;;  %v700_v6 = vsel %vm513_vm2, %v642_v30, 0.0  ;;  %v601_v22 = vsel %vm513_vm2, %v1144_v60, 0.0  ;;  %v646_v60 = vmul.f32 %v1153_v3, %v1153_v3 }
  0xf8   : > { %v580_v37 = vadd.f32 %v579_v13, %v578_v9  ;;  %v679_v15 = vadd.f32 %v678_v12, %v677_v7  ;;  %v644_v7 = vmul.f32 %v1163_v10, %v1163_v10  ;;  %v645_v12 = vmul.f32 %v1137_v53, %v1137_v53 }
  0xf9   : > { %v702_v38 = vsel %vm513_vm2, %v643_v45, 0.0  ;;  %v603_v13 = vsel %vm513_vm2, %v1163_v10, 0.0  ;;  %v708_v23 = vsel %vm513_vm2, %v646_v60, 0.0 }
  0xfa   : > { %v582_v19 = vadd.f32 %v581_v16, %v580_v37  ;;  %v681_v20 = vadd.f32 %v680_v18, %v679_v15  ;;  %v605_v16 = vsel %vm513_vm2, %v1137_v53, 0.0  ;;  %v704_v17 = vsel %vm513_vm2, %v644_v7, 0.0 }
  0xfc   : > { %v683_v24 = vadd.f32 %v682_v21, %v681_v20  ;;  %v584_v25 = vadd.f32 %v583_v50, %v582_v19  ;;  %v706_v20 = vsel %vm513_vm2, %v645_v12, 0.0  ;;  %v607_v21 = vsel %vm513_vm2, %v1153_v3, 0.0 }
  0xfe   : > { %v586_v28 = vadd.f32 %v585_v29, %v584_v25  ;;  %v685_v31 = vadd.f32 %v684_v26, %v683_v24 }
 0x100   : > { %v687_v34 = vadd.f32 %v686_v44, %v685_v31  ;;  %v588_v35 = vadd.f32 %v587_v33, %v586_v28 }
 0x102   : > { %v590_v40 = vadd.f32 %v589_v36, %v588_v35  ;;  %v689_v41 = vadd.f32 %v688_v39, %v687_v34 }
 0x104   : > { %v691_v46 = vadd.f32 %v690_v42, %v689_v41  ;;  %v592_v47 = vadd.f32 %v591_v43, %v590_v40 }
 0x106   : > { %v594_v51 = vadd.f32 %v593_v58, %v592_v47  ;;  %v693_v52 = vadd.f32 %v692_v48, %v691_v46 }
 0x108   : > { %v695_v56 = vadd.f32 %v694_v8, %v693_v52  ;;  %v596_v57 = vadd.f32 %v595_v55, %v594_v51 }
 0x10a   : > { %v598_v62 = vadd.f32 %v597_v59, %v596_v57  ;;  %v697_v63 = vadd.f32 %v696_v61, %v695_v56 }
 0x10c   : > { %v699_v4 = vadd.f32 %v698_v0, %v697_v63  ;;  %v600_v5 = vadd.f32 %v599_v2, %v598_v62 }
 0x10e   : > { %v602_v9 = vadd.f32 %v601_v22, %v600_v5  ;;  %v701_v11 = vadd.f32 %v700_v6, %v699_v4 }
 0x110   : > { %v703_v37 = vadd.f32 %v702_v38, %v701_v11  ;;  %v604_v15 = vadd.f32 %v603_v13, %v602_v9 }
 0x112   : > { %v606_v18 = vadd.f32 %v605_v16, %v604_v15  ;;  %v705_v19 = vadd.f32 %v704_v17, %v703_v37 }
 0x114   : > { %v608_v50 = vadd.f32 %v607_v21, %v606_v18  ;;  %v707_v10 = vadd.f32 %v706_v20, %v705_v19 }
 0x116   : > { %v609_v24 = vrot.slane %v608_v50, 4  ;;  %v709_v25 = vadd.f32 %v708_v23, %v707_v10 }
 0x118   : > { %v610_v53 = vadd.f32 %v609_v24, %v608_v50  ;;  %v710_v26 = vrot.slane %v709_v25, 4 }
 0x11a   : > { %v611_v29 = vrot.slane %v610_v53, 2  ;;  %v711_v27 = vadd.f32 %v710_v26, %v709_v25 }
 0x11c   : > { %v612_v28 = vadd.f32 %v611_v29, %v610_v53  ;;  %v712_v31 = vrot.slane %v711_v27, 2 }
 0x11e   : > { %v613_v32 = vrot.slane %v612_v28, 1  ;;  %v713_v44 = vadd.f32 %v712_v31, %v711_v27 }
 0x120   : > { %v714_v33 = vrot.slane %v713_v44, 1  ;;  %v614_v3 = vadd.f32 %v613_v32, %v612_v28 }
 0x122   : > { %v715_v34 = vadd.f32 %v714_v33, %v713_v44 }
 0x124   : > { %v717_v35 = vsel %vm716_vm3, %v614_v3, %v715_v34 }
 0x125   : > { %719 = vst.msk [vmem:[%s184_s28] sm:$0x3] %vm718_vm4, %v717_v35 }
 0x126 PF: > { %s14_s12 = sadd.s32 1, %s936_s12  }
 0x127   : > { %p11_p5 = scmp.ge.s32.totalorder %s14_s12, 4  }
 0x129   :  { %13 = sbr.rel (!%p11_p5) target bundleno = 1 (0x1), region = 70 }

// kernel: basic_block_forward.8
= control target key start
LH: loop header
LB: loop body
LE: loop exit
PB: predicated region body
PF: predicated region fallthrough
CT: control target
= control target key end

     0   :  { %s2043_s12 = smov 0   ;;  %s2045_s13 = smov 0   ;;  %s2622_s0 = inlined_call_operand.vmem [shape: bf16[2,18,18,8], index: 0, kind: input, shape index: {}]   ;;  %s2623_s1 = inlined_call_operand.vmem [shape: bf16[72,8], index: 1, kind: input, shape index: {}]   ;;  %s2624_s2 = inlined_call_operand.vmem [shape: f32[2,16,16,8], index: 2, kind: output, shape index: {0}]   ;;  %s2625_s3 = inlined_call_operand.vmem [shape: f32[2,2,2,8], index: 3, kind: output, shape index: {1}]  }
   0x1   :  { %s2047_s14 = smov 0   ;;  %s2049_s15 = smov 0  }
   0x2   :  { %s2051_s16 = smov 0  }
   0x3 LB: > { %s23_s17 = sadd.s32 1, %s2005_s14  ;;  %s26_s18 = sadd.s32 1, %s2009_s15  ;;  %s2013_s16 = sphi %s2051_s16, %s14_s16   ;;  %s2009_s15 = sphi %s2049_s15, %s2629_s15   ;;  %s2005_s14 = sphi %s2047_s14, %s2628_s14   ;;  %s2001_s13 = sphi %s2045_s13, %s2627_s13   ;;  %s1997_s12 = sphi %s2043_s12, %s2626_s12  }
   0x4   : > { %p24_p0 = scmp.ge.s32.totalorder %s23_s17, 2  ;;  %p1631_p1 = scmp.ge.s32.totalorder %s2013_s16, 1 }
   0x5   : > { %p156_p2 = scmp.lt.s32.totalorder %s2013_s16, 5 }
   0x6   : > { %s2631_s17 = smov (%p24_p0, %s23_s17), 0  ;;  %s2633_s18 = smov (!%p24_p0, %s26_s18), %s2009_s15 }
   0x7   : > { %p157_p3 = pnand %p1631_p1, %p156_p2  ;;  %p28_p4 = scmp.ge.s32.totalorder %s2633_s18, 2 }
   0x8   : > { %p193_p5 = scmp.lt.s32.totalorder (!%p157_p3), %s2001_s13, 1  ;;  %s1797_s19 = smul.u32 (!%p157_p3), 96, %s1997_s12 }
   0x9   : > { %s2635_s18 = smov (%p28_p4, %s2633_s18), 0  ;;  %160 = sbr.rel (%p157_p3) target bundleno = 489 (0x1e9), region = 28 }
   0xa   : > { %s2015_s25 = smov (!%p157_p3), 24   ;;  %s2016_s26 = smov (!%p157_p3), 40  }
   0xb   : > { %s2017_s27 = smov (!%p157_p3), 16   ;;  %s2018_s28 = smov (!%p157_p3), 8  }
   0xc   : > { %s2019_s29 = smov (!%p157_p3), 32   ;;  %s2020_s30 = smov (!%p157_p3), 48  }
   0xd   : > { %s2021_s4 = smov (!%p157_p3), 56   ;;  %s2022_s5 = smov (!%p157_p3), 64  }
   0xe   : > { %s2637_s13 = smov (!%p193_p5, %s2001_s13), 1  ;;  %vm527_vm0 = vcmask 1046528   ;;  %vm390_vm1 = vsmask.f32 7424  ;;  %vm1269_vm2 = vcmask 1043456   ;;  %vm1080_vm3 = vcmask 64512  }
   0xf   : > { %s1849_s20 = smul.u32 216, %s2637_s13  ;;  %vm1097_vm4 = vcmask 130048   ;;  %vm1114_vm5 = vcmask 195584   ;;  %vm1131_vm6 = vcmask 261120   ;;  %vm1148_vm7 = vcmask 326656   ;;  %p211_p7 = scmp.lt.s32.totalorder %s1997_s12, 1 }
  0x10   : > { %vm1165_vm8 = vcmask 392192   ;;  %vm1182_vm9 = vcmask 457728   ;;  %vm1199_vm10 = vcmask 523264   ;;  %vm1252_vm11 = vcmask 588800  }
  0x11   : > { %s197_s23 = scalar_lea.vmem %s2622_s0, %s1849_s20  ;;  %vm1476_vm12 = vcmask 1040384   ;;  %vm1478_vm13 = vcmask 58368  }
  0x12   : > { %s2082_s24 = scalar_lea.vmem %s197_s23, %s1797_s19  ;;  %s1633_s23 = sshll.u32 %s1997_s12, 3 }
  0x13   : > { %v1646_v0 = vld [vmem:[%s2082_s24 + $0x18] sm:$0xf]  ;;  %v1647_v1 = vld [vmem:[%s2082_s24 + $0x1c] sm:$0xf]  ;;  %v1644_v5 = vld [vmem:[%s2082_s24 + $0xc] sm:$0xf] }
  0x14   : > { %v1669_v2 = vld [vmem:[%s2082_s24 + $0x18] sm:$0xe]  ;;  %v2087_v3 = vcombine.low %v1646_v0, %v1647_v1  ;;  %v1645_v6 = vld [vmem:[%s2082_s24 + $0x10] sm:$0xf]  ;;  %v1668_v7 = vld [vmem:[%s2082_s24 + $0xc] sm:$0xe] }
  0x15   : > { %v1751_v4 = vcombine.low %v1669_v2, %v1647_v1  ;;  %v2092_v8 = vcombine.low %v1644_v5, %v1645_v6  ;;  %v1750_v9 = vcombine.low %v1668_v7, %v1645_v6  ;;  %v2095_v10 = vld [vmem:[%s2082_s24 + $0x14] ss:$0 sps:$4 sm:$0x11]   ;;  %v223_v12 = vld [vmem:[%s2082_s24 + $0x4] sm:$0xf]  ;;  %p201_p6 = scmp.lt.s32.totalorder %s1633_s23, 15 }
  0x16   : > { %610 = vrot.lane.b32.xlu1 %v2087_v3, %s2015_s25  ;;  %v663_v11 = vshll.u32 %v2087_v3, 16  ;;  %v785_v15 = vrot.slane %v2095_v10, 1  ;;  %v246_v16 = vld [vmem:[%s2082_s24] sm:$0xe]  ;;  %v661_v21 = vshrl.u32 %v2087_v3, 16  ;;  %v656_v59 = vshll.u32 %v2095_v10, 16 }
  0x17   : > { %608 = vrot.lane.b32.xlu0 %v2092_v8, %s2015_s25  ;;  %v651_v13 = vshll.u32 %v2092_v8, 16  ;;  %v784_v14 = vrot.slane %v1750_v9, 1  ;;  %v787_v17 = vrot.slane %v1751_v4, 1  ;;  %v1903_v18 = vld [vmem:[%s2082_s24 + $0x8] ss:$0 sps:$4 sm:$0x11]   ;;  %v1726_v19 = vcombine.low %v246_v16, %v223_v12 }
  0x18   : > { %v222_v20 = vld [vmem:[%s2082_s24] sm:$0xf]  ;;  %v224_v24 = vld [vmem:[%s2082_s24 + $0xc] sm:$0xf]  ;;  %v225_v25 = vld [vmem:[%s2082_s24 + $0x10] sm:$0xf] }
  0x19   : > { %v786_v22 = vsel %vm527_vm0, %v784_v14, %v785_v15  ;;  %v2110_v23 = vcombine.low %v222_v20, %v223_v12  ;;  %v528_v26 = vrot.slane %v1726_v19, 1  ;;  %v529_v27 = vrot.slane %v1903_v18, 1  ;;  %v247_v28 = vld [vmem:[%s2082_s24 + $0xc] sm:$0xe]  ;;  %v1680_v43 = vld [vmem:[%s2082_s24 + $0x24] sm:$0xf] }
  0x1a   : > { %v2115_v29 = vcombine.low %v224_v24, %v225_v25  ;;  %v399_v30 = vshll.u32 %v1903_v18, 16  ;;  %v1907_v31 = vld [vmem:[%s2082_s24 + $0x14] ss:$0 sps:$4 sm:$0x11]   ;;  %v1727_v32 = vcombine.low %v247_v28, %v225_v25  ;;  %v665_v35 = vrot.slane %v663_v11, 1  ;;  %s2639_s23 = smov (!%p201_p6, %s1633_s23), 15 }
  0x1b   : > { %808 = vrot.lane.b32.xlu0 %v786_v22, %s2016_s26  ;;  %v392_v33 = vshrl.u32 %v2110_v23, 16  ;;  %v394_v34 = vshll.u32 %v2110_v23, 16  ;;  %v530_v36 = vsel %vm527_vm0, %v528_v26, %v529_v27  ;;  %v1909_v38 = vld [vmem:[%s2082_s24 + $0x20] ss:$0 sps:$4 sm:$0x11]   ;;  %v532_v40 = vrot.slane %v1907_v31, 1 }
  0x1c   : > { %v401_v37 = vrot.slane %v399_v30, 1  ;;  %552 = vrot.lane.b32.xlu1 %v530_v36, %s2017_s27  ;;  %v531_v39 = vrot.slane %v1727_v32, 1  ;;  %v404_v42 = vshrl.u32 %v2115_v29, 16  ;;  %v788_v44 = vrot.slane %v1909_v38, 1  ;;  %v2128_v48 = vld [vmem:[%s2082_s24 + $0x28] sm:$0xf] }
  0x1d   : > { %v396_v41 = vrot.slane %v394_v34, 1  ;;  %v406_v45 = vshll.u32 %v2115_v29, 16  ;;  %v411_v46 = vshll.u32 %v1907_v31, 16  ;;  %v668_v47 = vshll.u32 %v1909_v38, 16  ;;  %v1678_v53 = vld [vmem:[%s2082_s24 + $0x18] sm:$0xf] }
  0x1e   : > { %v533_v49 = vsel %vm527_vm0, %v531_v39, %v532_v40  ;;  %v649_v51 = vshrl.u32 %v2092_v8, 16  ;;  %v653_v52 = vrot.slane %v651_v13, 1  ;;  %v1679_v56 = vld [vmem:[%s2082_s24 + $0x1c] sm:$0xf]  ;;  %v666_v58 = vor.u32 %v665_v35, %v661_v21  ;;  %v1702_v7 = vld [vmem:[%s2082_s24 + $0x18] sm:$0xe] }
  0x1f   : > { %v397_v50 = vor.u32 %v396_v41, %v392_v33  ;;  %v408_v54 = vrot.slane %v406_v45, 1  ;;  %v413_v55 = vrot.slane %v411_v46, 1  ;;  %v1759_v60 = vcombine.low %v1680_v43, %v2128_v48  ;;  %v2141_v1 = vld [vmem:[%s2082_s24 + $0x2c] ss:$0 sps:$4 sm:$0x11]   ;;  %s2641_s12 = smov (!%p211_p7, %s1997_s12), 1 }
  0x20   : > { %554 = vrot.lane.b32.xlu1 %v533_v49, %s2017_s27  ;;  %v789_v61 = vsel %vm527_vm0, %v787_v17, %v788_v44  ;;  %v670_v63 = vrot.slane %v668_v47, 1  ;;  %v1758_v0 = vcombine.low %v1678_v53, %v1679_v56  ;;  %v654_v2 = vor.u32 %v653_v52, %v649_v51  ;;  %v1915_v5 = vld [vmem:[%s2082_s24 + $0x20] ss:$0 sps:$4 sm:$0x11]   ;;  %v226_v10 = vld [vmem:[%s2082_s24 + $0x18] sm:$0xf] }
  0x21   : > { %v402_v57 = vsel %vm390_vm1, %v397_v50, %v401_v37  ;;  %v409_v62 = vor.u32 %v408_v54, %v404_v42  ;;  %v658_v3 = vrot.slane %v656_v59, 1  ;;  %v919_v4 = vshll.u32 %v1759_v60, 16  ;;  %v2150_v13 = vld [vmem:[%s2082_s24 + $0x1c] sm:$0xf]  ;;  %v228_v21 = vld [vmem:[%s2082_s24 + $0x24] sm:$0xf] }
  0x22   : > { %487 = vrot.lane.b32.xlu0 %v402_v57, %s2018_s28  ;;  %v907_v8 = vshll.u32 %v1758_v0, 16  ;;  %v917_v9 = vshrl.u32 %v1759_v60, 16  ;;  %v924_v12 = vshll.u32 %v2141_v1, 16  ;;  %v671_v14 = vsel %vm390_vm1, %v666_v58, %v670_v63  ;;  %v2158_v17 = vld [vmem:[%s2082_s24 + $0x20] ss:$0 sps:$4 sm:$0x11]  }
  0x23   : > { %v414_v6 = vsel %vm390_vm1, %v409_v62, %v413_v55  ;;  %v921_v11 = vrot.slane %v919_v4, 1  ;;  %v905_v15 = vshrl.u32 %v1758_v0, 16  ;;  %v2155_v16 = vcombine.low %v226_v10, %v2150_v13  ;;  %v229_v22 = vld [vmem:[%s2082_s24 + $0x28] sm:$0xf]  ;;  %v1703_v37 = vld [vmem:[%s2082_s24 + $0x24] sm:$0xe] }
  0x24   : > { %810 = vrot.lane.b32.xlu1 %v789_v61, %s2016_s26  ;;  %v659_v18 = vsel %vm390_vm1, %v654_v2, %v658_v3  ;;  %v909_v19 = vrot.slane %v907_v8, 1  ;;  %v912_v20 = vshll.u32 %v1915_v5, 16  ;;  %v1774_v24 = vcombine.low %v1702_v7, %v1679_v56  ;;  %v1919_v33 = vld [vmem:[%s2082_s24 + $0x2c] ss:$0 sps:$4 sm:$0x11]  }
  0x25   : > { %v418_v25 = vshll.u32 %v2155_v16, 16  ;;  %v922_v26 = vor.u32 %v921_v11, %v917_v9  ;;  %v926_v27 = vrot.slane %v924_v12, 1  ;;  %v423_v28 = vshll.u32 %v2158_v17, 16  ;;  %v249_v42 = vld [vmem:[%s2082_s24 + $0x24] sm:$0xe] }
  0x26   : > { %489 = vrot.lane.b32.xlu0 %v414_v6, %s2018_s28  ;;  %v2166_v30 = vcombine.low %v228_v21, %v229_v22  ;;  %v416_v31 = vshrl.u32 %v2155_v16, 16  ;;  %v910_v34 = vor.u32 %v909_v19, %v905_v15  ;;  %v914_v35 = vrot.slane %v912_v20, 1  ;;  %v248_v47 = vld [vmem:[%s2082_s24 + $0x18] sm:$0xe]  ;;  %v1650_v51 = vld [vmem:[%s2082_s24 + $0x30] sm:$0xf] }
  0x27   : > { %v420_v32 = vrot.slane %v418_v25, 1  ;;  %v927_v38 = vsel %vm390_vm1, %v922_v26, %v926_v27  ;;  %v425_v39 = vrot.slane %v423_v28, 1  ;;  %v1040_v40 = vrot.slane %v1774_v24, 1  ;;  %v1651_v52 = vld [vmem:[%s2082_s24 + $0x34] sm:$0xf] }
  0x28   : > { %746 = vrot.lane.b32.xlu1 %v671_v14, %s2019_s29  ;;  %v430_v36 = vshll.u32 %v2166_v30, 16  ;;  %v1041_v41 = vrot.slane %v1915_v5, 1  ;;  %v428_v44 = vshrl.u32 %v2166_v30, 16  ;;  %v435_v46 = vshll.u32 %v1919_v33, 16  ;;  %v1648_v53 = vld [vmem:[%s2082_s24 + $0x24] sm:$0xf] }
  0x29   : > { %v421_v43 = vor.u32 %v420_v32, %v416_v31  ;;  %v1775_v49 = vcombine.low %v1703_v37, %v2128_v48  ;;  %v915_v50 = vsel %vm390_vm1, %v910_v34, %v914_v35  ;;  %v1649_v54 = vld [vmem:[%s2082_s24 + $0x28] sm:$0xf]  ;;  %v1729_v56 = vcombine.low %v249_v42, %v229_v22  ;;  %v1927_v9 = vld [vmem:[%s2082_s24 + $0x2c] ss:$0 sps:$4 sm:$0x11]  }
  0x2a   : > { %744 = vrot.lane.b32.xlu0 %v659_v18, %s2019_s29  ;;  %v432_v45 = vrot.slane %v430_v36, 1  ;;  %v1042_v55 = vsel %vm527_vm0, %v1040_v40, %v1041_v41  ;;  %v437_v59 = vrot.slane %v435_v46, 1  ;;  %v1737_v48 = vcombine.low %v1650_v51, %v1651_v52  ;;  %v1671_v10 = vld [vmem:[%s2082_s24 + $0x30] sm:$0xe]  ;;  %v1670_v11 = vld [vmem:[%s2082_s24 + $0x24] sm:$0xe] }
  0x2b   : > { %v426_v57 = vsel %vm390_vm1, %v421_v43, %v425_v39  ;;  %v1044_v61 = vrot.slane %v2141_v1, 1  ;;  %v1728_v62 = vcombine.low %v248_v47, %v2150_v13  ;;  %v1736_v63 = vcombine.low %v1648_v53, %v1649_v54  ;;  %v1684_v19 = vld [vmem:[%s2082_s24 + $0x3c] sm:$0xf]  ;;  %v2208_v20 = vld [vmem:[%s2082_s24 + $0x40] sm:$0xf] }
  0x2c   : > { %866 = vrot.lane.b32.xlu1 %v1759_v60, %s2020_s30  ;;  %v433_v58 = vor.u32 %v432_v45, %v428_v44  ;;  %v1043_v60 = vrot.slane %v1775_v49, 1  ;;  %v537_v3 = vrot.slane %v1729_v56, 1  ;;  %v538_v4 = vrot.slane %v1919_v33, 1  ;;  %v1682_v24 = vld [vmem:[%s2082_s24 + $0x30] sm:$0xf] }
  0x2d   : > { %v687_v5 = vshll.u32 %v1737_v48, 16  ;;  %v534_v6 = vrot.slane %v1728_v62, 1  ;;  %v535_v7 = vrot.slane %v2158_v17, 1  ;;  %v675_v8 = vshll.u32 %v1736_v63, 16  ;;  %v1683_v25 = vld [vmem:[%s2082_s24 + $0x34] sm:$0xf] }
  0x2e   : > { %864 = vrot.lane.b32.xlu0 %v1758_v0, %s2020_s30  ;;  %v2193_v0 = vld [vmem:[%s2082_s24 + $0x38] ss:$0 sps:$4 sm:$0x11]   ;;  %v438_v2 = vsel %vm390_vm1, %v433_v58, %v437_v59  ;;  %v1045_v1 = vsel %vm527_vm0, %v1043_v60, %v1044_v61  ;;  %v685_v12 = vshrl.u32 %v1737_v48, 16  ;;  %v539_v14 = vsel %vm527_vm0, %v537_v3, %v538_v4  ;;  %v230_v36 = vld [vmem:[%s2082_s24 + $0x30] sm:$0xf] }
  0x2f   : > { %v692_v13 = vshll.u32 %v2193_v0, 16  ;;  %v689_v15 = vrot.slane %v687_v5, 1  ;;  %v673_v18 = vshrl.u32 %v1736_v63, 16  ;;  %v536_v17 = vsel %vm527_vm0, %v534_v6, %v535_v7  ;;  %v2218_v37 = vld [vmem:[%s2082_s24 + $0x34] sm:$0xf] }
  0x30   : > { %1002 = vrot.lane.b32.xlu1 %v927_v38, %s2021_s4  ;;  %v677_v21 = vrot.slane %v675_v8, 1  ;;  %v680_v22 = vshll.u32 %v1927_v9, 16  ;;  %v1753_v26 = vcombine.low %v1671_v10, %v1651_v52  ;;  %v1752_v27 = vcombine.low %v1670_v11, %v1649_v54  ;;  %v2223_v43 = vld [vmem:[%s2082_s24 + $0x44] ss:$0 sps:$4 sm:$0x11]  }
  0x31   : > { %v1761_v28 = vcombine.low %v1684_v19, %v2208_v20  ;;  %v690_v31 = vor.u32 %v689_v15, %v685_v12  ;;  %v694_v32 = vrot.slane %v692_v13, 1  ;;  %v1760_v33 = vcombine.low %v1682_v24, %v1683_v25  ;;  %v1933_v46 = vld [vmem:[%s2082_s24 + $0x38] ss:$0 sps:$4 sm:$0x11]   ;;  %v233_v51 = vld [vmem:[%s2082_s24 + $0x40] sm:$0xf] }
  0x32   : > { %1000 = vrot.lane.b32.xlu0 %v915_v50, %s2021_s4  ;;  %v678_v34 = vor.u32 %v677_v21, %v673_v18  ;;  %v682_v35 = vrot.slane %v680_v22, 1  ;;  %v793_v38 = vrot.slane %v1753_v26, 1  ;;  %v794_v39 = vrot.slane %v2193_v0, 1  ;;  %v232_v50 = vld [vmem:[%s2082_s24 + $0x3c] sm:$0xf] }
  0x33   : > { %v790_v40 = vrot.slane %v1752_v27, 1  ;;  %v791_v41 = vrot.slane %v1927_v9, 1  ;;  %v943_v42 = vshll.u32 %v1761_v28, 16  ;;  %v695_v44 = vsel %vm390_vm1, %v690_v31, %v694_v32  ;;  %v1937_v6 = vld [vmem:[%s2082_s24 + $0x44] ss:$0 sps:$4 sm:$0x11]  }
  0x34   : > { %491 = vrot.lane.b32.xlu1 %v426_v57, %s2018_s28  ;;  %v931_v45 = vshll.u32 %v1760_v33, 16  ;;  %v2229_v47 = vcombine.low %v230_v36, %v2218_v37  ;;  %v683_v49 = vsel %vm390_vm1, %v678_v34, %v682_v35  ;;  %v941_v52 = vshrl.u32 %v1761_v28, 16  ;;  %v1704_v57 = vld [vmem:[%s2082_s24 + $0x30] sm:$0xe]  ;;  %v251_v21 = vld [vmem:[%s2082_s24 + $0x3c] sm:$0xe] }
  0x35   : > { %v945_v53 = vrot.slane %v943_v42, 1  ;;  %v948_v54 = vshll.u32 %v2223_v43, 16  ;;  %v795_v56 = vsel %vm527_vm0, %v793_v38, %v794_v39  ;;  %v2243_v59 = vcombine.low %v232_v50, %v233_v51  ;;  %v1655_v24 = vld [vmem:[%s2082_s24 + $0x4c] sm:$0xf]  ;;  %v1652_v26 = vld [vmem:[%s2082_s24 + $0x3c] sm:$0xf] }
  0x36   : > { %1064 = vrot.lane.b32.xlu0 %v1042_v55, %s2022_s5  ;;  %v2237_v55 = vld [vmem:[%s2082_s24 + $0x38] ss:$0 sps:$4 sm:$0x11]   ;;  %v442_v58 = vshll.u32 %v2229_v47, 16  ;;  %v929_v60 = vshrl.u32 %v1760_v33, 16  ;;  %v933_v61 = vrot.slane %v931_v45, 1  ;;  %v1776_v0 = vcombine.low %v1704_v57, %v1683_v25 }
  0x37   : > { %v936_v62 = vshll.u32 %v1933_v46, 16  ;;  %v950_v3 = vrot.slane %v948_v54, 1  ;;  %v447_v4 = vshll.u32 %v2237_v55, 16  ;;  %v440_v5 = vshrl.u32 %v2229_v47, 16  ;;  %v250_v25 = vld [vmem:[%s2082_s24 + $0x30] sm:$0xe] }
  0x38   : > { %493 = vrot.lane.b32.xlu1 %v438_v2, %s2018_s28  ;;  %v946_v2 = vor.u32 %v945_v53, %v941_v52  ;;  %v454_v7 = vshll.u32 %v2243_v59, 16  ;;  %v934_v8 = vor.u32 %v933_v61, %v929_v60  ;;  %v1046_v13 = vrot.slane %v1776_v0, 1  ;;  %v2265_v27 = vld [vmem:[%s2082_s24 + $0x40] sm:$0xf]  ;;  %v1673_v52 = vld [vmem:[%s2082_s24 + $0x48] sm:$0xe] }
  0x39   : > { %v938_v9 = vrot.slane %v936_v62, 1  ;;  %v449_v12 = vrot.slane %v447_v4, 1  ;;  %v452_v18 = vshrl.u32 %v2243_v59, 16  ;;  %v1731_v31 = vcombine.low %v251_v21, %v233_v51  ;;  %v2283_v51 = vld [vmem:[%s2082_s24 + $0x44] ss:$0 sps:$4 sm:$0x11]  }
  0x3a   : > { %1066 = vrot.lane.b32.xlu0 %v1045_v1, %s2022_s5  ;;  %v444_v1 = vrot.slane %v442_v58, 1  ;;  %v951_v11 = vsel %vm390_vm1, %v946_v2, %v950_v3  ;;  %v456_v19 = vrot.slane %v454_v7, 1  ;;  %v1050_v38 = vrot.slane %v2223_v43, 1  ;;  %v1688_v58 = vld [vmem:[%s2082_s24 + $0x54] sm:$0xf] }
  0x3b   : > { %v939_v22 = vsel %vm390_vm1, %v934_v8, %v938_v9  ;;  %v1730_v39 = vcombine.low %v250_v25, %v2218_v37  ;;  %v543_v42 = vrot.slane %v1731_v31, 1  ;;  %v541_v37 = vrot.slane %v2237_v55, 1  ;;  %v1672_v60 = vld [vmem:[%s2082_s24 + $0x3c] sm:$0xe]  ;;  %v1686_v0 = vld [vmem:[%s2082_s24 + $0x48] sm:$0xf] }
  0x3c   : > { %558 = vrot.lane.b32.xlu1 %v539_v14, %s2017_s27  ;;  %v1047_v14 = vrot.slane %v1933_v46, 1  ;;  %v445_v15 = vor.u32 %v444_v1, %v440_v5  ;;  %v2278_v46 = vld [vmem:[%s2082_s24 + $0x50] ss:$0 sps:$4 sm:$0x11]   ;;  %v2299_v2 = vld [vmem:[%s2082_s24 + $0x4c] sm:$0xf]  ;;  %v1755_v3 = vcombine.low %v1673_v52, %v1655_v24  ;;  %v1754_v5 = vcombine.low %v1672_v60, %v2265_v27 }
  0x3d   : > { %v716_v57 = vshll.u32 %v2278_v46, 16  ;;  %v1970_v7 = vld [vmem:[%s2623_s1 + $0x20] ss:$0 sps:$4 sm:$0xff]   ;;  %v800_v21 = vrot.slane %v2278_v46, 1  ;;  %v1972_v25 = vld [vmem:[%s2623_s1 + $0x10] sm:$0xff]   ;;  %v1973_v46 = vld [vmem:[%s2623_s1 + $0x8] sm:$0xff]  }
  0x3e   : > { %556 = vrot.lane.b32.xlu0 %v536_v17, %s2017_s27  ;;  %v459_v17 = vshll.u32 %v1937_v6, 16  ;;  %v450_v32 = vsel %vm390_vm1, %v445_v15, %v449_v12  ;;  %v1048_v36 = vsel %vm527_vm0, %v1046_v13, %v1047_v14  ;;  %v2315_v12 = vld [vmem:[%s2082_s24 + $0x4c] sm:$0xf]  ;;  %v1971_v13 = vld [vmem:[%s2623_s1 + $0x18] sm:$0xff]   ;;  %1847 = vmatprep.subr.msk.bf16.mxu0 %vm1269_vm2, %v1970_v7  ;;  %v799_v14 = vrot.slane %v1755_v3, 1  ;;  %v1974_v60 = vld [vmem:[%s2623_s1] sm:$0xff]  }
  0x3f   : > { %1848 = vmatprep.subr.msk.bf16.mxu1 %vm1269_vm2, %v1970_v7  ;;  %v236_v31 = vld [vmem:[%s2082_s24 + $0x54] sm:$0xf] }
  0x40   : > { %614 = vrot.lane.b32.xlu1 %v1737_v48, %s2015_s25  ;;  %v792_v48 = vsel %vm527_vm0, %v790_v40, %v791_v41  ;;  %v461_v34 = vrot.slane %v459_v17, 1  ;;  %v1738_v40 = vcombine.low %v1652_v26, %v2265_v27  ;;  %v797_v27 = vrot.slane %v2283_v51, 1 }
  0x42   : > { %612 = vrot.lane.b32.xlu0 %v1736_v63, %s2015_s25  ;;  %v1705_v63 = vld [vmem:[%s2082_s24 + $0x3c] sm:$0xe]  ;;  %v699_v50 = vshll.u32 %v1738_v40, 16  ;;  %v697_v61 = vshrl.u32 %v1738_v40, 16 }
  0x43   : > { %v1777_v10 = vcombine.low %v1705_v63, %v2208_v20  ;;  %v1654_v20 = vld [vmem:[%s2082_s24 + $0x48] sm:$0xf]  ;;  %v704_v63 = vshll.u32 %v2283_v51, 16 }
  0x44   : > { %750 = vrot.lane.b32.xlu1 %v695_v44, %s2019_s29  ;;  %v1739_v35 = vcombine.low %v1654_v20, %v1655_v24  ;;  %v544_v44 = vrot.slane %v1937_v6, 1  ;;  %v701_v62 = vrot.slane %v699_v50, 1  ;;  %v718_v6 = vrot.slane %v716_v57, 1  ;;  %v2332_v20 = vld [vmem:[%s2082_s24 + $0x50] ss:$0 sps:$4 sm:$0x11]  }
  0x45   : > { %v706_v9 = vrot.slane %v704_v63, 1 }
  0x46   : > { %748 = vrot.lane.b32.xlu0 %v683_v49, %s2019_s29  ;;  %v711_v45 = vshll.u32 %v1739_v35, 16  ;;  %v540_v49 = vrot.slane %v1730_v39, 1  ;;  %v709_v53 = vshrl.u32 %v1739_v35, 16  ;;  %v545_v54 = vsel %vm527_vm0, %v543_v42, %v544_v44 }
  0x47   : > { %v702_v8 = vor.u32 %v701_v62, %v697_v61 }
  0x48   : > { %814 = vrot.lane.b32.xlu1 %v795_v56, %s2016_s26  ;;  %v713_v56 = vrot.slane %v711_v45, 1  ;;  %v542_v55 = vsel %vm527_vm0, %v540_v49, %v541_v37  ;;  %v960_v45 = vshll.u32 %v2332_v20, 16  ;;  %v1707_v49 = vld [vmem:[%s2082_s24 + $0x54] sm:$0xe] }
  0x49   : > { %v707_v26 = vsel %vm390_vm1, %v702_v8, %v706_v9  ;;  %v2389_v8 = vld [vmem:[%s2082_s24 + $0x64] sm:$0xf]  ;;  %v252_v9 = vld [vmem:[%s2082_s24 + $0x48] sm:$0xe] }
  0x4a   : > { %812 = vrot.lane.b32.xlu0 %v792_v48, %s2016_s26  ;;  %v2292_v48 = vld [vmem:[%s2082_s24 + $0x58] sm:$0xf]  ;;  %v714_v1 = vor.u32 %v713_v56, %v709_v53 }
  0x4b   : > { %v2303_v4 = vcombine.low %v1688_v58, %v2292_v48  ;;  %v1779_v61 = vcombine.low %v1707_v49, %v2292_v48 }
  0x4c   : > { %870 = vrot.lane.b32.xlu1 %v1761_v28, %s2020_s30  ;;  %v1049_v28 = vrot.slane %v1777_v10, 1  ;;  %v2311_v10 = vcombine.low %v1686_v0, %v2299_v2  ;;  %v719_v17 = vsel %vm390_vm1, %v714_v1, %v718_v6  ;;  %v253_v1 = vld [vmem:[%s2082_s24 + $0x54] sm:$0xe] }
  0x4d   : > { %v967_v15 = vshll.u32 %v2303_v4, 16 }
  0x4e   : > { %868 = vrot.lane.b32.xlu0 %v1760_v33, %s2020_s30  ;;  %v457_v33 = vor.u32 %v456_v19, %v452_v18  ;;  %v1051_v43 = vsel %vm527_vm0, %v1049_v28, %v1050_v38  ;;  %v2325_v18 = vld [vmem:[%s2082_s24 + $0x5c] ss:$0 sps:$4 sm:$0x11]   ;;  %v1271_v19 = vsel %vm1269_vm2, %v1970_v7, 0  ;;  %v955_v28 = vshll.u32 %v2311_v10, 16 }
  0x4f   : > { %1812 = vmatpush3.bf16.msra.mxu0 %v1271_v19  ;;  %1842 = vmatpush3.bf16.msra.mxu1 %v1271_v19  ;;  %v801_v38 = vsel %vm527_vm0, %v799_v14, %v800_v21  ;;  %v953_v42 = vshrl.u32 %v2311_v10, 16  ;;  %v1658_v7 = vld [vmem:[%s2082_s24 + $0x60] sm:$0xf] }
  0x50   : > { %1006 = vrot.lane.b32.xlu1 %v951_v11, %s2021_s4  ;;  %v462_v41 = vsel %vm390_vm1, %v457_v33, %v461_v34  ;;  %v234_v11 = vld [vmem:[%s2082_s24 + $0x48] sm:$0xf]  ;;  %1813 = vmatprep.subr.bf16.mxu0 %v1971_v13  ;;  %v965_v33 = vshrl.u32 %v2303_v4, 16  ;;  %v969_v34 = vrot.slane %v967_v15, 1  ;;  %v957_v44 = vrot.slane %v955_v28, 1 }
  0x51   : > { %v2335_v24 = vcombine.low %v234_v11, %v2315_v12  ;;  %1838 = vmatprep.subr.bf16.mxu1 %v1971_v13  ;;  %v2394_v11 = vld [vmem:[%s2082_s24 + $0x58] sm:$0xf]  ;;  %v1741_v21 = vcombine.low %v1658_v7, %v2389_v8  ;;  %v1969_v7 = vld [vmem:[%s2082_s24 + $0x68] ss:$0 sps:$4 sm:$0x11]  }
  0x52   : > { %1004 = vrot.lane.b32.xlu0 %v939_v22, %s2021_s4  ;;  %v796_v22 = vrot.slane %v1754_v5, 1  ;;  %v970_v37 = vor.u32 %v969_v34, %v965_v33  ;;  %v958_v58 = vor.u32 %v957_v44, %v953_v42  ;;  %v1962_v33 = vld [vmem:[%s2082_s24 + $0x68] ss:$0 sps:$4 sm:$0x11]  }
  0x53   : > { %v466_v39 = vshll.u32 %v2335_v24, 16  ;;  %1814 = vmatpush3.bf16.msra.mxu0 %v1971_v13  ;;  %1843 = vmatpush3.bf16.msra.mxu1 %v1971_v13  ;;  %v464_v52 = vshrl.u32 %v2335_v24, 16  ;;  %v1055_v13 = vrot.slane %v1779_v61, 1  ;;  %v733_v42 = vshrl.u32 %v1741_v21, 16 }
  0x54   : > { %495 = vrot.lane.b32.xlu1 %v450_v32, %s2018_s28  ;;  %v2345_v32 = vld [vmem:[%s2082_s24 + $0x58] sm:$0xf]  ;;  %1815 = vmatprep.subr.bf16.mxu0 %v1972_v25 }
  0x55   : > { %1839 = vmatprep.subr.bf16.mxu1 %v1972_v25  ;;  %v468_v53 = vrot.slane %v466_v39, 1  ;;  %v1733_v14 = vcombine.low %v253_v1, %v2345_v32 }
  0x56   : > { %1068 = vrot.lane.b32.xlu0 %v1048_v36, %s2022_s5  ;;  %v2351_v36 = vld [vmem:[%s2082_s24 + $0x50] ss:$0 sps:$4 sm:$0x11]  }
  0x57   : > { %v471_v51 = vshll.u32 %v2351_v36, 16  ;;  %1816 = vmatpush3.bf16.msra.mxu0 %v1972_v25  ;;  %1844 = vmatpush3.bf16.msra.mxu1 %v1972_v25  ;;  %v469_v0 = vor.u32 %v468_v53, %v464_v52  ;;  %v1732_v25 = vcombine.low %v252_v9, %v2315_v12  ;;  %v547_v12 = vrot.slane %v2351_v36, 1  ;;  %v1690_v52 = vld [vmem:[%s2082_s24 + $0x60] sm:$0xf]  ;;  %v1691_v53 = vld [vmem:[%s2082_s24 + $0x64] sm:$0xf] }
  0x58   : > { %497 = vrot.lane.b32.xlu1 %v462_v41, %s2018_s28  ;;  %v798_v41 = vsel %vm527_vm0, %v796_v22, %v797_v27  ;;  %1817 = vmatprep.subr.bf16.mxu0 %v1973_v46  ;;  %v549_v27 = vrot.slane %v1733_v14, 1  ;;  %v1709_v14 = vld [vmem:[%s2082_s24 + $0x6c] sm:$0xe] }
  0x59   : > { %1840 = vmatprep.subr.bf16.mxu1 %v1973_v46  ;;  %v473_v63 = vrot.slane %v471_v51, 1  ;;  %v1674_v51 = vld [vmem:[%s2082_s24 + $0x54] sm:$0xe] }
  0x5a   : > { %1070 = vrot.lane.b32.xlu0 %v1051_v43, %s2022_s5  ;;  %v1706_v43 = vld [vmem:[%s2082_s24 + $0x48] sm:$0xe] }
  0x5b   : > { %v1778_v57 = vcombine.low %v1706_v43, %v2299_v2  ;;  %1818 = vmatpush3.bf16.msra.mxu0 %v1973_v46  ;;  %1845 = vmatpush3.bf16.msra.mxu1 %v1973_v46  ;;  %v474_v15 = vsel %vm390_vm1, %v469_v0, %v473_v63 }
  0x5c   : > { %562 = vrot.lane.b32.xlu1 %v545_v54, %s2017_s27  ;;  %v1955_v54 = vld [vmem:[%s2082_s24 + $0x5c] ss:$0 sps:$4 sm:$0x11]   ;;  %1819 = vmatprep.subr.bf16.mxu0 %v1974_v60 }
  0x5d   : > { %v483_v5 = vshll.u32 %v1955_v54, 16  ;;  %v1052_v6 = vrot.slane %v1778_v57, 1  ;;  %1841 = vmatprep.subr.bf16.mxu1 %v1974_v60  ;;  %v550_v28 = vrot.slane %v1955_v54, 1 }
  0x5e   : > { %560 = vrot.lane.b32.xlu0 %v542_v55, %s2017_s27  ;;  %v962_v55 = vrot.slane %v960_v45, 1  ;;  %v740_v45 = vshll.u32 %v1962_v33, 16 }
  0x5f   : > { %1820 = vmatpush3.bf16.msra.mxu0 %v1974_v60  ;;  %1846 = vmatpush3.bf16.msra.mxu1 %v1974_v60  ;;  %v551_v39 = vsel %vm527_vm0, %v549_v27, %v550_v28 }
  0x60   : > { %618 = vrot.lane.b32.xlu1 %v1739_v35, %s2015_s25  ;;  %v972_v35 = vshll.u32 %v2325_v18, 16  ;;  %v963_v48 = vsel %vm390_vm1, %v958_v58, %v962_v55  ;;  %v742_v57 = vrot.slane %v740_v45, 1  ;;  %v1756_v55 = vcombine.low %v1674_v51, %v2394_v11 }
  0x62   : > { %616 = vrot.lane.b32.xlu0 %v1738_v40, %s2015_s25  ;;  %v2357_v40 = vcombine.low %v236_v31, %v2345_v32  ;;  %v974_v50 = vrot.slane %v972_v35, 1  ;;  %v735_v32 = vshll.u32 %v1741_v21, 16 }
  0x64   : > { %754 = vrot.lane.b32.xlu1 %v719_v17, %s2019_s29  ;;  %v478_v56 = vshll.u32 %v2357_v40, 16  ;;  %v975_v62 = vsel %vm390_vm1, %v970_v37, %v974_v50  ;;  %v476_v2 = vshrl.u32 %v2357_v40, 16  ;;  %v485_v17 = vrot.slane %v483_v5, 1  ;;  %v1692_v37 = vld [vmem:[%s2082_s24 + $0x6c] sm:$0xf] }
  0x65   : > { %v737_v44 = vrot.slane %v735_v32, 1  ;;  %v1693_v50 = vld [vmem:[%s2082_s24 + $0x70] sm:$0xf]  ;;  %v1968_v5 = vld [vmem:[%s2082_s24 + $0x74] ss:$0 sps:$4 sm:$0x11]  }
  0x66   : > { %752 = vrot.lane.b32.xlu0 %v707_v26, %s2019_s29  ;;  %v480_v3 = vrot.slane %v478_v56, 1  ;;  %v1765_v58 = vcombine.low %v1692_v37, %v1693_v50 }
  0x67   : > { %v738_v56 = vor.u32 %v737_v44, %v733_v42 }
  0x68   : > { %818 = vrot.lane.b32.xlu1 %v801_v38, %s2016_s26  ;;  %v481_v19 = vor.u32 %v480_v3, %v476_v2  ;;  %v1963_v38 = vld [vmem:[%s2082_s24 + $0x5c] ss:$0 sps:$4 sm:$0x11]   ;;  %v806_v2 = vrot.slane %v1962_v33, 1  ;;  %v991_v3 = vshll.u32 %v1765_v58, 16  ;;  %v989_v9 = vshrl.u32 %v1765_v58, 16 }
  0x69   : > { %v728_v36 = vshll.u32 %v1963_v38, 16  ;;  %v743_v63 = vsel %vm390_vm1, %v738_v56, %v742_v57 }
  0x6a   : > { %816 = vrot.lane.b32.xlu0 %v798_v41, %s2016_s26  ;;  %v486_v31 = vsel %vm390_vm1, %v481_v19, %v485_v17  ;;  %v1675_v41 = vld [vmem:[%s2082_s24 + $0x60] sm:$0xe]  ;;  %v984_v17 = vshll.u32 %v1969_v7, 16 }
  0x6b   : > { %v1757_v54 = vcombine.low %v1675_v41, %v2389_v8  ;;  %v730_v61 = vrot.slane %v728_v36, 1  ;;  %v1059_v41 = vrot.slane %v1969_v7, 1 }
  0x6c   : > { %874 = vrot.lane.b32.xlu1 %v2303_v4, %s2020_s30  ;;  %v1053_v4 = vrot.slane %v2332_v20, 1  ;;  %v1056_v20 = vrot.slane %v2325_v18, 1  ;;  %v546_v18 = vrot.slane %v1732_v25, 1  ;;  %v1781_v25 = vcombine.low %v1709_v14, %v1693_v50 }
  0x6d   : > { %v805_v0 = vrot.slane %v1757_v54, 1  ;;  %v986_v32 = vrot.slane %v984_v17, 1 }
  0x6e   : > { %872 = vrot.lane.b32.xlu0 %v2311_v10, %s2020_s30  ;;  %v1656_v10 = vld [vmem:[%s2082_s24 + $0x54] sm:$0xf]  ;;  %v1054_v22 = vsel %vm527_vm0, %v1052_v6, %v1053_v4  ;;  %v1057_v34 = vsel %vm527_vm0, %v1055_v13, %v1056_v20  ;;  %v548_v43 = vsel %vm527_vm0, %v546_v18, %v547_v12  ;;  %v803_v6 = vrot.slane %v1963_v38, 1 }
  0x6f   : > { %v1740_v26 = vcombine.low %v1656_v10, %v2394_v11  ;;  %v807_v8 = vsel %vm527_vm0, %v805_v0, %v806_v2  ;;  %v993_v10 = vrot.slane %v991_v3, 1  ;;  %v996_v11 = vshll.u32 %v1968_v5, 16 }
  0x70   : > { %1010 = vrot.lane.b32.xlu1 %v975_v62, %s2021_s4  ;;  %v1764_v62 = vcombine.low %v1690_v52, %v1691_v53  ;;  %v1061_v18 = vrot.slane %v1781_v25, 1  ;;  %v1062_v12 = vrot.slane %v1968_v5, 1 }
  0x71   : > { %v723_v35 = vshll.u32 %v1740_v26, 16  ;;  %v721_v46 = vshrl.u32 %v1740_v26, 16  ;;  %v998_v27 = vrot.slane %v996_v11, 1 }
  0x72   : > { %1008 = vrot.lane.b32.xlu0 %v963_v48, %s2021_s4  ;;  %v802_v48 = vrot.slane %v1756_v55, 1  ;;  %v979_v4 = vshll.u32 %v1764_v62, 16  ;;  %v1063_v42 = vsel %vm527_vm0, %v1061_v18, %v1062_v12 }
  0x73   : > { %v725_v49 = vrot.slane %v723_v35, 1 }
  0x74   : > { %499 = vrot.lane.b32.xlu1 %v474_v15, %s2018_s28  ;;  %v804_v13 = vsel %vm527_vm0, %v802_v48, %v803_v6  ;;  %v977_v15 = vshrl.u32 %v1764_v62, 16  ;;  %v981_v19 = vrot.slane %v979_v4, 1 }
  0x75   : > { %v726_v60 = vor.u32 %v725_v49, %v721_v46 }
  0x76   : > { %1072 = vrot.lane.b32.xlu0 %v1054_v22, %s2022_s5 }
  0x77   : > { %v731_v1 = vsel %vm390_vm1, %v726_v60, %v730_v61 }
  0x78   : > { %501 = vrot.lane.b32.xlu1 %v486_v31, %s2018_s28  ;;  %v982_v31 = vor.u32 %v981_v19, %v977_v15 }
  0x7a   : > { %1074 = vrot.lane.b32.xlu0 %v1057_v34, %s2022_s5  ;;  %v987_v38 = vsel %vm390_vm1, %v982_v31, %v986_v32 }
  0x7c   : > { %566 = vrot.lane.b32.xlu1 %v551_v39, %s2017_s27 }
  0x7e   : > { %564 = vrot.lane.b32.xlu0 %v548_v43, %s2017_s27 }
  0x80   : > { %622 = vrot.lane.b32.xlu1 %v1741_v21, %s2015_s25  ;;  %v1708_v21 = vld [vmem:[%s2082_s24 + $0x60] sm:$0xe]  ;;  %s1634_s24 = sshll.u32 %s2639_s23, 1 }
  0x81   : > { %v1780_v28 = vcombine.low %v1708_v21, %v1691_v53 }
  0x82   : > { %620 = vrot.lane.b32.xlu0 %v1740_v26, %s2015_s25  ;;  %v994_v26 = vor.u32 %v993_v10, %v989_v9  ;;  %s1635_s25 = sshll.u32 %s2637_s13, 5 }
  0x83   : > { %v1058_v39 = vrot.slane %v1780_v28, 1 }
  0x84   : > { %758 = vrot.lane.b32.xlu1 %v743_v63, %s2019_s29  ;;  %v999_v34 = vsel %vm390_vm1, %v994_v26, %v998_v27 }
  0x85   : > { %v1060_v45 = vsel %vm527_vm0, %v1058_v39, %v1059_v41 }
  0x86   : > { %756 = vrot.lane.b32.xlu0 %v731_v1, %s2019_s29 }
  0x88   : > { %822 = vrot.lane.b32.xlu1 %v807_v8, %s2016_s26  ;;  %v611_v22 = vpop.permute.xlu1 %610 }
  0x89   : > { %v609_v20 = vpop.permute.xlu0 %608 }
  0x8a   : > { %820 = vrot.lane.b32.xlu0 %v804_v13, %s2016_s26  ;;  %s205_s26 = sadd.s32 %s1635_s25, %s1634_s24 }
  0x8b   : > { %s1636_s27 = sshll.u32 %s205_s26, 3 }
  0x8c   : > { %878 = vrot.lane.b32.xlu1 %v1765_v58, %s2020_s30 }
  0x8d   : > { %v809_v33 = vpop.permute.xlu0 %808 }
  0x8e   : > { %876 = vrot.lane.b32.xlu0 %v1764_v62, %s2020_s30  ;;  %v553_v35 = vpop.permute.xlu1 %552  ;;  %s2535_s30 = scalar_lea.vmem %s2624_s2, %s1636_s27 }
  0x90   : > { %1014 = vrot.lane.b32.xlu1 %v999_v34, %s2021_s4 }
  0x92   : > { %1012 = vrot.lane.b32.xlu0 %v987_v38, %s2021_s4  ;;  %v555_v44 = vpop.permute.xlu1 %554  ;;  %s1637_s4 = sshll.u32 %s2637_s13, 1 }
  0x94   : > { %v488_v46 = vpop.permute.xlu0 %487  ;;  %1078 = vrot.lane.b32.xlu1 %v1063_v42, %s2022_s5 }
  0x95   : > { %v1082_v37 = vsel %vm1080_vm3, %v2110_v23, %v488_v46 }
  0x96   : > { %1076 = vrot.lane.b32.xlu0 %v1060_v45, %s2022_s5  ;;  %v811_v43 = vpop.permute.xlu1 %810  ;;  %v1099_v52 = vsel %vm1097_vm4, %v1082_v37, %v553_v35  ;;  %s214_s5 = sadd.s32 %s1637_s4, %s2641_s12 }
  0x97   : > { %v1116_v57 = vsel %vm1114_vm5, %v1099_v52, %v609_v20  ;;  %s1638_s6 = sshll.u32 %s214_s5, 1 }
  0x98   : > { %v490_v49 = vpop.permute.xlu0 %489  ;;  %s216_s9 = scalar_lea.vmem %s2625_s3, %s1638_s6 }
  0x99   : > { %v1084_v51 = vsel %vm1080_vm3, %v2115_v29, %v490_v49 }
  0x9a   : > { %v747_v36 = vpop.permute.xlu1 %746  ;;  %v1101_v56 = vsel %vm1097_vm4, %v1084_v51, %v555_v44 }
  0x9b   : > { %v1118_v23 = vsel %vm1114_vm5, %v1101_v56, %v611_v22 }
  0x9c   : > { %v745_v50 = vpop.permute.xlu0 %744  ;;  %v1135_v61 = vsel %vm1131_vm6, %v1118_v23, %v747_v36 }
  0x9d   : > { %v1133_v58 = vsel %vm1131_vm6, %v1116_v57, %v745_v50  ;;  %v1152_v5 = vsel %vm1148_vm7, %v1135_v61, %v811_v43 }
  0x9e   : > { %v867_v53 = vpop.permute.xlu1 %866  ;;  %v1150_v29 = vsel %vm1148_vm7, %v1133_v58, %v809_v33 }
  0x9f   : > { %v1169_v1 = vsel %vm1165_vm8, %v1152_v5, %v867_v53 }
  0xa0   : > { %v865_v54 = vpop.permute.xlu0 %864 }
  0xa1   : > { %v1167_v62 = vsel %vm1165_vm8, %v1150_v29, %v865_v54 }
  0xa2   : > { %v1003_v55 = vpop.permute.xlu1 %1002 }
  0xa3   : > { %v1186_v6 = vsel %vm1182_vm9, %v1169_v1, %v1003_v55 }
  0xa4   : > { %v1001_v60 = vpop.permute.xlu0 %1000 }
  0xa5   : > { %v1184_v0 = vsel %vm1182_vm9, %v1167_v62, %v1001_v60 }
  0xa6   : > { %v492_v63 = vpop.permute.xlu1 %491 }
  0xa7   : > { %v1086_v22 = vsel %vm1080_vm3, %v2155_v16, %v492_v63 }
  0xa8   : > { %v1065_v2 = vpop.permute.xlu0 %1064 }
  0xa9   : > { %v1201_v3 = vsel %vm1199_vm10, %v1184_v0, %v1065_v2 }
  0xaa   : > { %1821 = vmatprep.mubr.msk.bf16.mxu0 %vm1252_vm11, %v1201_v3  ;;  %v494_v48 = vpop.permute.xlu1 %493 }
  0xab   : > { %v1088_v31 = vsel %vm1080_vm3, %v2166_v30, %v494_v48 }
  0xac   : > { %v1067_v4 = vpop.permute.xlu0 %1066 }
  0xad   : > { %v1203_v7 = vsel %vm1199_vm10, %v1186_v6, %v1067_v4 }
  0xae   : > { %1822 = vmatmul.mubr.msk.bf16.vlgmr.msra.gmra.mxu0 %vm1252_vm11, %v1203_v7  ;;  %v559_v8 = vpop.permute.xlu1 %558 }
  0xaf   : > { %v1105_v33 = vsel %vm1097_vm4, %v1088_v31, %v559_v8 }
  0xb0   : > { %v557_v9 = vpop.permute.xlu0 %556 }
  0xb1   : > { %v1103_v20 = vsel %vm1097_vm4, %v1086_v22, %v557_v9 }
  0xb2   : > { %v615_v10 = vpop.permute.xlu1 %614 }
  0xb3   : > { %v1122_v16 = vsel %vm1114_vm5, %v1105_v33, %v615_v10 }
  0xb4   : > { %v613_v11 = vpop.permute.xlu0 %612 }
  0xb5   : > { %v1120_v26 = vsel %vm1114_vm5, %v1103_v20, %v613_v11 }
  0xb6   : > { %v751_v13 = vpop.permute.xlu1 %750 }
  0xb7   : > { %v1139_v38 = vsel %vm1131_vm6, %v1122_v16, %v751_v13 }
  0xb8   : > { %v749_v14 = vpop.permute.xlu0 %748 }
  0xb9   : > { %v1137_v28 = vsel %vm1131_vm6, %v1120_v26, %v749_v14 }
  0xba   : > { %v815_v15 = vpop.permute.xlu1 %814 }
  0xbb   : > { %v1156_v41 = vsel %vm1148_vm7, %v1139_v38, %v815_v15 }
  0xbc   : > { %v813_v19 = vpop.permute.xlu0 %812 }
  0xbd   : > { %v1154_v32 = vsel %vm1148_vm7, %v1137_v28, %v813_v19 }
  0xbe   : > { %v871_v17 = vpop.permute.xlu1 %870 }
  0xbf   : > { %v1173_v30 = vsel %vm1165_vm8, %v1156_v41, %v871_v17 }
  0xc0   : > { %v869_v21 = vpop.permute.xlu0 %868 }
  0xc1   : > { %v1171_v34 = vsel %vm1165_vm8, %v1154_v32, %v869_v21 }
  0xc2   : > { %v1007_v25 = vpop.permute.xlu1 %1006 }
  0xc3   : > { %v1190_v44 = vsel %vm1182_vm9, %v1173_v30, %v1007_v25 }
  0xc4   : > { %v1005_v27 = vpop.permute.xlu0 %1004 }
  0xc5   : > { %v1188_v12 = vsel %vm1182_vm9, %v1171_v34, %v1005_v27 }
  0xc6   : > { %v496_v18 = vpop.permute.xlu1 %495 }
  0xc7   : > { %v1090_v57 = vsel %vm1080_vm3, %v2229_v47, %v496_v18 }
  0xc8   : > { %v1069_v35 = vpop.permute.xlu0 %1068 }
  0xc9   : > { %v1205_v39 = vsel %vm1199_vm10, %v1188_v12, %v1069_v35 }
  0xca   : > { %1825 = vmatprep.mubr.msk.bf16.mxu0 %vm1252_vm11, %v1205_v39  ;;  %v498_v42 = vpop.permute.xlu1 %497 }
  0xcb   : > { %v1092_v61 = vsel %vm1080_vm3, %v2243_v59, %v498_v42 }
  0xcc   : > { %v1071_v45 = vpop.permute.xlu0 %1070 }
  0xcd   : > { %v1207_v46 = vsel %vm1199_vm10, %v1190_v44, %v1071_v45 }
  0xce   : > { %1826 = vmatmul.mubr.msk.bf16.gmra.mxu0 %vm1252_vm11, %v1207_v46  ;;  %v563_v43 = vpop.permute.xlu1 %562 }
  0xcf   : > { %v1109_v63 = vsel %vm1097_vm4, %v1092_v61, %v563_v43 }
  0xd0   : > { %v561_v49 = vpop.permute.xlu0 %560 }
  0xd1   : > { %v1107_v58 = vsel %vm1097_vm4, %v1090_v57, %v561_v49 }
  0xd2   : > { %v619_v36 = vpop.permute.xlu1 %618 }
  0xd3   : > { %v1126_v47 = vsel %vm1114_vm5, %v1109_v63, %v619_v36 }
  0xd4   : > { %v617_v37 = vpop.permute.xlu0 %616 }
  0xd5   : > { %v1124_v23 = vsel %vm1114_vm5, %v1107_v58, %v617_v37 }
  0xd6   : > { %v755_v50 = vpop.permute.xlu1 %754 }
  0xd7   : > { %v1143_v1 = vsel %vm1131_vm6, %v1126_v47, %v755_v50 }
  0xd8   : > { %v753_v51 = vpop.permute.xlu0 %752 }
  0xd9   : > { %v1141_v29 = vsel %vm1131_vm6, %v1124_v23, %v753_v51 }
  0xda   : > { %v819_v52 = vpop.permute.xlu1 %818 }
  0xdb   : > { %v1160_v6 = vsel %vm1148_vm7, %v1143_v1, %v819_v52 }
  0xdc   : > { %v817_v53 = vpop.permute.xlu0 %816 }
  0xdd   : > { %v1158_v62 = vsel %vm1148_vm7, %v1141_v29, %v817_v53 }
  0xde   : > { %v875_v54 = vpop.permute.xlu1 %874 }
  0xdf   : > { %v1177_v59 = vsel %vm1165_vm8, %v1160_v6, %v875_v54 }
  0xe0   : > { %v873_v56 = vpop.permute.xlu0 %872 }
  0xe1   : > { %v1175_v0 = vsel %vm1165_vm8, %v1158_v62, %v873_v56 }
  0xe2   : > { %v1011_v55 = vpop.permute.xlu1 %1010 }
  0xe3   : > { %v1194_v7 = vsel %vm1182_vm9, %v1177_v59, %v1011_v55 }
  0xe4   : > { %v1009_v60 = vpop.permute.xlu0 %1008 }
  0xe5   : > { %v1192_v3 = vsel %vm1182_vm9, %v1175_v0, %v1009_v60 }
  0xe6   : > { %v500_v2 = vpop.permute.xlu1 %499 }
  0xe7   : > { %v1094_v26 = vsel %vm1080_vm3, %v2335_v24, %v500_v2 }
  0xe8   : > { %v1073_v5 = vpop.permute.xlu0 %1072 }
  0xe9   : > { %v1209_v48 = vsel %vm1199_vm10, %v1192_v3, %v1073_v5 }
  0xea   : > { %1829 = vmatprep.mubr.msk.bf16.mxu1 %vm1252_vm11, %v1209_v48  ;;  %v502_v4 = vpop.permute.xlu1 %501 }
  0xeb   : > { %v1096_v25 = vsel %vm1080_vm3, %v2357_v40, %v502_v4 }
  0xec   : > { %v1075_v8 = vpop.permute.xlu0 %1074 }
  0xed   : > { %v1211_v9 = vsel %vm1199_vm10, %v1194_v7, %v1075_v8 }
  0xee   : > { %1830 = vmatmul.mubr.msk.bf16.vlgmr.msra.gmra.mxu1 %vm1252_vm11, %v1211_v9  ;;  %v567_v10 = vpop.permute.xlu1 %566 }
  0xef   : > { %v1113_v27 = vsel %vm1097_vm4, %v1096_v25, %v567_v10 }
  0xf0   : > { %v565_v11 = vpop.permute.xlu0 %564 }
  0xf1   : > { %v1111_v28 = vsel %vm1097_vm4, %v1094_v26, %v565_v11 }
  0xf2   : > { %v623_v13 = vpop.permute.xlu1 %622 }
  0xf3   : > { %v1130_v31 = vsel %vm1114_vm5, %v1113_v27, %v623_v13 }
  0xf4   : > { %v621_v14 = vpop.permute.xlu0 %620 }
  0xf5   : > { %v1128_v33 = vsel %vm1114_vm5, %v1111_v28, %v621_v14 }
  0xf6   : > { %v759_v15 = vpop.permute.xlu1 %758 }
  0xf7   : > { %v1147_v34 = vsel %vm1131_vm6, %v1130_v31, %v759_v15 }
  0xf8   : > { %v757_v19 = vpop.permute.xlu0 %756 }
  0xf9   : > { %v1145_v16 = vsel %vm1131_vm6, %v1128_v33, %v757_v19 }
  0xfa   : > { %v823_v17 = vpop.permute.xlu1 %822 }
  0xfb   : > { %v1164_v40 = vsel %vm1148_vm7, %v1147_v34, %v823_v17 }
  0xfc   : > { %v821_v21 = vpop.permute.xlu0 %820 }
  0xfd   : > { %v1162_v24 = vsel %vm1148_vm7, %v1145_v16, %v821_v21 }
  0xfe   : > { %v879_v22 = vpop.permute.xlu1 %878 }
  0xff   : > { %v1181_v12 = vsel %vm1165_vm8, %v1164_v40, %v879_v22 }
 0x100   : > { %v877_v20 = vpop.permute.xlu0 %876 }
 0x101   : > { %v1179_v35 = vsel %vm1165_vm8, %v1162_v24, %v877_v20 }
 0x102   : > { %v1015_v32 = vpop.permute.xlu1 %1014 }
 0x103   : > { %v1198_v38 = vsel %vm1182_vm9, %v1181_v12, %v1015_v32 }
 0x104   : > { %v1013_v18 = vpop.permute.xlu0 %1012 }
 0x105   : > { %v1196_v41 = vsel %vm1182_vm9, %v1179_v35, %v1013_v18 }
 0x106   : > { %v1079_v39 = vpop.permute.xlu1 %1078 }
 0x107   : > { %v1215_v30 = vsel %vm1199_vm10, %v1198_v38, %v1079_v39 }
 0x108   : > { %v1077_v42 = vpop.permute.xlu0 %1076 }
 0x109   : > { %v1213_v44 = vsel %vm1199_vm10, %v1196_v41, %v1077_v42 }
 0x10a   : > { %1833 = vmatprep.mubr.msk.bf16.mxu1 %vm1252_vm11, %v1213_v44 }
 0x10b   : > { %1834 = vmatmul.mubr.msk.bf16.gmra.mxu1 %vm1252_vm11, %v1215_v30 }
 0x16e   : > { %v1823_v45 = vpop.f32.mrf.mxu0 }
 0x16f   : > { %1372 = vst.msk [vmem:[%s2535_s30 + $0x10] sm:$0xff] %vm1080_vm3, %v1823_v45  ;;  %v1425_v37 = vmul.f32 %v1823_v45, %v1823_v45  ;;  %v1389_v54 = vsel %vm1080_vm3, %v1823_v45, 0.0 }
 0x170   : > { %v1307_v46 = vpop.f32.mrf.mxu0 }
 0x171   : > { %1370 = vst.msk [vmem:[%s2535_s30] sm:$0xff] %vm1080_vm3, %v1307_v46  ;;  %v1423_v49 = vmul.f32 %v1307_v46, %v1307_v46  ;;  %v1386_v50 = vsel %vm1080_vm3, %v1307_v46, 0.0  ;;  %v1442_v60 = vsel %vm1080_vm3, %v1425_v37, 0.0 }
 0x172   : > { %v1824_v43 = vpop.f32.mrf.mxu0 }
 0x173   : > { %1373 = vst.msk [vmem:[%s2535_s30 + $0x18] sm:$0xff] %vm1080_vm3, %v1824_v43  ;;  %v1439_v56 = vsel %vm1080_vm3, %v1423_v49, 0.0  ;;  %v1426_v57 = vmul.f32 %v1824_v43, %v1824_v43  ;;  %v1391_v29 = vsel %vm1080_vm3, %v1824_v43, 0.0 }
 0x174   : > { %v1310_v36 = vpop.f32.mrf.mxu0 }
 0x175   : > { %1371 = vst.msk [vmem:[%s2535_s30 + $0x8] sm:$0xff] %vm1080_vm3, %v1310_v36  ;;  %v1387_v51 = vsel %vm1080_vm3, %v1310_v36, 0.0  ;;  %v1424_v52 = vmul.f32 %v1310_v36, %v1310_v36  ;;  %v1444_v63 = vsel %vm1080_vm3, %v1426_v57, 0.0 }
 0x176   : > { %v1388_v53 = vadd.f32 %v1387_v51, %v1386_v50 }
 0x177   : > { %v1440_v58 = vsel %vm1080_vm3, %v1424_v52, 0.0 }
 0x178   : > { %v1390_v55 = vadd.f32 %v1389_v54, %v1388_v53  ;;  %v1441_v23 = vadd.f32 %v1440_v58, %v1439_v56 }
 0x17a   : > { %v1443_v61 = vadd.f32 %v1442_v60, %v1441_v23  ;;  %v1392_v62 = vadd.f32 %v1391_v29, %v1390_v55 }
 0x17c   : > { %v1445_v0 = vadd.f32 %v1444_v63, %v1443_v61 }
 0x18e   : > { %v1827_v2 = vpop.f32.mrf.mxu0 }
 0x18f   : > { %1376 = vst.msk [vmem:[%s2535_s30 + $0x30] sm:$0xff] %vm1080_vm3, %v1827_v2  ;;  %v1429_v19 = vmul.f32 %v1827_v2, %v1827_v2  ;;  %v1397_v21 = vsel %vm1080_vm3, %v1827_v2, 0.0 }
 0x190   : > { %v1323_v47 = vpop.f32.mrf.mxu0 }
 0x191   : > { %1374 = vst.msk [vmem:[%s2535_s30 + $0x20] sm:$0xff] %vm1080_vm3, %v1323_v47  ;;  %v1427_v59 = vmul.f32 %v1323_v47, %v1323_v47  ;;  %v1393_v7 = vsel %vm1080_vm3, %v1323_v47, 0.0  ;;  %v1450_v20 = vsel %vm1080_vm3, %v1429_v19, 0.0 }
 0x192   : > { %v1828_v3 = vpop.f32.mrf.mxu0  ;;  %v1394_v11 = vadd.f32 %v1393_v7, %v1392_v62 }
 0x193   : > { %1377 = vst.msk [vmem:[%s2535_s30 + $0x38] sm:$0xff] %vm1080_vm3, %v1828_v3  ;;  %v1446_v9 = vsel %vm1080_vm3, %v1427_v59, 0.0  ;;  %v1430_v25 = vmul.f32 %v1828_v3, %v1828_v3  ;;  %v1399_v28 = vsel %vm1080_vm3, %v1828_v3, 0.0 }
 0x194   : > { %v1326_v5 = vpop.f32.mrf.mxu0  ;;  %v1447_v14 = vadd.f32 %v1446_v9, %v1445_v0 }
 0x195   : > { %1375 = vst.msk [vmem:[%s2535_s30 + $0x28] sm:$0xff] %vm1080_vm3, %v1326_v5  ;;  %v1428_v8 = vmul.f32 %v1326_v5, %v1326_v5  ;;  %v1395_v10 = vsel %vm1080_vm3, %v1326_v5, 0.0  ;;  %v1452_v34 = vsel %vm1080_vm3, %v1430_v25, 0.0 }
 0x196   : > { %v1396_v15 = vadd.f32 %v1395_v10, %v1394_v11 }
 0x197   : > { %v1448_v13 = vsel %vm1080_vm3, %v1428_v8, 0.0 }
 0x198   : > { %v1449_v17 = vadd.f32 %v1448_v13, %v1447_v14  ;;  %v1398_v22 = vadd.f32 %v1397_v21, %v1396_v15 }
 0x19a   : > { %v1451_v27 = vadd.f32 %v1450_v20, %v1449_v17  ;;  %v1400_v33 = vadd.f32 %v1399_v28, %v1398_v22 }
 0x19c   : > { %v1453_v24 = vadd.f32 %v1452_v34, %v1451_v27 }
 0x1ae   : > { %v1831_v1 = vpop.f32.mrf.mxu1 }
 0x1af   : > { %1380 = vst.msk [vmem:[%s2535_s30 + $0x50] sm:$0xff] %vm1080_vm3, %v1831_v1  ;;  %v1433_v39 = vmul.f32 %v1831_v1, %v1831_v1  ;;  %v1405_v30 = vsel %vm1080_vm3, %v1831_v1, 0.0 }
 0x1b0   : > { %v1339_v48 = vpop.f32.mrf.mxu1 }
 0x1b1   : > { %1378 = vst.msk [vmem:[%s2535_s30 + $0x40] sm:$0xff] %vm1080_vm3, %v1339_v48  ;;  %v1431_v26 = vmul.f32 %v1339_v48, %v1339_v48  ;;  %v1401_v31 = vsel %vm1080_vm3, %v1339_v48, 0.0  ;;  %v1458_v45 = vsel %vm1080_vm3, %v1433_v39, 0.0 }
 0x1b2   : > { %v1832_v6 = vpop.f32.mrf.mxu1  ;;  %v1402_v40 = vadd.f32 %v1401_v31, %v1400_v33 }
 0x1b3   : > { %1381 = vst.msk [vmem:[%s2535_s30 + $0x58] sm:$0xff] %vm1080_vm3, %v1832_v6  ;;  %v1454_v18 = vsel %vm1080_vm3, %v1431_v26, 0.0  ;;  %v1434_v46 = vmul.f32 %v1832_v6, %v1832_v6  ;;  %v1407_v36 = vsel %vm1080_vm3, %v1832_v6, 0.0 }
 0x1b4   : > { %v1342_v4 = vpop.f32.mrf.mxu1  ;;  %v1455_v35 = vadd.f32 %v1454_v18, %v1453_v24 }
 0x1b5   : > { %1379 = vst.msk [vmem:[%s2535_s30 + $0x48] sm:$0xff] %vm1080_vm3, %v1342_v4  ;;  %v1432_v32 = vmul.f32 %v1342_v4, %v1342_v4  ;;  %v1403_v16 = vsel %vm1080_vm3, %v1342_v4, 0.0  ;;  %v1460_v53 = vsel %vm1080_vm3, %v1434_v46, 0.0 }
 0x1b6   : > { %v1404_v38 = vadd.f32 %v1403_v16, %v1402_v40 }
 0x1b7   : > { %v1456_v12 = vsel %vm1080_vm3, %v1432_v32, 0.0 }
 0x1b8   : > { %v1457_v41 = vadd.f32 %v1456_v12, %v1455_v35  ;;  %v1406_v42 = vadd.f32 %v1405_v30, %v1404_v38 }
 0x1ba   : > { %v1459_v43 = vadd.f32 %v1458_v45, %v1457_v41  ;;  %v1408_v51 = vadd.f32 %v1407_v36, %v1406_v42 }
 0x1bc   : > { %v1461_v57 = vadd.f32 %v1460_v53, %v1459_v43 }
 0x1cb   : > { %v1835_v44 = vpop.f32.mrf.mxu1 }
 0x1cc   : > { %1384 = vst.msk [vmem:[%s2535_s30 + $0x70] sm:$0xff] %vm1080_vm3, %v1835_v44  ;;  %v1437_v55 = vmul.f32 %v1835_v44, %v1835_v44  ;;  %v1413_v62 = vsel %vm1080_vm3, %v1835_v44, 0.0 }
 0x1cd   : > { %v1355_v49 = vpop.f32.mrf.mxu1 }
 0x1ce   : > { %1382 = vst.msk [vmem:[%s2535_s30 + $0x60] sm:$0xff] %vm1080_vm3, %v1355_v49  ;;  %v1409_v37 = vsel %vm1080_vm3, %v1355_v49, 0.0  ;;  %v1435_v50 = vmul.f32 %v1355_v49, %v1355_v49  ;;  %v1466_v3 = vsel %vm1080_vm3, %v1437_v55, 0.0 }
 0x1cf   : > { %v1836_v52 = vpop.f32.mrf.mxu1  ;;  %v1410_v56 = vadd.f32 %v1409_v37, %v1408_v51 }
 0x1d0   : > { %v1462_v54 = vsel %vm1080_vm3, %v1435_v50, 0.0  ;;  %1385 = vst.msk [vmem:[%s2535_s30 + $0x78] sm:$0xff] %vm1080_vm3, %v1836_v52  ;;  %v1438_v63 = vmul.f32 %v1836_v52, %v1836_v52  ;;  %v1415_v5 = vsel %vm1080_vm3, %v1836_v52, 0.0 }
 0x1d1   : > { %v1358_v58 = vpop.f32.mrf.mxu1  ;;  %v1463_v29 = vadd.f32 %v1462_v54, %v1461_v57 }
 0x1d2   : > { %1383 = vst.msk [vmem:[%s2535_s30 + $0x68] sm:$0xff] %vm1080_vm3, %v1358_v58  ;;  %v1411_v23 = vsel %vm1080_vm3, %v1358_v58, 0.0  ;;  %v1436_v60 = vmul.f32 %v1358_v58, %v1358_v58  ;;  %v1468_v6 = vsel %vm1080_vm3, %v1438_v63, 0.0 }
 0x1d3   : > { %v1412_v61 = vadd.f32 %v1411_v23, %v1410_v56 }
 0x1d4   : > { %v1464_v0 = vsel %vm1080_vm3, %v1436_v60, 0.0 }
 0x1d5   : > { %v1414_v2 = vadd.f32 %v1413_v62, %v1412_v61  ;;  %v1465_v47 = vadd.f32 %v1464_v0, %v1463_v29 }
 0x1d7   : > { %v1416_v1 = vadd.f32 %v1415_v5, %v1414_v2  ;;  %v1467_v48 = vadd.f32 %v1466_v3, %v1465_v47 }
 0x1d9   : > { %v1417_v59 = vrot.slane %v1416_v1, 4  ;;  %v1469_v4 = vadd.f32 %v1468_v6, %v1467_v48 }
 0x1db   : > { %v1418_v7 = vadd.f32 %v1417_v59, %v1416_v1  ;;  %v1470_v8 = vrot.slane %v1469_v4, 4 }
 0x1dd   : > { %v1419_v9 = vrot.slane %v1418_v7, 2  ;;  %v1471_v10 = vadd.f32 %v1470_v8, %v1469_v4 }
 0x1df   : > { %v1420_v11 = vadd.f32 %v1419_v9, %v1418_v7  ;;  %v1472_v13 = vrot.slane %v1471_v10, 2 }
 0x1e1   : > { %v1421_v14 = vrot.slane %v1420_v11, 1  ;;  %v1473_v15 = vadd.f32 %v1472_v13, %v1471_v10 }
 0x1e3   : > { %v1474_v19 = vrot.slane %v1473_v15, 1  ;;  %v1422_v17 = vadd.f32 %v1421_v14, %v1420_v11 }
 0x1e5   : > { %v1475_v21 = vadd.f32 %v1474_v19, %v1473_v15 }
 0x1e7   : > { %v1477_v22 = vsel %vm1476_vm12, %v1422_v17, %v1475_v21 }
 0x1e8   : > { %1479 = vst.msk [vmem:[%s216_s9] sm:$0x3] %vm1478_vm13, %v1477_v22 }
 0x1e9 PF: > { %s14_s16 = sadd.s32 1, %s2013_s16   ;;  %s2626_s12 = smov %s2005_s14 }
 0x1ea   : > { %p11_p8 = scmp.ge.s32.totalorder %s14_s16, 6   ;;  %s2627_s13 = smov %s2009_s15 }
 0x1eb   : > { %s2628_s14 = smov %s2631_s17  ;;  %s2629_s15 = smov %s2635_s18 }
 0x1ec   :  { %13 = sbr.rel (!%p11_p8) target bundleno = 3 (0x3), region = 73 }

// kernel: basic_block_forward.6
= control target key start
LH: loop header
LB: loop body
LE: loop exit
PB: predicated region body
PF: predicated region fallthrough
CT: control target
= control target key end

     0   :  { %s2013_s12 = smov 0   ;;  %s2015_s13 = smov 0   ;;  %s2571_s0 = inlined_call_operand.vmem [shape: bf16[2,18,18,4], index: 0, kind: input, shape index: {}]   ;;  %s2572_s1 = inlined_call_operand.vmem [shape: bf16[36,8], index: 1, kind: input, shape index: {}]   ;;  %s2573_s2 = inlined_call_operand.vmem [shape: f32[2,16,16,8], index: 2, kind: output, shape index: {0}]   ;;  %s2574_s3 = inlined_call_operand.vmem [shape: f32[2,2,2,8], index: 3, kind: output, shape index: {1}]  }
   0x1   :  { %s2017_s14 = smov 0   ;;  %s2019_s15 = smov 0  }
   0x2   :  { %s2021_s16 = smov 0  }
   0x3 LB: > { %s23_s17 = sadd.s32 1, %s1975_s14  ;;  %s26_s18 = sadd.s32 1, %s1979_s15  ;;  %s1983_s16 = sphi %s2021_s16, %s14_s16   ;;  %s1979_s15 = sphi %s2019_s15, %s2578_s15   ;;  %s1975_s14 = sphi %s2017_s14, %s2577_s14   ;;  %s1971_s13 = sphi %s2015_s13, %s2576_s13   ;;  %s1967_s12 = sphi %s2013_s12, %s2575_s12  }
   0x4   : > { %p24_p0 = scmp.ge.s32.totalorder %s23_s17, 2  ;;  %p1615_p1 = scmp.ge.s32.totalorder %s1983_s16, 1 }
   0x5   : > { %p156_p2 = scmp.lt.s32.totalorder %s1983_s16, 5 }
   0x6   : > { %s2580_s17 = smov (%p24_p0, %s23_s17), 0  ;;  %s2582_s18 = smov (!%p24_p0, %s26_s18), %s1979_s15 }
   0x7   : > { %p157_p3 = pnand %p1615_p1, %p156_p2  ;;  %p28_p4 = scmp.ge.s32.totalorder %s2582_s18, 2 }
   0x8   : > { %p193_p5 = scmp.lt.s32.totalorder (!%p157_p3), %s1971_s13, 1  ;;  %s1779_s19 = smul.u32 (!%p157_p3), 96, %s1967_s12 }
   0x9   : > { %s2584_s18 = smov (%p28_p4, %s2582_s18), 0  ;;  %160 = sbr.rel (%p157_p3) target bundleno = 489 (0x1e9), region = 28 }
   0xa   : > { %s1985_s25 = smov (!%p157_p3), 12   ;;  %s1986_s26 = smov (!%p157_p3), 20  }
   0xb   : > { %s1987_s27 = smov (!%p157_p3), 8   ;;  %s1988_s28 = smov (!%p157_p3), 4  }
   0xc   : > { %s1989_s29 = smov (!%p157_p3), 16   ;;  %s1990_s30 = smov (!%p157_p3), 24  }
   0xd   : > { %s1991_s4 = smov (!%p157_p3), 28   ;;  %s1992_s5 = smov (!%p157_p3), 32  }
   0xe   : > { %s2586_s13 = smov (!%p193_p5, %s1971_s13), 1  ;;  %vm527_vm0 = vcmask 1046528   ;;  %vm390_vm1 = vsmask.f32 7424  ;;  %vm1253_vm2 = vcmask 1041408   ;;  %vm1080_vm3 = vcmask 31744  }
   0xf   : > { %s1821_s20 = smul.u32 216, %s2586_s13  ;;  %vm1097_vm4 = vcmask 64512   ;;  %vm1114_vm5 = vcmask 97280   ;;  %vm1131_vm6 = vcmask 130048   ;;  %vm1148_vm7 = vcmask 162816   ;;  %s1619_s21 = sshll.u32 %s2586_s13, 5 }
  0x10   : > { %vm1165_vm8 = vcmask 195584   ;;  %vm1182_vm9 = vcmask 228352   ;;  %vm1199_vm10 = vcmask 261120   ;;  %vm1236_vm11 = vcmask 293888   ;;  %p211_p7 = scmp.lt.s32.totalorder %s1967_s12, 1 }
  0x11   : > { %s197_s23 = scalar_lea.vmem %s2571_s0, %s1821_s20  ;;  %vm1460_vm12 = vcmask 1040384   ;;  %vm1462_vm13 = vcmask 58368  }
  0x12   : > { %s2052_s24 = scalar_lea.vmem %s197_s23, %s1779_s19  ;;  %s1617_s19 = sshll.u32 %s1967_s12, 3 }
  0x13   : > { %v1630_v0 = vld [vmem:[%s2052_s24 + $0x18] sm:$0xf]  ;;  %v1631_v1 = vld [vmem:[%s2052_s24 + $0x1c] sm:$0xf]  ;;  %v1628_v5 = vld [vmem:[%s2052_s24 + $0xc] sm:$0xf] }
  0x14   : > { %v1653_v2 = vld [vmem:[%s2052_s24 + $0x18] sm:$0xe]  ;;  %v2057_v3 = vcombine.low %v1630_v0, %v1631_v1  ;;  %v1629_v6 = vld [vmem:[%s2052_s24 + $0x10] sm:$0xf]  ;;  %v1652_v7 = vld [vmem:[%s2052_s24 + $0xc] sm:$0xe] }
  0x15   : > { %v1735_v4 = vcombine.low %v1653_v2, %v1631_v1  ;;  %v2062_v8 = vcombine.low %v1628_v5, %v1629_v6  ;;  %v1734_v9 = vcombine.low %v1652_v7, %v1629_v6  ;;  %v2065_v10 = vld [vmem:[%s2052_s24 + $0x14] ss:$0 sps:$4 sm:$0x11]   ;;  %v223_v12 = vld [vmem:[%s2052_s24 + $0x4] sm:$0xf]  ;;  %p201_p6 = scmp.lt.s32.totalorder %s1617_s19, 15 }
  0x16   : > { %610 = vrot.lane.b32.xlu1 %v2057_v3, %s1985_s25  ;;  %v663_v11 = vshll.u32 %v2057_v3, 16  ;;  %v785_v15 = vrot.slane %v2065_v10, 1  ;;  %v246_v16 = vld [vmem:[%s2052_s24] sm:$0xe]  ;;  %v661_v21 = vshrl.u32 %v2057_v3, 16  ;;  %v656_v59 = vshll.u32 %v2065_v10, 16 }
  0x17   : > { %608 = vrot.lane.b32.xlu0 %v2062_v8, %s1985_s25  ;;  %v651_v13 = vshll.u32 %v2062_v8, 16  ;;  %v784_v14 = vrot.slane %v1734_v9, 1  ;;  %v787_v17 = vrot.slane %v1735_v4, 1  ;;  %v1875_v18 = vld [vmem:[%s2052_s24 + $0x8] ss:$0 sps:$4 sm:$0x11]   ;;  %v1710_v19 = vcombine.low %v246_v16, %v223_v12 }
  0x18   : > { %v222_v20 = vld [vmem:[%s2052_s24] sm:$0xf]  ;;  %v224_v24 = vld [vmem:[%s2052_s24 + $0xc] sm:$0xf]  ;;  %v225_v25 = vld [vmem:[%s2052_s24 + $0x10] sm:$0xf] }
  0x19   : > { %v786_v22 = vsel %vm527_vm0, %v784_v14, %v785_v15  ;;  %v2080_v23 = vcombine.low %v222_v20, %v223_v12  ;;  %v528_v26 = vrot.slane %v1710_v19, 1  ;;  %v529_v27 = vrot.slane %v1875_v18, 1  ;;  %v247_v28 = vld [vmem:[%s2052_s24 + $0xc] sm:$0xe]  ;;  %v1664_v43 = vld [vmem:[%s2052_s24 + $0x24] sm:$0xf] }
  0x1a   : > { %v2085_v29 = vcombine.low %v224_v24, %v225_v25  ;;  %v399_v30 = vshll.u32 %v1875_v18, 16  ;;  %v1879_v31 = vld [vmem:[%s2052_s24 + $0x14] ss:$0 sps:$4 sm:$0x11]   ;;  %v1711_v32 = vcombine.low %v247_v28, %v225_v25  ;;  %v665_v35 = vrot.slane %v663_v11, 1  ;;  %s2588_s19 = smov (!%p201_p6, %s1617_s19), 15 }
  0x1b   : > { %808 = vrot.lane.b32.xlu0 %v786_v22, %s1986_s26  ;;  %v392_v33 = vshrl.u32 %v2080_v23, 16  ;;  %v394_v34 = vshll.u32 %v2080_v23, 16  ;;  %v530_v36 = vsel %vm527_vm0, %v528_v26, %v529_v27  ;;  %v1881_v38 = vld [vmem:[%s2052_s24 + $0x20] ss:$0 sps:$4 sm:$0x11]   ;;  %v532_v40 = vrot.slane %v1879_v31, 1 }
  0x1c   : > { %v401_v37 = vrot.slane %v399_v30, 1  ;;  %552 = vrot.lane.b32.xlu1 %v530_v36, %s1987_s27  ;;  %v531_v39 = vrot.slane %v1711_v32, 1  ;;  %v404_v42 = vshrl.u32 %v2085_v29, 16  ;;  %v788_v44 = vrot.slane %v1881_v38, 1  ;;  %v2098_v48 = vld [vmem:[%s2052_s24 + $0x28] sm:$0xf] }
  0x1d   : > { %v396_v41 = vrot.slane %v394_v34, 1  ;;  %v406_v45 = vshll.u32 %v2085_v29, 16  ;;  %v411_v46 = vshll.u32 %v1879_v31, 16  ;;  %v668_v47 = vshll.u32 %v1881_v38, 16  ;;  %v1662_v53 = vld [vmem:[%s2052_s24 + $0x18] sm:$0xf] }
  0x1e   : > { %v533_v49 = vsel %vm527_vm0, %v531_v39, %v532_v40  ;;  %v649_v51 = vshrl.u32 %v2062_v8, 16  ;;  %v653_v52 = vrot.slane %v651_v13, 1  ;;  %v1663_v56 = vld [vmem:[%s2052_s24 + $0x1c] sm:$0xf]  ;;  %v666_v58 = vor.u32 %v665_v35, %v661_v21  ;;  %v1686_v7 = vld [vmem:[%s2052_s24 + $0x18] sm:$0xe] }
  0x1f   : > { %v397_v50 = vor.u32 %v396_v41, %v392_v33  ;;  %v408_v54 = vrot.slane %v406_v45, 1  ;;  %v413_v55 = vrot.slane %v411_v46, 1  ;;  %v1743_v60 = vcombine.low %v1664_v43, %v2098_v48  ;;  %v2111_v1 = vld [vmem:[%s2052_s24 + $0x2c] ss:$0 sps:$4 sm:$0x11]   ;;  %s1618_s20 = sshll.u32 %s2588_s19, 1 }
  0x20   : > { %554 = vrot.lane.b32.xlu1 %v533_v49, %s1987_s27  ;;  %v789_v61 = vsel %vm527_vm0, %v787_v17, %v788_v44  ;;  %v670_v63 = vrot.slane %v668_v47, 1  ;;  %v1742_v0 = vcombine.low %v1662_v53, %v1663_v56  ;;  %v654_v2 = vor.u32 %v653_v52, %v649_v51  ;;  %v1887_v5 = vld [vmem:[%s2052_s24 + $0x20] ss:$0 sps:$4 sm:$0x11]   ;;  %v226_v10 = vld [vmem:[%s2052_s24 + $0x18] sm:$0xf]  ;;  %s205_s22 = sadd.s32 %s1619_s21, %s1618_s20 }
  0x21   : > { %v402_v57 = vsel %vm390_vm1, %v397_v50, %v401_v37  ;;  %v409_v62 = vor.u32 %v408_v54, %v404_v42  ;;  %v658_v3 = vrot.slane %v656_v59, 1  ;;  %v919_v4 = vshll.u32 %v1743_v60, 16  ;;  %v2120_v13 = vld [vmem:[%s2052_s24 + $0x1c] sm:$0xf]  ;;  %v228_v21 = vld [vmem:[%s2052_s24 + $0x24] sm:$0xf] }
  0x22   : > { %487 = vrot.lane.b32.xlu0 %v402_v57, %s1988_s28  ;;  %v907_v8 = vshll.u32 %v1742_v0, 16  ;;  %v917_v9 = vshrl.u32 %v1743_v60, 16  ;;  %v924_v12 = vshll.u32 %v2111_v1, 16  ;;  %v671_v14 = vsel %vm390_vm1, %v666_v58, %v670_v63  ;;  %v2128_v17 = vld [vmem:[%s2052_s24 + $0x20] ss:$0 sps:$4 sm:$0x11]  }
  0x23   : > { %v414_v6 = vsel %vm390_vm1, %v409_v62, %v413_v55  ;;  %v921_v11 = vrot.slane %v919_v4, 1  ;;  %v905_v15 = vshrl.u32 %v1742_v0, 16  ;;  %v2125_v16 = vcombine.low %v226_v10, %v2120_v13  ;;  %v229_v22 = vld [vmem:[%s2052_s24 + $0x28] sm:$0xf]  ;;  %v1687_v37 = vld [vmem:[%s2052_s24 + $0x24] sm:$0xe] }
  0x24   : > { %810 = vrot.lane.b32.xlu1 %v789_v61, %s1986_s26  ;;  %v659_v18 = vsel %vm390_vm1, %v654_v2, %v658_v3  ;;  %v909_v19 = vrot.slane %v907_v8, 1  ;;  %v912_v20 = vshll.u32 %v1887_v5, 16  ;;  %v1758_v24 = vcombine.low %v1686_v7, %v1663_v56  ;;  %v1891_v33 = vld [vmem:[%s2052_s24 + $0x2c] ss:$0 sps:$4 sm:$0x11]   ;;  %s1620_s23 = sshll.u32 %s205_s22, 3 }
  0x25   : > { %v418_v25 = vshll.u32 %v2125_v16, 16  ;;  %v922_v26 = vor.u32 %v921_v11, %v917_v9  ;;  %v926_v27 = vrot.slane %v924_v12, 1  ;;  %v423_v28 = vshll.u32 %v2128_v17, 16  ;;  %v249_v42 = vld [vmem:[%s2052_s24 + $0x24] sm:$0xe]  ;;  %s2590_s12 = smov (!%p211_p7, %s1967_s12), 1 }
  0x26   : > { %489 = vrot.lane.b32.xlu0 %v414_v6, %s1988_s28  ;;  %v2136_v30 = vcombine.low %v228_v21, %v229_v22  ;;  %v416_v31 = vshrl.u32 %v2125_v16, 16  ;;  %v910_v34 = vor.u32 %v909_v19, %v905_v15  ;;  %v914_v35 = vrot.slane %v912_v20, 1  ;;  %v248_v47 = vld [vmem:[%s2052_s24 + $0x18] sm:$0xe]  ;;  %v1634_v51 = vld [vmem:[%s2052_s24 + $0x30] sm:$0xf] }
  0x27   : > { %v420_v32 = vrot.slane %v418_v25, 1  ;;  %v927_v38 = vsel %vm390_vm1, %v922_v26, %v926_v27  ;;  %v425_v39 = vrot.slane %v423_v28, 1  ;;  %v1040_v40 = vrot.slane %v1758_v24, 1  ;;  %v1635_v52 = vld [vmem:[%s2052_s24 + $0x34] sm:$0xf] }
  0x28   : > { %746 = vrot.lane.b32.xlu1 %v671_v14, %s1989_s29  ;;  %v430_v36 = vshll.u32 %v2136_v30, 16  ;;  %v1041_v41 = vrot.slane %v1887_v5, 1  ;;  %v428_v44 = vshrl.u32 %v2136_v30, 16  ;;  %v435_v46 = vshll.u32 %v1891_v33, 16  ;;  %v1632_v53 = vld [vmem:[%s2052_s24 + $0x24] sm:$0xf] }
  0x29   : > { %v421_v43 = vor.u32 %v420_v32, %v416_v31  ;;  %v1759_v49 = vcombine.low %v1687_v37, %v2098_v48  ;;  %v915_v50 = vsel %vm390_vm1, %v910_v34, %v914_v35  ;;  %v1633_v54 = vld [vmem:[%s2052_s24 + $0x28] sm:$0xf]  ;;  %v1713_v56 = vcombine.low %v249_v42, %v229_v22  ;;  %v1899_v9 = vld [vmem:[%s2052_s24 + $0x2c] ss:$0 sps:$4 sm:$0x11]  }
  0x2a   : > { %744 = vrot.lane.b32.xlu0 %v659_v18, %s1989_s29  ;;  %v432_v45 = vrot.slane %v430_v36, 1  ;;  %v1042_v55 = vsel %vm527_vm0, %v1040_v40, %v1041_v41  ;;  %v437_v59 = vrot.slane %v435_v46, 1  ;;  %v1721_v48 = vcombine.low %v1634_v51, %v1635_v52  ;;  %v1655_v10 = vld [vmem:[%s2052_s24 + $0x30] sm:$0xe]  ;;  %v1654_v11 = vld [vmem:[%s2052_s24 + $0x24] sm:$0xe] }
  0x2b   : > { %v426_v57 = vsel %vm390_vm1, %v421_v43, %v425_v39  ;;  %v1044_v61 = vrot.slane %v2111_v1, 1  ;;  %v1712_v62 = vcombine.low %v248_v47, %v2120_v13  ;;  %v1720_v63 = vcombine.low %v1632_v53, %v1633_v54  ;;  %v1668_v19 = vld [vmem:[%s2052_s24 + $0x3c] sm:$0xf]  ;;  %v2178_v20 = vld [vmem:[%s2052_s24 + $0x40] sm:$0xf] }
  0x2c   : > { %866 = vrot.lane.b32.xlu1 %v1743_v60, %s1990_s30  ;;  %v433_v58 = vor.u32 %v432_v45, %v428_v44  ;;  %v1043_v60 = vrot.slane %v1759_v49, 1  ;;  %v537_v3 = vrot.slane %v1713_v56, 1  ;;  %v538_v4 = vrot.slane %v1891_v33, 1  ;;  %v1666_v24 = vld [vmem:[%s2052_s24 + $0x30] sm:$0xf] }
  0x2d   : > { %v687_v5 = vshll.u32 %v1721_v48, 16  ;;  %v534_v6 = vrot.slane %v1712_v62, 1  ;;  %v535_v7 = vrot.slane %v2128_v17, 1  ;;  %v675_v8 = vshll.u32 %v1720_v63, 16  ;;  %v1667_v25 = vld [vmem:[%s2052_s24 + $0x34] sm:$0xf] }
  0x2e   : > { %864 = vrot.lane.b32.xlu0 %v1742_v0, %s1990_s30  ;;  %v2163_v0 = vld [vmem:[%s2052_s24 + $0x38] ss:$0 sps:$4 sm:$0x11]   ;;  %v438_v2 = vsel %vm390_vm1, %v433_v58, %v437_v59  ;;  %v1045_v1 = vsel %vm527_vm0, %v1043_v60, %v1044_v61  ;;  %v685_v12 = vshrl.u32 %v1721_v48, 16  ;;  %v539_v14 = vsel %vm527_vm0, %v537_v3, %v538_v4  ;;  %v230_v36 = vld [vmem:[%s2052_s24 + $0x30] sm:$0xf] }
  0x2f   : > { %v692_v13 = vshll.u32 %v2163_v0, 16  ;;  %v689_v15 = vrot.slane %v687_v5, 1  ;;  %v673_v18 = vshrl.u32 %v1720_v63, 16  ;;  %v536_v17 = vsel %vm527_vm0, %v534_v6, %v535_v7  ;;  %v2188_v37 = vld [vmem:[%s2052_s24 + $0x34] sm:$0xf] }
  0x30   : > { %1002 = vrot.lane.b32.xlu1 %v927_v38, %s1991_s4  ;;  %v677_v21 = vrot.slane %v675_v8, 1  ;;  %v680_v22 = vshll.u32 %v1899_v9, 16  ;;  %v1737_v26 = vcombine.low %v1655_v10, %v1635_v52  ;;  %v1736_v27 = vcombine.low %v1654_v11, %v1633_v54  ;;  %v2193_v43 = vld [vmem:[%s2052_s24 + $0x44] ss:$0 sps:$4 sm:$0x11]  }
  0x31   : > { %v1745_v28 = vcombine.low %v1668_v19, %v2178_v20  ;;  %v690_v31 = vor.u32 %v689_v15, %v685_v12  ;;  %v694_v32 = vrot.slane %v692_v13, 1  ;;  %v1744_v33 = vcombine.low %v1666_v24, %v1667_v25  ;;  %v1905_v46 = vld [vmem:[%s2052_s24 + $0x38] ss:$0 sps:$4 sm:$0x11]   ;;  %v233_v51 = vld [vmem:[%s2052_s24 + $0x40] sm:$0xf] }
  0x32   : > { %1000 = vrot.lane.b32.xlu0 %v915_v50, %s1991_s4  ;;  %v678_v34 = vor.u32 %v677_v21, %v673_v18  ;;  %v682_v35 = vrot.slane %v680_v22, 1  ;;  %v793_v38 = vrot.slane %v1737_v26, 1  ;;  %v794_v39 = vrot.slane %v2163_v0, 1  ;;  %v232_v50 = vld [vmem:[%s2052_s24 + $0x3c] sm:$0xf] }
  0x33   : > { %v790_v40 = vrot.slane %v1736_v27, 1  ;;  %v791_v41 = vrot.slane %v1899_v9, 1  ;;  %v943_v42 = vshll.u32 %v1745_v28, 16  ;;  %v695_v44 = vsel %vm390_vm1, %v690_v31, %v694_v32  ;;  %v1909_v6 = vld [vmem:[%s2052_s24 + $0x44] ss:$0 sps:$4 sm:$0x11]  }
  0x34   : > { %491 = vrot.lane.b32.xlu1 %v426_v57, %s1988_s28  ;;  %v931_v45 = vshll.u32 %v1744_v33, 16  ;;  %v2199_v47 = vcombine.low %v230_v36, %v2188_v37  ;;  %v683_v49 = vsel %vm390_vm1, %v678_v34, %v682_v35  ;;  %v941_v52 = vshrl.u32 %v1745_v28, 16  ;;  %v1688_v57 = vld [vmem:[%s2052_s24 + $0x30] sm:$0xe]  ;;  %v251_v21 = vld [vmem:[%s2052_s24 + $0x3c] sm:$0xe] }
  0x35   : > { %v945_v53 = vrot.slane %v943_v42, 1  ;;  %v948_v54 = vshll.u32 %v2193_v43, 16  ;;  %v795_v56 = vsel %vm527_vm0, %v793_v38, %v794_v39  ;;  %v2213_v59 = vcombine.low %v232_v50, %v233_v51  ;;  %v1639_v24 = vld [vmem:[%s2052_s24 + $0x4c] sm:$0xf]  ;;  %v1636_v26 = vld [vmem:[%s2052_s24 + $0x3c] sm:$0xf] }
  0x36   : > { %1064 = vrot.lane.b32.xlu0 %v1042_v55, %s1992_s5  ;;  %v2207_v55 = vld [vmem:[%s2052_s24 + $0x38] ss:$0 sps:$4 sm:$0x11]   ;;  %v442_v58 = vshll.u32 %v2199_v47, 16  ;;  %v929_v60 = vshrl.u32 %v1744_v33, 16  ;;  %v933_v61 = vrot.slane %v931_v45, 1  ;;  %v1760_v0 = vcombine.low %v1688_v57, %v1667_v25 }
  0x37   : > { %v936_v62 = vshll.u32 %v1905_v46, 16  ;;  %v950_v3 = vrot.slane %v948_v54, 1  ;;  %v447_v4 = vshll.u32 %v2207_v55, 16  ;;  %v440_v5 = vshrl.u32 %v2199_v47, 16  ;;  %v250_v25 = vld [vmem:[%s2052_s24 + $0x30] sm:$0xe] }
  0x38   : > { %493 = vrot.lane.b32.xlu1 %v438_v2, %s1988_s28  ;;  %v946_v2 = vor.u32 %v945_v53, %v941_v52  ;;  %v454_v7 = vshll.u32 %v2213_v59, 16  ;;  %v934_v8 = vor.u32 %v933_v61, %v929_v60  ;;  %v1046_v13 = vrot.slane %v1760_v0, 1  ;;  %v1637_v27 = vld [vmem:[%s2052_s24 + $0x40] sm:$0xf]  ;;  %v1657_v52 = vld [vmem:[%s2052_s24 + $0x48] sm:$0xe] }
  0x39   : > { %v938_v9 = vrot.slane %v936_v62, 1  ;;  %v449_v12 = vrot.slane %v447_v4, 1  ;;  %v452_v18 = vshrl.u32 %v2213_v59, 16  ;;  %v1715_v31 = vcombine.low %v251_v21, %v233_v51  ;;  %v2250_v51 = vld [vmem:[%s2052_s24 + $0x44] ss:$0 sps:$4 sm:$0x11]  }
  0x3a   : > { %1066 = vrot.lane.b32.xlu0 %v1045_v1, %s1992_s5  ;;  %v444_v1 = vrot.slane %v442_v58, 1  ;;  %v951_v11 = vsel %vm390_vm1, %v946_v2, %v950_v3  ;;  %v456_v19 = vrot.slane %v454_v7, 1  ;;  %v1050_v38 = vrot.slane %v2193_v43, 1  ;;  %v1672_v58 = vld [vmem:[%s2052_s24 + $0x54] sm:$0xf] }
  0x3b   : > { %v939_v22 = vsel %vm390_vm1, %v934_v8, %v938_v9  ;;  %v1714_v39 = vcombine.low %v250_v25, %v2188_v37  ;;  %v543_v42 = vrot.slane %v1715_v31, 1  ;;  %v541_v37 = vrot.slane %v2207_v55, 1  ;;  %v1656_v60 = vld [vmem:[%s2052_s24 + $0x3c] sm:$0xe]  ;;  %v1670_v0 = vld [vmem:[%s2052_s24 + $0x48] sm:$0xf] }
  0x3c   : > { %558 = vrot.lane.b32.xlu1 %v539_v14, %s1987_s27  ;;  %v1047_v14 = vrot.slane %v1905_v46, 1  ;;  %v445_v15 = vor.u32 %v444_v1, %v440_v5  ;;  %v2245_v46 = vld [vmem:[%s2052_s24 + $0x50] ss:$0 sps:$4 sm:$0x11]   ;;  %v2266_v2 = vld [vmem:[%s2052_s24 + $0x4c] sm:$0xf]  ;;  %v1739_v3 = vcombine.low %v1657_v52, %v1639_v24  ;;  %v1738_v5 = vcombine.low %v1656_v60, %v1637_v27 }
  0x3d   : > { %v716_v57 = vshll.u32 %v2245_v46, 16  ;;  %v2274_v9 = vcombine.low %v1670_v0, %v2266_v2  ;;  %v797_v21 = vrot.slane %v2250_v51, 1 }
  0x3e   : > { %556 = vrot.lane.b32.xlu0 %v536_v17, %s1987_s27  ;;  %v459_v17 = vshll.u32 %v1909_v6, 16  ;;  %v450_v32 = vsel %vm390_vm1, %v445_v15, %v449_v12  ;;  %v1048_v36 = vsel %vm527_vm0, %v1046_v13, %v1047_v14  ;;  %v1942_v12 = vld [vmem:[%s2572_s1 + $0x10] ss:$0 sps:$4 sm:$0x33]   ;;  %v799_v13 = vrot.slane %v1739_v3, 1 }
  0x3f   : > { %v800_v14 = vrot.slane %v2245_v46, 1  ;;  %1819 = vmatprep.subr.msk.bf16.mxu0 %vm1253_vm2, %v1942_v12  ;;  %v1255_v31 = vsel %vm1253_vm2, %v1942_v12, 0  ;;  %1820 = vmatprep.subr.msk.bf16.mxu1 %vm1253_vm2, %v1942_v12  ;;  %v1690_v46 = vld [vmem:[%s2052_s24 + $0x48] sm:$0xe]  ;;  %v253_v3 = vld [vmem:[%s2052_s24 + $0x54] sm:$0xe] }
  0x40   : > { %614 = vrot.lane.b32.xlu1 %v1721_v48, %s1985_s25  ;;  %v792_v48 = vsel %vm527_vm0, %v790_v40, %v791_v41  ;;  %v461_v34 = vrot.slane %v459_v17, 1  ;;  %v1722_v40 = vcombine.low %v1636_v26, %v1637_v27  ;;  %v796_v17 = vrot.slane %v1738_v5, 1  ;;  %v236_v27 = vld [vmem:[%s2052_s24 + $0x54] sm:$0xf]  ;;  %1792 = vmatpush3.bf16.msra.mxu0 %v1255_v31 }
  0x41   : > { %v955_v26 = vshll.u32 %v2274_v9, 16  ;;  %1816 = vmatpush3.bf16.msra.mxu1 %v1255_v31  ;;  %v1934_v31 = vld [vmem:[%s2052_s24 + $0x68] ss:$0 sps:$4 sm:$0x11]  }
  0x42   : > { %612 = vrot.lane.b32.xlu0 %v1720_v63, %s1985_s25  ;;  %v1689_v63 = vld [vmem:[%s2052_s24 + $0x3c] sm:$0xe]  ;;  %v699_v50 = vshll.u32 %v1722_v40, 16  ;;  %v697_v61 = vshrl.u32 %v1722_v40, 16 }
  0x43   : > { %v1761_v10 = vcombine.low %v1689_v63, %v2178_v20  ;;  %v1638_v20 = vld [vmem:[%s2052_s24 + $0x48] sm:$0xf]  ;;  %v704_v63 = vshll.u32 %v2250_v51, 16 }
  0x44   : > { %750 = vrot.lane.b32.xlu1 %v695_v44, %s1989_s29  ;;  %v1723_v35 = vcombine.low %v1638_v20, %v1639_v24  ;;  %v544_v44 = vrot.slane %v1909_v6, 1  ;;  %v701_v62 = vrot.slane %v699_v50, 1  ;;  %v718_v6 = vrot.slane %v716_v57, 1  ;;  %v1943_v24 = vld [vmem:[%s2572_s1 + $0x8] sm:$0xff]  }
  0x45   : > { %v706_v8 = vrot.slane %v704_v63, 1  ;;  %1793 = vmatprep.subr.bf16.mxu0 %v1943_v24  ;;  %1814 = vmatprep.subr.bf16.mxu1 %v1943_v24 }
  0x46   : > { %748 = vrot.lane.b32.xlu0 %v683_v49, %s1989_s29  ;;  %v711_v45 = vshll.u32 %v1723_v35, 16  ;;  %v540_v49 = vrot.slane %v1714_v39, 1  ;;  %v709_v53 = vshrl.u32 %v1723_v35, 16  ;;  %v545_v54 = vsel %vm527_vm0, %v543_v42, %v544_v44  ;;  %1794 = vmatpush3.bf16.msra.mxu0 %v1943_v24 }
  0x47   : > { %v702_v7 = vor.u32 %v701_v62, %v697_v61  ;;  %v953_v42 = vshrl.u32 %v2274_v9, 16  ;;  %v957_v44 = vrot.slane %v955_v26, 1  ;;  %1817 = vmatpush3.bf16.msra.mxu1 %v1943_v24 }
  0x48   : > { %814 = vrot.lane.b32.xlu1 %v795_v56, %s1986_s26  ;;  %v713_v56 = vrot.slane %v711_v45, 1  ;;  %v542_v55 = vsel %vm527_vm0, %v540_v49, %v541_v37 }
  0x49   : > { %v707_v25 = vsel %vm390_vm1, %v702_v7, %v706_v8  ;;  %v958_v57 = vor.u32 %v957_v44, %v953_v42  ;;  %v252_v7 = vld [vmem:[%s2052_s24 + $0x48] sm:$0xe]  ;;  %v1640_v8 = vld [vmem:[%s2052_s24 + $0x54] sm:$0xf]  ;;  %v740_v42 = vshll.u32 %v1934_v31, 16 }
  0x4a   : > { %812 = vrot.lane.b32.xlu0 %v792_v48, %s1986_s26  ;;  %v2259_v48 = vld [vmem:[%s2052_s24 + $0x58] sm:$0xf]  ;;  %v714_v1 = vor.u32 %v713_v56, %v709_v53  ;;  %v1927_v53 = vld [vmem:[%s2052_s24 + $0x5c] ss:$0 sps:$4 sm:$0x11]   ;;  %v1762_v56 = vcombine.low %v1690_v46, %v2266_v2 }
  0x4b   : > { %v2270_v4 = vcombine.low %v1672_v58, %v2259_v48  ;;  %v483_v2 = vshll.u32 %v1927_v53, 16  ;;  %v550_v26 = vrot.slane %v1927_v53, 1 }
  0x4c   : > { %870 = vrot.lane.b32.xlu1 %v1745_v28, %s1990_s30  ;;  %v1049_v28 = vrot.slane %v1761_v10, 1  ;;  %v234_v10 = vld [vmem:[%s2052_s24 + $0x48] sm:$0xf]  ;;  %v1052_v5 = vrot.slane %v1762_v56, 1 }
  0x4d   : > { %v967_v15 = vshll.u32 %v2270_v4, 16 }
  0x4e   : > { %868 = vrot.lane.b32.xlu0 %v1744_v33, %s1990_s30  ;;  %v457_v33 = vor.u32 %v456_v19, %v452_v18  ;;  %v1051_v43 = vsel %vm527_vm0, %v1049_v28, %v1050_v38  ;;  %v2287_v18 = vld [vmem:[%s2052_s24 + $0x5c] ss:$0 sps:$4 sm:$0x11]   ;;  %v719_v19 = vsel %vm390_vm1, %v714_v1, %v718_v6  ;;  %v2305_v28 = vld [vmem:[%s2052_s24 + $0x58] sm:$0xf] }
  0x4f   : > { %v2317_v39 = vcombine.low %v236_v27, %v2305_v28  ;;  %v1642_v1 = vld [vmem:[%s2052_s24 + $0x60] sm:$0xf]  ;;  %v1643_v6 = vld [vmem:[%s2052_s24 + $0x64] sm:$0xf]  ;;  %v1717_v12 = vcombine.low %v253_v3, %v2305_v28 }
  0x50   : > { %1006 = vrot.lane.b32.xlu1 %v951_v11, %s1991_s4  ;;  %v462_v41 = vsel %vm390_vm1, %v457_v33, %v461_v34  ;;  %v2278_v11 = vld [vmem:[%s2052_s24 + $0x4c] sm:$0xf]  ;;  %v969_v33 = vrot.slane %v967_v15, 1  ;;  %v972_v34 = vshll.u32 %v2287_v18, 16  ;;  %v485_v15 = vrot.slane %v483_v2, 1 }
  0x51   : > { %v2296_v20 = vcombine.low %v234_v10, %v2278_v11  ;;  %v476_v63 = vshrl.u32 %v2317_v39, 16  ;;  %v1641_v10 = vld [vmem:[%s2052_s24 + $0x58] sm:$0xf]  ;;  %v1940_v2 = vld [vmem:[%s2052_s24 + $0x74] ss:$0 sps:$4 sm:$0x11]  }
  0x52   : > { %1004 = vrot.lane.b32.xlu0 %v939_v22, %s1991_s4  ;;  %v2293_v22 = vld [vmem:[%s2052_s24 + $0x50] ss:$0 sps:$4 sm:$0x11]   ;;  %v974_v37 = vrot.slane %v972_v34, 1  ;;  %v1724_v24 = vcombine.low %v1640_v8, %v1641_v10 }
  0x53   : > { %v466_v38 = vshll.u32 %v2296_v20, 16  ;;  %v960_v45 = vshll.u32 %v2293_v22, 16  ;;  %v464_v51 = vshrl.u32 %v2296_v20, 16  ;;  %v1935_v34 = vld [vmem:[%s2052_s24 + $0x5c] ss:$0 sps:$4 sm:$0x11]  }
  0x54   : > { %495 = vrot.lane.b32.xlu1 %v450_v32, %s1988_s28  ;;  %v965_v32 = vshrl.u32 %v2270_v4, 16  ;;  %v721_v44 = vshrl.u32 %v1724_v24, 16 }
  0x55   : > { %v468_v52 = vrot.slane %v466_v38, 1  ;;  %v962_v58 = vrot.slane %v960_v45, 1  ;;  %v1659_v38 = vld [vmem:[%s2052_s24 + $0x60] sm:$0xe] }
  0x56   : > { %1068 = vrot.lane.b32.xlu0 %v1048_v36, %s1992_s5  ;;  %v801_v36 = vsel %vm527_vm0, %v799_v13, %v800_v14  ;;  %v970_v49 = vor.u32 %v969_v33, %v965_v32 }
  0x57   : > { %v469_v62 = vor.u32 %v468_v52, %v464_v51  ;;  %v1675_v51 = vld [vmem:[%s2052_s24 + $0x64] sm:$0xf]  ;;  %v1741_v52 = vcombine.low %v1659_v38, %v1643_v6 }
  0x58   : > { %497 = vrot.lane.b32.xlu1 %v462_v41, %s1988_s28  ;;  %v798_v41 = vsel %vm527_vm0, %v796_v17, %v797_v21  ;;  %v975_v60 = vsel %vm390_vm1, %v970_v49, %v974_v37  ;;  %v1056_v21 = vrot.slane %v2287_v18, 1  ;;  %v1677_v49 = vld [vmem:[%s2052_s24 + $0x70] sm:$0xf]  ;;  %v1658_v37 = vld [vmem:[%s2052_s24 + $0x54] sm:$0xe] }
  0x5a   : > { %1070 = vrot.lane.b32.xlu0 %v1051_v43, %s1992_s5  ;;  %v1691_v43 = vld [vmem:[%s2052_s24 + $0x54] sm:$0xe] }
  0x5c   : > { %562 = vrot.lane.b32.xlu1 %v545_v54, %s1987_s27  ;;  %v478_v54 = vshll.u32 %v2317_v39, 16 }
  0x5e   : > { %560 = vrot.lane.b32.xlu0 %v542_v55, %s1987_s27  ;;  %v1763_v55 = vcombine.low %v1691_v43, %v2259_v48  ;;  %v480_v0 = vrot.slane %v478_v54, 1  ;;  %v963_v48 = vsel %vm390_vm1, %v958_v57, %v962_v58  ;;  %v1676_v43 = vld [vmem:[%s2052_s24 + $0x6c] sm:$0xf]  ;;  %v742_v54 = vrot.slane %v740_v42, 1 }
  0x5f   : > { %v1749_v56 = vcombine.low %v1676_v43, %v1677_v49  ;;  %v1740_v57 = vcombine.low %v1658_v37, %v1641_v10  ;;  %v996_v10 = vshll.u32 %v1940_v2, 16 }
  0x60   : > { %618 = vrot.lane.b32.xlu1 %v1723_v35, %s1985_s25  ;;  %v2311_v35 = vld [vmem:[%s2052_s24 + $0x50] ss:$0 sps:$4 sm:$0x11]   ;;  %v481_v14 = vor.u32 %v480_v0, %v476_v63  ;;  %v806_v63 = vrot.slane %v1934_v31, 1 }
  0x61   : > { %v471_v50 = vshll.u32 %v2311_v35, 16  ;;  %v547_v18 = vrot.slane %v2311_v35, 1  ;;  %v728_v35 = vshll.u32 %v1935_v34, 16  ;;  %v991_v0 = vshll.u32 %v1749_v56, 16 }
  0x62   : > { %616 = vrot.lane.b32.xlu0 %v1722_v40, %s1985_s25  ;;  %v1944_v40 = vld [vmem:[%s2572_s1] sm:$0xff]   ;;  %v486_v27 = vsel %vm390_vm1, %v481_v14, %v485_v15 }
  0x63   : > { %1795 = vmatprep.subr.bf16.mxu0 %v1944_v40  ;;  %1815 = vmatprep.subr.bf16.mxu1 %v1944_v40  ;;  %v473_v61 = vrot.slane %v471_v50, 1  ;;  %v1674_v50 = vld [vmem:[%s2052_s24 + $0x60] sm:$0xf]  ;;  %v993_v8 = vrot.slane %v991_v0, 1 }
  0x64   : > { %754 = vrot.lane.b32.xlu1 %v719_v19, %s1989_s29  ;;  %1796 = vmatpush3.bf16.msra.mxu0 %v1944_v40  ;;  %v1725_v19 = vcombine.low %v1642_v1, %v1643_v6  ;;  %v1941_v1 = vld [vmem:[%s2052_s24 + $0x68] ss:$0 sps:$4 sm:$0x11]  }
  0x65   : > { %1818 = vmatpush3.bf16.msra.mxu1 %v1944_v40  ;;  %v474_v13 = vsel %vm390_vm1, %v469_v62, %v473_v61  ;;  %v805_v62 = vrot.slane %v1741_v52, 1  ;;  %v984_v15 = vshll.u32 %v1941_v1, 16  ;;  %v1059_v38 = vrot.slane %v1941_v1, 1 }
  0x66   : > { %752 = vrot.lane.b32.xlu0 %v707_v25, %s1989_s29  ;;  %v549_v25 = vrot.slane %v1717_v12, 1  ;;  %v735_v28 = vshll.u32 %v1725_v19, 16  ;;  %v733_v40 = vshrl.u32 %v1725_v19, 16  ;;  %v1693_v12 = vld [vmem:[%s2052_s24 + $0x6c] sm:$0xe] }
  0x67   : > { %v807_v6 = vsel %vm527_vm0, %v805_v62, %v806_v63 }
  0x68   : > { %818 = vrot.lane.b32.xlu1 %v801_v36, %s1986_s26  ;;  %v551_v36 = vsel %vm527_vm0, %v549_v25, %v550_v26  ;;  %v998_v25 = vrot.slane %v996_v10, 1 }
  0x6a   : > { %816 = vrot.lane.b32.xlu0 %v798_v41, %s1986_s26  ;;  %v737_v41 = vrot.slane %v735_v28, 1  ;;  %v986_v28 = vrot.slane %v984_v15, 1 }
  0x6c   : > { %874 = vrot.lane.b32.xlu1 %v2270_v4, %s1990_s30  ;;  %v1053_v4 = vrot.slane %v2293_v22, 1  ;;  %v1716_v22 = vcombine.low %v252_v7, %v2278_v11  ;;  %v723_v11 = vshll.u32 %v1724_v24, 16  ;;  %v738_v53 = vor.u32 %v737_v41, %v733_v40 }
  0x6d   : > { %v989_v7 = vshrl.u32 %v1749_v56, 16 }
  0x6e   : > { %872 = vrot.lane.b32.xlu0 %v2274_v9, %s1990_s30  ;;  %v1055_v9 = vrot.slane %v1763_v55, 1  ;;  %v1054_v17 = vsel %vm527_vm0, %v1052_v5, %v1053_v4  ;;  %v546_v33 = vrot.slane %v1716_v22, 1  ;;  %v725_v46 = vrot.slane %v723_v11, 1 }
  0x6f   : > { %v730_v55 = vrot.slane %v728_v35, 1  ;;  %v743_v61 = vsel %vm390_vm1, %v738_v53, %v742_v54  ;;  %v803_v5 = vrot.slane %v1935_v34, 1  ;;  %v1765_v22 = vcombine.low %v1693_v12, %v1677_v49 }
  0x70   : > { %1010 = vrot.lane.b32.xlu1 %v975_v60, %s1991_s4  ;;  %v1057_v32 = vsel %vm527_vm0, %v1055_v9, %v1056_v21  ;;  %v548_v45 = vsel %vm527_vm0, %v546_v33, %v547_v18  ;;  %v726_v58 = vor.u32 %v725_v46, %v721_v44  ;;  %v1748_v60 = vcombine.low %v1674_v50, %v1675_v51 }
  0x71   : > { %v1061_v33 = vrot.slane %v1765_v22, 1  ;;  %v1062_v18 = vrot.slane %v1940_v2, 1 }
  0x72   : > { %1008 = vrot.lane.b32.xlu0 %v963_v48, %s1991_s4  ;;  %v731_v3 = vsel %vm390_vm1, %v726_v58, %v730_v55  ;;  %v802_v48 = vrot.slane %v1740_v57, 1  ;;  %v979_v4 = vshll.u32 %v1748_v60, 16 }
  0x73   : > { %v1063_v40 = vsel %vm527_vm0, %v1061_v33, %v1062_v18 }
  0x74   : > { %499 = vrot.lane.b32.xlu1 %v474_v13, %s1988_s28  ;;  %v804_v9 = vsel %vm527_vm0, %v802_v48, %v803_v5  ;;  %v977_v13 = vshrl.u32 %v1748_v60, 16  ;;  %v981_v14 = vrot.slane %v979_v4, 1 }
  0x76   : > { %1072 = vrot.lane.b32.xlu0 %v1054_v17, %s1992_s5 }
  0x78   : > { %501 = vrot.lane.b32.xlu1 %v486_v27, %s1988_s28  ;;  %v982_v27 = vor.u32 %v981_v14, %v977_v13 }
  0x7a   : > { %1074 = vrot.lane.b32.xlu0 %v1057_v32, %s1992_s5  ;;  %v987_v34 = vsel %vm390_vm1, %v982_v27, %v986_v28 }
  0x7c   : > { %566 = vrot.lane.b32.xlu1 %v551_v36, %s1987_s27 }
  0x7e   : > { %564 = vrot.lane.b32.xlu0 %v548_v45, %s1987_s27  ;;  %s1621_s27 = sshll.u32 %s2586_s13, 1 }
  0x7f   : > { %s214_s28 = sadd.s32 %s1621_s27, %s2590_s12 }
  0x80   : > { %622 = vrot.lane.b32.xlu1 %v1725_v19, %s1985_s25  ;;  %v1692_v19 = vld [vmem:[%s2052_s24 + $0x60] sm:$0xe] }
  0x81   : > { %v1764_v26 = vcombine.low %v1692_v19, %v1675_v51 }
  0x82   : > { %620 = vrot.lane.b32.xlu0 %v1724_v24, %s1985_s25  ;;  %v994_v24 = vor.u32 %v993_v8, %v989_v7 }
  0x83   : > { %v1058_v36 = vrot.slane %v1764_v26, 1 }
  0x84   : > { %758 = vrot.lane.b32.xlu1 %v743_v61, %s1989_s29  ;;  %v999_v32 = vsel %vm390_vm1, %v994_v24, %v998_v25 }
  0x85   : > { %v1060_v42 = vsel %vm527_vm0, %v1058_v36, %v1059_v38 }
  0x86   : > { %756 = vrot.lane.b32.xlu0 %v731_v3, %s1989_s29  ;;  %s1622_s29 = sshll.u32 %s214_s28, 1 }
  0x88   : > { %822 = vrot.lane.b32.xlu1 %v807_v6, %s1986_s26  ;;  %v611_v17 = vpop.permute.xlu1 %610 }
  0x89   : > { %v609_v21 = vpop.permute.xlu0 %608 }
  0x8a   : > { %820 = vrot.lane.b32.xlu0 %v804_v9, %s1986_s26  ;;  %s2484_s26 = scalar_lea.vmem %s2573_s2, %s1620_s23 }
  0x8c   : > { %878 = vrot.lane.b32.xlu1 %v1749_v56, %s1990_s30 }
  0x8d   : > { %v809_v31 = vpop.permute.xlu0 %808 }
  0x8e   : > { %876 = vrot.lane.b32.xlu0 %v1748_v60, %s1990_s30  ;;  %v553_v11 = vpop.permute.xlu1 %552 }
  0x90   : > { %1014 = vrot.lane.b32.xlu1 %v999_v32, %s1991_s4 }
  0x92   : > { %1012 = vrot.lane.b32.xlu0 %v987_v34, %s1991_s4  ;;  %v555_v41 = vpop.permute.xlu1 %554 }
  0x94   : > { %v488_v44 = vpop.permute.xlu0 %487  ;;  %1078 = vrot.lane.b32.xlu1 %v1063_v40, %s1992_s5 }
  0x95   : > { %v1082_v43 = vsel %vm1080_vm3, %v2080_v23, %v488_v44 }
  0x96   : > { %1076 = vrot.lane.b32.xlu0 %v1060_v42, %s1992_s5  ;;  %v811_v45 = vpop.permute.xlu1 %810  ;;  %v1099_v50 = vsel %vm1097_vm4, %v1082_v43, %v553_v11  ;;  %s216_s5 = scalar_lea.vmem %s2574_s3, %s1622_s29 }
  0x97   : > { %v1116_v54 = vsel %vm1114_vm5, %v1099_v50, %v609_v21 }
  0x98   : > { %v490_v46 = vpop.permute.xlu0 %489 }
  0x99   : > { %v1084_v37 = vsel %vm1080_vm3, %v2085_v29, %v490_v46 }
  0x9a   : > { %v747_v35 = vpop.permute.xlu1 %746  ;;  %v1101_v53 = vsel %vm1097_vm4, %v1084_v37, %v555_v41 }
  0x9b   : > { %v1118_v23 = vsel %vm1114_vm5, %v1101_v53, %v611_v17 }
  0x9c   : > { %v745_v49 = vpop.permute.xlu0 %744  ;;  %v1135_v55 = vsel %vm1131_vm6, %v1118_v23, %v747_v35 }
  0x9d   : > { %v1133_v56 = vsel %vm1131_vm6, %v1116_v54, %v745_v49  ;;  %v1152_v2 = vsel %vm1148_vm7, %v1135_v55, %v811_v45 }
  0x9e   : > { %v867_v51 = vpop.permute.xlu1 %866  ;;  %v1150_v29 = vsel %vm1148_vm7, %v1133_v56, %v809_v31 }
  0x9f   : > { %v1169_v3 = vsel %vm1165_vm8, %v1152_v2, %v867_v51 }
  0xa0   : > { %v865_v52 = vpop.permute.xlu0 %864 }
  0xa1   : > { %v1167_v60 = vsel %vm1165_vm8, %v1150_v29, %v865_v52 }
  0xa2   : > { %v1003_v57 = vpop.permute.xlu1 %1002 }
  0xa3   : > { %v1186_v5 = vsel %vm1182_vm9, %v1169_v3, %v1003_v57 }
  0xa4   : > { %v1001_v58 = vpop.permute.xlu0 %1000 }
  0xa5   : > { %v1184_v62 = vsel %vm1182_vm9, %v1167_v60, %v1001_v58 }
  0xa6   : > { %v492_v61 = vpop.permute.xlu1 %491 }
  0xa7   : > { %v1086_v17 = vsel %vm1080_vm3, %v2125_v16, %v492_v61 }
  0xa8   : > { %v1065_v63 = vpop.permute.xlu0 %1064 }
  0xa9   : > { %v1201_v0 = vsel %vm1199_vm10, %v1184_v62, %v1065_v63 }
  0xaa   : > { %1797 = vmatprep.mubr.msk.bf16.mxu0 %vm1236_vm11, %v1201_v0  ;;  %v494_v48 = vpop.permute.xlu1 %493 }
  0xab   : > { %v1088_v27 = vsel %vm1080_vm3, %v2136_v30, %v494_v48 }
  0xac   : > { %v1067_v4 = vpop.permute.xlu0 %1066 }
  0xad   : > { %v1203_v1 = vsel %vm1199_vm10, %v1186_v5, %v1067_v4 }
  0xae   : > { %1798 = vmatmul.mubr.msk.bf16.vlgmr.msra.gmra.mxu0 %vm1236_vm11, %v1203_v1  ;;  %v559_v6 = vpop.permute.xlu1 %558 }
  0xaf   : > { %v1105_v31 = vsel %vm1097_vm4, %v1088_v27, %v559_v6 }
  0xb0   : > { %v557_v7 = vpop.permute.xlu0 %556 }
  0xb1   : > { %v1103_v21 = vsel %vm1097_vm4, %v1086_v17, %v557_v7 }
  0xb2   : > { %v615_v8 = vpop.permute.xlu1 %614 }
  0xb3   : > { %v1122_v16 = vsel %vm1114_vm5, %v1105_v31, %v615_v8 }
  0xb4   : > { %v613_v10 = vpop.permute.xlu0 %612 }
  0xb5   : > { %v1120_v24 = vsel %vm1114_vm5, %v1103_v21, %v613_v10 }
  0xb6   : > { %v751_v9 = vpop.permute.xlu1 %750 }
  0xb7   : > { %v1139_v34 = vsel %vm1131_vm6, %v1122_v16, %v751_v9 }
  0xb8   : > { %v749_v12 = vpop.permute.xlu0 %748 }
  0xb9   : > { %v1137_v26 = vsel %vm1131_vm6, %v1120_v24, %v749_v12 }
  0xba   : > { %v815_v13 = vpop.permute.xlu1 %814 }
  0xbb   : > { %v1156_v38 = vsel %vm1148_vm7, %v1139_v34, %v815_v13 }
  0xbc   : > { %v813_v14 = vpop.permute.xlu0 %812 }
  0xbd   : > { %v1154_v28 = vsel %vm1148_vm7, %v1137_v26, %v813_v14 }
  0xbe   : > { %v871_v15 = vpop.permute.xlu1 %870 }
  0xbf   : > { %v1173_v30 = vsel %vm1165_vm8, %v1156_v38, %v871_v15 }
  0xc0   : > { %v869_v19 = vpop.permute.xlu0 %868 }
  0xc1   : > { %v1171_v32 = vsel %vm1165_vm8, %v1154_v28, %v869_v19 }
  0xc2   : > { %v1007_v22 = vpop.permute.xlu1 %1006 }
  0xc3   : > { %v1190_v41 = vsel %vm1182_vm9, %v1173_v30, %v1007_v22 }
  0xc4   : > { %v1005_v25 = vpop.permute.xlu0 %1004 }
  0xc5   : > { %v1188_v18 = vsel %vm1182_vm9, %v1171_v32, %v1005_v25 }
  0xc6   : > { %v496_v33 = vpop.permute.xlu1 %495 }
  0xc7   : > { %v1090_v54 = vsel %vm1080_vm3, %v2199_v47, %v496_v33 }
  0xc8   : > { %v1069_v11 = vpop.permute.xlu0 %1068 }
  0xc9   : > { %v1205_v36 = vsel %vm1199_vm10, %v1188_v18, %v1069_v11 }
  0xca   : > { %1801 = vmatprep.mubr.msk.bf16.mxu0 %vm1236_vm11, %v1205_v36  ;;  %v498_v40 = vpop.permute.xlu1 %497 }
  0xcb   : > { %v1092_v55 = vsel %vm1080_vm3, %v2213_v59, %v498_v40 }
  0xcc   : > { %v1071_v42 = vpop.permute.xlu0 %1070 }
  0xcd   : > { %v1207_v44 = vsel %vm1199_vm10, %v1190_v41, %v1071_v42 }
  0xce   : > { %1802 = vmatmul.mubr.msk.bf16.gmra.mxu0 %vm1236_vm11, %v1207_v44  ;;  %v563_v45 = vpop.permute.xlu1 %562 }
  0xcf   : > { %v1109_v61 = vsel %vm1097_vm4, %v1092_v55, %v563_v45 }
  0xd0   : > { %v561_v46 = vpop.permute.xlu0 %560 }
  0xd1   : > { %v1107_v56 = vsel %vm1097_vm4, %v1090_v54, %v561_v46 }
  0xd2   : > { %v619_v35 = vpop.permute.xlu1 %618 }
  0xd3   : > { %v1126_v47 = vsel %vm1114_vm5, %v1109_v61, %v619_v35 }
  0xd4   : > { %v617_v43 = vpop.permute.xlu0 %616 }
  0xd5   : > { %v1124_v23 = vsel %vm1114_vm5, %v1107_v56, %v617_v43 }
  0xd6   : > { %v755_v49 = vpop.permute.xlu1 %754 }
  0xd7   : > { %v1143_v3 = vsel %vm1131_vm6, %v1126_v47, %v755_v49 }
  0xd8   : > { %v753_v37 = vpop.permute.xlu0 %752 }
  0xd9   : > { %v1141_v29 = vsel %vm1131_vm6, %v1124_v23, %v753_v37 }
  0xda   : > { %v819_v50 = vpop.permute.xlu1 %818 }
  0xdb   : > { %v1160_v5 = vsel %vm1148_vm7, %v1143_v3, %v819_v50 }
  0xdc   : > { %v817_v51 = vpop.permute.xlu0 %816 }
  0xdd   : > { %v1158_v60 = vsel %vm1148_vm7, %v1141_v29, %v817_v51 }
  0xde   : > { %v875_v52 = vpop.permute.xlu1 %874 }
  0xdf   : > { %v1177_v59 = vsel %vm1165_vm8, %v1160_v5, %v875_v52 }
  0xe0   : > { %v873_v53 = vpop.permute.xlu0 %872 }
  0xe1   : > { %v1175_v62 = vsel %vm1165_vm8, %v1158_v60, %v873_v53 }
  0xe2   : > { %v1011_v57 = vpop.permute.xlu1 %1010 }
  0xe3   : > { %v1194_v1 = vsel %vm1182_vm9, %v1177_v59, %v1011_v57 }
  0xe4   : > { %v1009_v58 = vpop.permute.xlu0 %1008 }
  0xe5   : > { %v1192_v0 = vsel %vm1182_vm9, %v1175_v62, %v1009_v58 }
  0xe6   : > { %v500_v63 = vpop.permute.xlu1 %499 }
  0xe7   : > { %v1094_v24 = vsel %vm1080_vm3, %v2296_v20, %v500_v63 }
  0xe8   : > { %v1073_v2 = vpop.permute.xlu0 %1072 }
  0xe9   : > { %v1209_v48 = vsel %vm1199_vm10, %v1192_v0, %v1073_v2 }
  0xea   : > { %1805 = vmatprep.mubr.msk.bf16.mxu1 %vm1236_vm11, %v1209_v48  ;;  %v502_v4 = vpop.permute.xlu1 %501 }
  0xeb   : > { %v1096_v22 = vsel %vm1080_vm3, %v2317_v39, %v502_v4 }
  0xec   : > { %v1075_v6 = vpop.permute.xlu0 %1074 }
  0xed   : > { %v1211_v7 = vsel %vm1199_vm10, %v1194_v1, %v1075_v6 }
  0xee   : > { %1806 = vmatmul.mubr.msk.bf16.vlgmr.msra.gmra.mxu1 %vm1236_vm11, %v1211_v7  ;;  %v567_v8 = vpop.permute.xlu1 %566 }
  0xef   : > { %v1113_v25 = vsel %vm1097_vm4, %v1096_v22, %v567_v8 }
  0xf0   : > { %v565_v10 = vpop.permute.xlu0 %564 }
  0xf1   : > { %v1111_v26 = vsel %vm1097_vm4, %v1094_v24, %v565_v10 }
  0xf2   : > { %v623_v9 = vpop.permute.xlu1 %622 }
  0xf3   : > { %v1130_v27 = vsel %vm1114_vm5, %v1113_v25, %v623_v9 }
  0xf4   : > { %v621_v12 = vpop.permute.xlu0 %620 }
  0xf5   : > { %v1128_v31 = vsel %vm1114_vm5, %v1111_v26, %v621_v12 }
  0xf6   : > { %v759_v13 = vpop.permute.xlu1 %758 }
  0xf7   : > { %v1147_v32 = vsel %vm1131_vm6, %v1130_v27, %v759_v13 }
  0xf8   : > { %v757_v14 = vpop.permute.xlu0 %756 }
  0xf9   : > { %v1145_v16 = vsel %vm1131_vm6, %v1128_v31, %v757_v14 }
  0xfa   : > { %v823_v15 = vpop.permute.xlu1 %822 }
  0xfb   : > { %v1164_v39 = vsel %vm1148_vm7, %v1147_v32, %v823_v15 }
  0xfc   : > { %v821_v19 = vpop.permute.xlu0 %820 }
  0xfd   : > { %v1162_v20 = vsel %vm1148_vm7, %v1145_v16, %v821_v19 }
  0xfe   : > { %v879_v17 = vpop.permute.xlu1 %878 }
  0xff   : > { %v1181_v18 = vsel %vm1165_vm8, %v1164_v39, %v879_v17 }
 0x100   : > { %v877_v21 = vpop.permute.xlu0 %876 }
 0x101   : > { %v1179_v11 = vsel %vm1165_vm8, %v1162_v20, %v877_v21 }
 0x102   : > { %v1015_v28 = vpop.permute.xlu1 %1014 }
 0x103   : > { %v1198_v34 = vsel %vm1182_vm9, %v1181_v18, %v1015_v28 }
 0x104   : > { %v1013_v33 = vpop.permute.xlu0 %1012 }
 0x105   : > { %v1196_v38 = vsel %vm1182_vm9, %v1179_v11, %v1013_v33 }
 0x106   : > { %v1079_v36 = vpop.permute.xlu1 %1078 }
 0x107   : > { %v1215_v30 = vsel %vm1199_vm10, %v1198_v34, %v1079_v36 }
 0x108   : > { %v1077_v40 = vpop.permute.xlu0 %1076 }
 0x109   : > { %v1213_v41 = vsel %vm1199_vm10, %v1196_v38, %v1077_v40 }
 0x10a   : > { %1809 = vmatprep.mubr.msk.bf16.mxu1 %vm1236_vm11, %v1213_v41 }
 0x10b   : > { %1810 = vmatmul.mubr.msk.bf16.gmra.mxu1 %vm1236_vm11, %v1215_v30 }
 0x16e   : > { %v1799_v42 = vpop.f32.mrf.mxu0 }
 0x16f   : > { %1356 = vst.msk [vmem:[%s2484_s26 + $0x10] sm:$0xff] %vm1097_vm4, %v1799_v42  ;;  %v1409_v43 = vmul.f32 %v1799_v42, %v1799_v42  ;;  %v1373_v52 = vsel %vm1097_vm4, %v1799_v42, 0.0 }
 0x170   : > { %v1291_v44 = vpop.f32.mrf.mxu0 }
 0x171   : > { %1354 = vst.msk [vmem:[%s2484_s26] sm:$0xff] %vm1097_vm4, %v1291_v44  ;;  %v1407_v46 = vmul.f32 %v1291_v44, %v1291_v44  ;;  %v1370_v49 = vsel %vm1097_vm4, %v1291_v44, 0.0  ;;  %v1426_v58 = vsel %vm1097_vm4, %v1409_v43, 0.0 }
 0x172   : > { %v1800_v45 = vpop.f32.mrf.mxu0 }
 0x173   : > { %1357 = vst.msk [vmem:[%s2484_s26 + $0x18] sm:$0xff] %vm1097_vm4, %v1800_v45  ;;  %v1423_v53 = vsel %vm1097_vm4, %v1407_v46, 0.0  ;;  %v1410_v54 = vmul.f32 %v1800_v45, %v1800_v45  ;;  %v1375_v29 = vsel %vm1097_vm4, %v1800_v45, 0.0 }
 0x174   : > { %v1294_v35 = vpop.f32.mrf.mxu0 }
 0x175   : > { %1355 = vst.msk [vmem:[%s2484_s26 + $0x8] sm:$0xff] %vm1097_vm4, %v1294_v35  ;;  %v1371_v37 = vsel %vm1097_vm4, %v1294_v35, 0.0  ;;  %v1408_v50 = vmul.f32 %v1294_v35, %v1294_v35  ;;  %v1428_v61 = vsel %vm1097_vm4, %v1410_v54, 0.0 }
 0x176   : > { %v1372_v51 = vadd.f32 %v1371_v37, %v1370_v49 }
 0x177   : > { %v1424_v56 = vsel %vm1097_vm4, %v1408_v50, 0.0 }
 0x178   : > { %v1374_v57 = vadd.f32 %v1373_v52, %v1372_v51  ;;  %v1425_v23 = vadd.f32 %v1424_v56, %v1423_v53 }
 0x17a   : > { %v1427_v55 = vadd.f32 %v1426_v58, %v1425_v23  ;;  %v1376_v60 = vadd.f32 %v1375_v29, %v1374_v57 }
 0x17c   : > { %v1429_v62 = vadd.f32 %v1428_v61, %v1427_v55 }
 0x18e   : > { %v1803_v63 = vpop.f32.mrf.mxu0 }
 0x18f   : > { %1360 = vst.msk [vmem:[%s2484_s26 + $0x30] sm:$0xff] %vm1097_vm4, %v1803_v63  ;;  %v1413_v14 = vmul.f32 %v1803_v63, %v1803_v63  ;;  %v1381_v19 = vsel %vm1097_vm4, %v1803_v63, 0.0 }
 0x190   : > { %v1307_v47 = vpop.f32.mrf.mxu0 }
 0x191   : > { %1358 = vst.msk [vmem:[%s2484_s26 + $0x20] sm:$0xff] %vm1097_vm4, %v1307_v47  ;;  %v1411_v59 = vmul.f32 %v1307_v47, %v1307_v47  ;;  %v1377_v1 = vsel %vm1097_vm4, %v1307_v47, 0.0  ;;  %v1434_v21 = vsel %vm1097_vm4, %v1413_v14, 0.0 }
 0x192   : > { %v1804_v0 = vpop.f32.mrf.mxu0  ;;  %v1378_v10 = vadd.f32 %v1377_v1, %v1376_v60 }
 0x193   : > { %1361 = vst.msk [vmem:[%s2484_s26 + $0x38] sm:$0xff] %vm1097_vm4, %v1804_v0  ;;  %v1430_v7 = vsel %vm1097_vm4, %v1411_v59, 0.0  ;;  %v1414_v22 = vmul.f32 %v1804_v0, %v1804_v0  ;;  %v1383_v26 = vsel %vm1097_vm4, %v1804_v0, 0.0 }
 0x194   : > { %v1310_v2 = vpop.f32.mrf.mxu0  ;;  %v1431_v12 = vadd.f32 %v1430_v7, %v1429_v62 }
 0x195   : > { %1359 = vst.msk [vmem:[%s2484_s26 + $0x28] sm:$0xff] %vm1097_vm4, %v1310_v2  ;;  %v1412_v6 = vmul.f32 %v1310_v2, %v1310_v2  ;;  %v1379_v8 = vsel %vm1097_vm4, %v1310_v2, 0.0  ;;  %v1436_v32 = vsel %vm1097_vm4, %v1414_v22, 0.0 }
 0x196   : > { %v1380_v13 = vadd.f32 %v1379_v8, %v1378_v10 }
 0x197   : > { %v1432_v9 = vsel %vm1097_vm4, %v1412_v6, 0.0 }
 0x198   : > { %v1433_v15 = vadd.f32 %v1432_v9, %v1431_v12  ;;  %v1382_v17 = vadd.f32 %v1381_v19, %v1380_v13 }
 0x19a   : > { %v1435_v25 = vadd.f32 %v1434_v21, %v1433_v15  ;;  %v1384_v31 = vadd.f32 %v1383_v26, %v1382_v17 }
 0x19c   : > { %v1437_v20 = vadd.f32 %v1436_v32, %v1435_v25 }
 0x1ae   : > { %v1807_v3 = vpop.f32.mrf.mxu1 }
 0x1af   : > { %1364 = vst.msk [vmem:[%s2484_s26 + $0x50] sm:$0xff] %vm1097_vm4, %v1807_v3  ;;  %v1417_v36 = vmul.f32 %v1807_v3, %v1807_v3  ;;  %v1389_v30 = vsel %vm1097_vm4, %v1807_v3, 0.0 }
 0x1b0   : > { %v1323_v48 = vpop.f32.mrf.mxu1 }
 0x1b1   : > { %1362 = vst.msk [vmem:[%s2484_s26 + $0x40] sm:$0xff] %vm1097_vm4, %v1323_v48  ;;  %v1415_v24 = vmul.f32 %v1323_v48, %v1323_v48  ;;  %v1385_v27 = vsel %vm1097_vm4, %v1323_v48, 0.0  ;;  %v1442_v42 = vsel %vm1097_vm4, %v1417_v36, 0.0 }
 0x1b2   : > { %v1808_v5 = vpop.f32.mrf.mxu1  ;;  %v1386_v39 = vadd.f32 %v1385_v27, %v1384_v31 }
 0x1b3   : > { %1365 = vst.msk [vmem:[%s2484_s26 + $0x58] sm:$0xff] %vm1097_vm4, %v1808_v5  ;;  %v1438_v33 = vsel %vm1097_vm4, %v1415_v24, 0.0  ;;  %v1418_v44 = vmul.f32 %v1808_v5, %v1808_v5  ;;  %v1391_v35 = vsel %vm1097_vm4, %v1808_v5, 0.0 }
 0x1b4   : > { %v1326_v4 = vpop.f32.mrf.mxu1  ;;  %v1439_v11 = vadd.f32 %v1438_v33, %v1437_v20 }
 0x1b5   : > { %1363 = vst.msk [vmem:[%s2484_s26 + $0x48] sm:$0xff] %vm1097_vm4, %v1326_v4  ;;  %v1416_v28 = vmul.f32 %v1326_v4, %v1326_v4  ;;  %v1387_v16 = vsel %vm1097_vm4, %v1326_v4, 0.0  ;;  %v1444_v51 = vsel %vm1097_vm4, %v1418_v44, 0.0 }
 0x1b6   : > { %v1388_v34 = vadd.f32 %v1387_v16, %v1386_v39 }
 0x1b7   : > { %v1440_v18 = vsel %vm1097_vm4, %v1416_v28, 0.0 }
 0x1b8   : > { %v1441_v38 = vadd.f32 %v1440_v18, %v1439_v11  ;;  %v1390_v40 = vadd.f32 %v1389_v30, %v1388_v34 }
 0x1ba   : > { %v1443_v45 = vadd.f32 %v1442_v42, %v1441_v38  ;;  %v1392_v37 = vadd.f32 %v1391_v35, %v1390_v40 }
 0x1bc   : > { %v1445_v54 = vadd.f32 %v1444_v51, %v1443_v45 }
 0x1cb   : > { %v1811_v41 = vpop.f32.mrf.mxu1 }
 0x1cc   : > { %1368 = vst.msk [vmem:[%s2484_s26 + $0x70] sm:$0xff] %vm1097_vm4, %v1811_v41  ;;  %v1421_v57 = vmul.f32 %v1811_v41, %v1811_v41  ;;  %v1397_v60 = vsel %vm1097_vm4, %v1811_v41, 0.0 }
 0x1cd   : > { %v1339_v46 = vpop.f32.mrf.mxu1 }
 0x1ce   : > { %1366 = vst.msk [vmem:[%s2484_s26 + $0x60] sm:$0xff] %vm1097_vm4, %v1339_v46  ;;  %v1393_v43 = vsel %vm1097_vm4, %v1339_v46, 0.0  ;;  %v1419_v49 = vmul.f32 %v1339_v46, %v1339_v46  ;;  %v1450_v0 = vsel %vm1097_vm4, %v1421_v57, 0.0 }
 0x1cf   : > { %v1812_v50 = vpop.f32.mrf.mxu1  ;;  %v1394_v53 = vadd.f32 %v1393_v43, %v1392_v37 }
 0x1d0   : > { %v1446_v52 = vsel %vm1097_vm4, %v1419_v49, 0.0  ;;  %1369 = vst.msk [vmem:[%s2484_s26 + $0x78] sm:$0xff] %vm1097_vm4, %v1812_v50  ;;  %v1422_v61 = vmul.f32 %v1812_v50, %v1812_v50  ;;  %v1399_v2 = vsel %vm1097_vm4, %v1812_v50, 0.0 }
 0x1d1   : > { %v1342_v56 = vpop.f32.mrf.mxu1  ;;  %v1447_v29 = vadd.f32 %v1446_v52, %v1445_v54 }
 0x1d2   : > { %1367 = vst.msk [vmem:[%s2484_s26 + $0x68] sm:$0xff] %vm1097_vm4, %v1342_v56  ;;  %v1395_v23 = vsel %vm1097_vm4, %v1342_v56, 0.0  ;;  %v1420_v58 = vmul.f32 %v1342_v56, %v1342_v56  ;;  %v1452_v5 = vsel %vm1097_vm4, %v1422_v61, 0.0 }
 0x1d3   : > { %v1396_v55 = vadd.f32 %v1395_v23, %v1394_v53 }
 0x1d4   : > { %v1448_v62 = vsel %vm1097_vm4, %v1420_v58, 0.0 }
 0x1d5   : > { %v1398_v63 = vadd.f32 %v1397_v60, %v1396_v55  ;;  %v1449_v47 = vadd.f32 %v1448_v62, %v1447_v29 }
 0x1d7   : > { %v1400_v3 = vadd.f32 %v1399_v2, %v1398_v63  ;;  %v1451_v48 = vadd.f32 %v1450_v0, %v1449_v47 }
 0x1d9   : > { %v1401_v59 = vrot.slane %v1400_v3, 4  ;;  %v1453_v4 = vadd.f32 %v1452_v5, %v1451_v48 }
 0x1db   : > { %v1402_v1 = vadd.f32 %v1401_v59, %v1400_v3  ;;  %v1454_v6 = vrot.slane %v1453_v4, 4 }
 0x1dd   : > { %v1403_v7 = vrot.slane %v1402_v1, 2  ;;  %v1455_v8 = vadd.f32 %v1454_v6, %v1453_v4 }
 0x1df   : > { %v1404_v10 = vadd.f32 %v1403_v7, %v1402_v1  ;;  %v1456_v9 = vrot.slane %v1455_v8, 2 }
 0x1e1   : > { %v1405_v12 = vrot.slane %v1404_v10, 1  ;;  %v1457_v13 = vadd.f32 %v1456_v9, %v1455_v8 }
 0x1e3   : > { %v1458_v14 = vrot.slane %v1457_v13, 1  ;;  %v1406_v15 = vadd.f32 %v1405_v12, %v1404_v10 }
 0x1e5   : > { %v1459_v19 = vadd.f32 %v1458_v14, %v1457_v13 }
 0x1e7   : > { %v1461_v17 = vsel %vm1460_vm12, %v1406_v15, %v1459_v19 }
 0x1e8   : > { %1463 = vst.msk [vmem:[%s216_s5] sm:$0x3] %vm1462_vm13, %v1461_v17 }
 0x1e9 PF: > { %s14_s16 = sadd.s32 1, %s1983_s16   ;;  %s2575_s12 = smov %s1975_s14 }
 0x1ea   : > { %p11_p8 = scmp.ge.s32.totalorder %s14_s16, 6   ;;  %s2576_s13 = smov %s1979_s15 }
 0x1eb   : > { %s2577_s14 = smov %s2580_s17  ;;  %s2578_s15 = smov %s2584_s18 }
 0x1ec   :  { %13 = sbr.rel (!%p11_p8) target bundleno = 3 (0x3), region = 73 }

// kernel: basic_block_forward.10
= control target key start
LH: loop header
LB: loop body
LE: loop exit
PB: predicated region body
PF: predicated region fallthrough
CT: control target
= control target key end

     0   :  { %s422_s12 = smov 0   ;;  %s613_s0 = inlined_call_operand.vmem [shape: f32[512,8], index: 0, kind: input, shape index: {}]   ;;  %s614_s1 = inlined_call_operand.vmem [shape: f32[1,8], index: 1, kind: input, shape index: {}]   ;;  %s615_s2 = inlined_call_operand.vmem [shape: f32[1,8], index: 2, kind: input, shape index: {}]   ;;  %s616_s3 = inlined_call_operand.vmem [shape: f32[512,8], index: 3, kind: output, shape index: {}]  }
   0x1 LB: > { %s373_s13 = sadd.s32 4294967295, %s400_s12   ;;  %p377_p0 = scmp.ge.s32.totalorder %s400_s12, 1  ;;  %s400_s12 = sphi %s422_s12, %s13_s12  }
   0x2   : > { %p138_p1 = scmp.lt.s32.totalorder %s400_s12, 3 }
   0x4   : > { %p139_p2 = pnand %p377_p0, %p138_p1 }
   0x5   : > { %s378_s14 = sshll.u32 (!%p139_p2), %s373_s13, 5 }
   0x6   : > { %142 = sbr.rel (%p139_p2) target bundleno = 38 (0x26), region = 32  ;;  %p163_p3 = scmp.lt.s32.totalorder (!%p139_p2), %s378_s14, 63 }
   0xb   : > { %s618_s14 = smov (!%p163_p3, %s378_s14), 63  ;;  %v433_v0 = vld [vmem:[%s614_s1] ss:$0 sm:$0xff]  ;;  %vm284_vm0 = vcmask 64512  }
   0xc   : > { %s379_s15 = sshll.u32 %s618_s14, 3  ;;  %v443_v1 = vld [vmem:[%s615_s2] ss:$0 sm:$0xff] }
   0xd   : > { %s438_s20 = scalar_lea.vmem %s613_s0, %s379_s15  ;;  %s457_s25 = scalar_lea.vmem %s616_s3, %s379_s15 }
   0xe   : > { %v174_v2 = vld [vmem:[%s438_s20] sm:$0xff]  ;;  %v175_v3 = vld [vmem:[%s438_s20 + $0x8] sm:$0xff]  ;;  %v176_v4 = vld [vmem:[%s438_s20 + $0x10] sm:$0xff] }
   0xf   : > { %v213_v5 = vmul.f32 %v433_v0, %v174_v2  ;;  %v214_v6 = vmul.f32 %v433_v0, %v175_v3  ;;  %v215_v7 = vmul.f32 %v433_v0, %v176_v4  ;;  %v177_v8 = vld [vmem:[%s438_s20 + $0x18] sm:$0xff]  ;;  %v178_v9 = vld [vmem:[%s438_s20 + $0x20] sm:$0xff]  ;;  %v179_v10 = vld [vmem:[%s438_s20 + $0x28] sm:$0xff] }
  0x10   : > { %v216_v11 = vmul.f32 %v433_v0, %v177_v8  ;;  %v217_v12 = vmul.f32 %v433_v0, %v178_v9  ;;  %v218_v13 = vmul.f32 %v433_v0, %v179_v10  ;;  %v180_v14 = vld [vmem:[%s438_s20 + $0x30] sm:$0xff]  ;;  %v181_v15 = vld [vmem:[%s438_s20 + $0x38] sm:$0xff]  ;;  %v182_v16 = vld [vmem:[%s438_s20 + $0x40] sm:$0xff] }
  0x11   : > { %v252_v17 = vadd.f32 %v443_v1, %v213_v5  ;;  %v253_v18 = vadd.f32 %v443_v1, %v214_v6  ;;  %v254_v19 = vadd.f32 %v443_v1, %v215_v7  ;;  %v219_v20 = vmul.f32 %v433_v0, %v180_v14  ;;  %v183_v21 = vld [vmem:[%s438_s20 + $0x48] sm:$0xff]  ;;  %v184_v22 = vld [vmem:[%s438_s20 + $0x50] sm:$0xff]  ;;  %v185_v23 = vld [vmem:[%s438_s20 + $0x58] sm:$0xff] }
  0x12   : > { %v255_v24 = vadd.f32 %v443_v1, %v216_v11  ;;  %v256_v25 = vadd.f32 %v443_v1, %v217_v12  ;;  %v257_v26 = vadd.f32 %v443_v1, %v218_v13  ;;  %v220_v27 = vmul.f32 %v433_v0, %v181_v15  ;;  %v186_v28 = vld [vmem:[%s438_s20 + $0x60] sm:$0xff]  ;;  %v187_v29 = vld [vmem:[%s438_s20 + $0x68] sm:$0xff]  ;;  %v188_v30 = vld [vmem:[%s438_s20 + $0x70] sm:$0xff] }
  0x13   : > { %285 = vst.msk [vmem:[%s457_s25] sm:$0xff] %vm284_vm0, %v252_v17  ;;  %286 = vst.msk [vmem:[%s457_s25 + $0x8] sm:$0xff] %vm284_vm0, %v253_v18  ;;  %v258_v31 = vadd.f32 %v443_v1, %v219_v20  ;;  %v221_v32 = vmul.f32 %v433_v0, %v182_v16  ;;  %v222_v33 = vmul.f32 %v433_v0, %v183_v21  ;;  %v189_v35 = vld [vmem:[%s438_s20 + $0x78] sm:$0xff]  ;;  %v190_v40 = vld [vmem:[%s438_s20 + $0x80] sm:$0xff] }
  0x14   : > { %287 = vst.msk [vmem:[%s457_s25 + $0x10] sm:$0xff] %vm284_vm0, %v254_v19  ;;  %v223_v34 = vmul.f32 %v433_v0, %v184_v22  ;;  %288 = vst.msk [vmem:[%s457_s25 + $0x18] sm:$0xff] %vm284_vm0, %v255_v24  ;;  %v259_v36 = vadd.f32 %v443_v1, %v220_v27  ;;  %v224_v37 = vmul.f32 %v433_v0, %v185_v23  ;;  %v191_v41 = vld [vmem:[%s438_s20 + $0x88] sm:$0xff]  ;;  %v192_v42 = vld [vmem:[%s438_s20 + $0x90] sm:$0xff] }
  0x15   : > { %289 = vst.msk [vmem:[%s457_s25 + $0x20] sm:$0xff] %vm284_vm0, %v256_v25  ;;  %290 = vst.msk [vmem:[%s457_s25 + $0x28] sm:$0xff] %vm284_vm0, %v257_v26  ;;  %v225_v38 = vmul.f32 %v433_v0, %v186_v28  ;;  %v226_v39 = vmul.f32 %v433_v0, %v187_v29  ;;  %v260_v43 = vadd.f32 %v443_v1, %v221_v32  ;;  %v193_v47 = vld [vmem:[%s438_s20 + $0x98] sm:$0xff]  ;;  %v194_v48 = vld [vmem:[%s438_s20 + $0xa0] sm:$0xff] }
  0x16   : > { %291 = vst.msk [vmem:[%s457_s25 + $0x30] sm:$0xff] %vm284_vm0, %v258_v31  ;;  %v261_v44 = vadd.f32 %v443_v1, %v222_v33  ;;  %v262_v45 = vadd.f32 %v443_v1, %v223_v34  ;;  %v227_v46 = vmul.f32 %v433_v0, %v188_v30  ;;  %v195_v49 = vld [vmem:[%s438_s20 + $0xa8] sm:$0xff]  ;;  %292 = vst.msk [vmem:[%s457_s25 + $0x38] sm:$0xff] %vm284_vm0, %v259_v36  ;;  %v196_v54 = vld [vmem:[%s438_s20 + $0xb0] sm:$0xff] }
  0x17   : > { %v263_v50 = vadd.f32 %v443_v1, %v224_v37  ;;  %v264_v51 = vadd.f32 %v443_v1, %v225_v38  ;;  %v265_v52 = vadd.f32 %v443_v1, %v226_v39  ;;  %v228_v53 = vmul.f32 %v433_v0, %v189_v35  ;;  %293 = vst.msk [vmem:[%s457_s25 + $0x40] sm:$0xff] %vm284_vm0, %v260_v43  ;;  %v197_v59 = vld [vmem:[%s438_s20 + $0xb8] sm:$0xff]  ;;  %v198_v2 = vld [vmem:[%s438_s20 + $0xc0] sm:$0xff]  ;;  %v199_v3 = vld [vmem:[%s438_s20 + $0xc8] sm:$0xff] }
  0x18   : > { %294 = vst.msk [vmem:[%s457_s25 + $0x48] sm:$0xff] %vm284_vm0, %v261_v44  ;;  %295 = vst.msk [vmem:[%s457_s25 + $0x50] sm:$0xff] %vm284_vm0, %v262_v45  ;;  %v266_v55 = vadd.f32 %v443_v1, %v227_v46  ;;  %v229_v56 = vmul.f32 %v433_v0, %v190_v40  ;;  %v230_v57 = vmul.f32 %v433_v0, %v191_v41  ;;  %v200_v4 = vld [vmem:[%s438_s20 + $0xd0] sm:$0xff]  ;;  %v201_v9 = vld [vmem:[%s438_s20 + $0xd8] sm:$0xff] }
  0x19   : > { %v231_v58 = vmul.f32 %v433_v0, %v192_v42  ;;  %296 = vst.msk [vmem:[%s457_s25 + $0x58] sm:$0xff] %vm284_vm0, %v263_v50  ;;  %297 = vst.msk [vmem:[%s457_s25 + $0x60] sm:$0xff] %vm284_vm0, %v264_v51  ;;  %v267_v60 = vadd.f32 %v443_v1, %v228_v53  ;;  %v232_v61 = vmul.f32 %v433_v0, %v193_v47  ;;  %v202_v10 = vld [vmem:[%s438_s20 + $0xe0] sm:$0xff]  ;;  %v203_v11 = vld [vmem:[%s438_s20 + $0xe8] sm:$0xff] }
  0x1a   : > { %298 = vst.msk [vmem:[%s457_s25 + $0x68] sm:$0xff] %vm284_vm0, %v265_v52  ;;  %v233_v62 = vmul.f32 %v433_v0, %v194_v48  ;;  %v234_v63 = vmul.f32 %v433_v0, %v195_v49  ;;  %299 = vst.msk [vmem:[%s457_s25 + $0x70] sm:$0xff] %vm284_vm0, %v266_v55  ;;  %v268_v5 = vadd.f32 %v443_v1, %v229_v56  ;;  %v204_v16 = vld [vmem:[%s438_s20 + $0xf0] sm:$0xff]  ;;  %v205_v21 = vld [vmem:[%s438_s20 + $0xf8] sm:$0xff] }
  0x1b   : > { %v269_v6 = vadd.f32 %v443_v1, %v230_v57  ;;  %v270_v7 = vadd.f32 %v443_v1, %v231_v58  ;;  %v235_v8 = vmul.f32 %v433_v0, %v196_v54  ;;  %300 = vst.msk [vmem:[%s457_s25 + $0x78] sm:$0xff] %vm284_vm0, %v267_v60  ;;  %v271_v12 = vadd.f32 %v443_v1, %v232_v61 }
  0x1c   : > { %v272_v13 = vadd.f32 %v443_v1, %v233_v62  ;;  %v273_v14 = vadd.f32 %v443_v1, %v234_v63  ;;  %v236_v15 = vmul.f32 %v433_v0, %v197_v59  ;;  %301 = vst.msk [vmem:[%s457_s25 + $0x80] sm:$0xff] %vm284_vm0, %v268_v5  ;;  %v237_v18 = vmul.f32 %v433_v0, %v198_v2 }
  0x1d   : > { %302 = vst.msk [vmem:[%s457_s25 + $0x88] sm:$0xff] %vm284_vm0, %v269_v6  ;;  %303 = vst.msk [vmem:[%s457_s25 + $0x90] sm:$0xff] %vm284_vm0, %v270_v7  ;;  %v274_v17 = vadd.f32 %v443_v1, %v235_v8  ;;  %v238_v19 = vmul.f32 %v433_v0, %v199_v3  ;;  %v239_v20 = vmul.f32 %v433_v0, %v200_v4 }
  0x1e   : > { %304 = vst.msk [vmem:[%s457_s25 + $0x98] sm:$0xff] %vm284_vm0, %v271_v12  ;;  %305 = vst.msk [vmem:[%s457_s25 + $0xa0] sm:$0xff] %vm284_vm0, %v272_v13  ;;  %v275_v22 = vadd.f32 %v443_v1, %v236_v15  ;;  %v240_v23 = vmul.f32 %v433_v0, %v201_v9  ;;  %v241_v24 = vmul.f32 %v433_v0, %v202_v10 }
  0x1f   : > { %306 = vst.msk [vmem:[%s457_s25 + $0xa8] sm:$0xff] %vm284_vm0, %v273_v14  ;;  %v242_v25 = vmul.f32 %v433_v0, %v203_v11  ;;  %307 = vst.msk [vmem:[%s457_s25 + $0xb0] sm:$0xff] %vm284_vm0, %v274_v17  ;;  %v276_v26 = vadd.f32 %v443_v1, %v237_v18  ;;  %v277_v27 = vadd.f32 %v443_v1, %v238_v19 }
  0x20   : > { %v278_v28 = vadd.f32 %v443_v1, %v239_v20  ;;  %v243_v29 = vmul.f32 %v433_v0, %v204_v16  ;;  %308 = vst.msk [vmem:[%s457_s25 + $0xb8] sm:$0xff] %vm284_vm0, %v275_v22  ;;  %v279_v30 = vadd.f32 %v443_v1, %v240_v23  ;;  %v280_v31 = vadd.f32 %v443_v1, %v241_v24 }
  0x21   : > { %v281_v32 = vadd.f32 %v443_v1, %v242_v25  ;;  %v244_v33 = vmul.f32 %v433_v0, %v205_v21  ;;  %309 = vst.msk [vmem:[%s457_s25 + $0xc0] sm:$0xff] %vm284_vm0, %v276_v26  ;;  %310 = vst.msk [vmem:[%s457_s25 + $0xc8] sm:$0xff] %vm284_vm0, %v277_v27 }
  0x22   : > { %311 = vst.msk [vmem:[%s457_s25 + $0xd0] sm:$0xff] %vm284_vm0, %v278_v28  ;;  %v282_v34 = vadd.f32 %v443_v1, %v243_v29  ;;  %312 = vst.msk [vmem:[%s457_s25 + $0xd8] sm:$0xff] %vm284_vm0, %v279_v30 }
  0x23   : > { %313 = vst.msk [vmem:[%s457_s25 + $0xe0] sm:$0xff] %vm284_vm0, %v280_v31  ;;  %314 = vst.msk [vmem:[%s457_s25 + $0xe8] sm:$0xff] %vm284_vm0, %v281_v32  ;;  %v283_v35 = vadd.f32 %v443_v1, %v244_v33 }
  0x24   : > { %315 = vst.msk [vmem:[%s457_s25 + $0xf0] sm:$0xff] %vm284_vm0, %v282_v34 }
  0x25   : > { %316 = vst.msk [vmem:[%s457_s25 + $0xf8] sm:$0xff] %vm284_vm0, %v283_v35 }
  0x26 PF: > { %s13_s12 = sadd.s32 1, %s400_s12  }
  0x27   : > { %p10_p4 = scmp.ge.s32.totalorder %s13_s12, 4  }
  0x29   :  { %12 = sbr.rel (!%p10_p4) target bundleno = 1 (0x1), region = 62 }

// kernel: basic_block_forward.11
= control target key start
LH: loop header
LB: loop body
LE: loop exit
PB: predicated region body
PF: predicated region fallthrough
CT: control target
= control target key end

     0   :  { %s586_s15 = smov 0   ;;  %s819_s0 = inlined_call_operand.vmem [shape: f32[512,8], index: 0, kind: input, shape index: {}]   ;;  %s820_s1 = inlined_call_operand.vmem [shape: f32[512,8], index: 1, kind: input, shape index: {}]   ;;  %s821_s2 = inlined_call_operand.vmem [shape: f32[1,8], index: 2, kind: input, shape index: {}]   ;;  %s822_s3 = inlined_call_operand.vmem [shape: f32[1,8], index: 3, kind: input, shape index: {}]   ;;  %s823_s4 = inlined_call_operand.vmem [shape: f32[512,8], index: 4, kind: output, shape index: {}]  }
   0x1 LB: > { %s530_s16 = sadd.s32 4294967295, %s559_s15   ;;  %p534_p0 = scmp.ge.s32.totalorder %s559_s15, 1  ;;  %s559_s15 = sphi %s586_s15, %s14_s15  }
   0x2   : > { %p174_p1 = scmp.lt.s32.totalorder %s559_s15, 3 }
   0x4   : > { %p175_p2 = pnand %p534_p0, %p174_p1 }
   0x5   : > { %s535_s17 = sshll.u32 (!%p175_p2), %s530_s16, 5 }
   0x6   : > { %178 = sbr.rel (%p175_p2) target bundleno = 53 (0x35), region = 36  ;;  %p206_p3 = scmp.lt.s32.totalorder (!%p175_p2), %s535_s17, 63 }
   0xb   : > { %s825_s17 = smov (!%p206_p3, %s535_s17), 63  ;;  %v599_v0 = vld [vmem:[%s821_s2] ss:$0 sm:$0xff]  ;;  %vm429_vm0 = vcmask 64512  }
   0xc   : > { %s594_s18 = sshll.u32 %s825_s17, 3  ;;  %v617_v2 = vld [vmem:[%s822_s3] ss:$0 sm:$0xff] }
   0xd   : > { %s605_s23 = scalar_lea.vmem %s819_s0, %s594_s18  ;;  %s611_s26 = scalar_lea.vmem %s820_s1, %s594_s18 }
   0xe   : > { %v223_v1 = vld [vmem:[%s605_s23] sm:$0xff]  ;;  %v224_v3 = vld [vmem:[%s605_s23 + $0x8] sm:$0xff]  ;;  %v225_v7 = vld [vmem:[%s605_s23 + $0x10] sm:$0xff]  ;;  %s647_s5 = scalar_lea.vmem %s823_s4, %s594_s18 }
   0xf   : > { %v262_v4 = vmul.f32 %v599_v0, %v223_v1  ;;  %v333_v5 = vld [vmem:[%s611_s26] sm:$0xff]  ;;  %v263_v6 = vmul.f32 %v599_v0, %v224_v3  ;;  %v334_v8 = vld [vmem:[%s611_s26 + $0x8] sm:$0xff]  ;;  %v264_v9 = vmul.f32 %v599_v0, %v225_v7  ;;  %v226_v10 = vld [vmem:[%s605_s23 + $0x18] sm:$0xff] }
  0x10   : > { %v227_v11 = vld [vmem:[%s605_s23 + $0x20] sm:$0xff]  ;;  %v335_v14 = vld [vmem:[%s611_s26 + $0x10] sm:$0xff]  ;;  %v265_v15 = vmul.f32 %v599_v0, %v226_v10  ;;  %v336_v16 = vld [vmem:[%s611_s26 + $0x18] sm:$0xff] }
  0x11   : > { %v301_v12 = vadd.f32 %v617_v2, %v262_v4  ;;  %v302_v13 = vadd.f32 %v617_v2, %v263_v6  ;;  %v266_v17 = vmul.f32 %v599_v0, %v227_v11  ;;  %v228_v18 = vld [vmem:[%s605_s23 + $0x28] sm:$0xff]  ;;  %v303_v19 = vadd.f32 %v617_v2, %v264_v9  ;;  %v337_v20 = vld [vmem:[%s611_s26 + $0x20] sm:$0xff]  ;;  %v229_v22 = vld [vmem:[%s605_s23 + $0x30] sm:$0xff] }
  0x12   : > { %v267_v21 = vmul.f32 %v599_v0, %v228_v18  ;;  %v230_v23 = vld [vmem:[%s605_s23 + $0x38] sm:$0xff]  ;;  %v304_v26 = vadd.f32 %v617_v2, %v265_v15  ;;  %v338_v28 = vld [vmem:[%s611_s26 + $0x28] sm:$0xff]  ;;  %v268_v31 = vmul.f32 %v599_v0, %v229_v22  ;;  %v231_v33 = vld [vmem:[%s605_s23 + $0x40] sm:$0xff] }
  0x13   : > { %v365_v24 = vadd.f32 %v333_v5, %v301_v12  ;;  %v366_v25 = vadd.f32 %v334_v8, %v302_v13  ;;  %v305_v27 = vadd.f32 %v617_v2, %v266_v17  ;;  %v367_v29 = vadd.f32 %v335_v14, %v303_v19  ;;  %v232_v34 = vld [vmem:[%s605_s23 + $0x48] sm:$0xff]  ;;  %v339_v39 = vld [vmem:[%s611_s26 + $0x30] sm:$0xff]  ;;  %v340_v40 = vld [vmem:[%s611_s26 + $0x38] sm:$0xff] }
  0x14   : > { %v306_v30 = vadd.f32 %v617_v2, %v267_v21  ;;  %v269_v32 = vmul.f32 %v599_v0, %v230_v23  ;;  %v368_v37 = vadd.f32 %v336_v16, %v304_v26  ;;  %v233_v41 = vld [vmem:[%s605_s23 + $0x50] sm:$0xff]  ;;  %v307_v44 = vadd.f32 %v617_v2, %v268_v31  ;;  %v234_v46 = vld [vmem:[%s605_s23 + $0x58] sm:$0xff]  ;;  %v235_v47 = vld [vmem:[%s605_s23 + $0x60] sm:$0xff] }
  0x15   : > { %v397_v35 = vmax.f32 %v365_v24, 0.0  ;;  %v398_v36 = vmax.f32 %v366_v25, 0.0  ;;  %v369_v38 = vadd.f32 %v337_v20, %v305_v27  ;;  %v399_v42 = vmax.f32 %v367_v29, 0.0  ;;  %v236_v52 = vld [vmem:[%s605_s23 + $0x68] sm:$0xff]  ;;  %v341_v56 = vld [vmem:[%s611_s26 + $0x40] sm:$0xff]  ;;  %v343_v61 = vld [vmem:[%s611_s26 + $0x50] sm:$0xff] }
  0x16   : > { %v370_v43 = vadd.f32 %v338_v28, %v306_v30  ;;  %v308_v45 = vadd.f32 %v617_v2, %v269_v32  ;;  %v400_v48 = vmax.f32 %v368_v37, 0.0  ;;  %v270_v50 = vmul.f32 %v599_v0, %v231_v33  ;;  %v342_v57 = vld [vmem:[%s611_s26 + $0x48] sm:$0xff]  ;;  %v237_v1 = vld [vmem:[%s605_s23 + $0x70] sm:$0xff]  ;;  %v238_v3 = vld [vmem:[%s605_s23 + $0x78] sm:$0xff] }
  0x17   : > { %430 = vst.msk [vmem:[%s647_s5] sm:$0xff] %vm429_vm0, %v397_v35  ;;  %431 = vst.msk [vmem:[%s647_s5 + $0x8] sm:$0xff] %vm429_vm0, %v398_v36  ;;  %v401_v49 = vmax.f32 %v369_v38, 0.0  ;;  %v271_v51 = vmul.f32 %v599_v0, %v232_v34  ;;  %v371_v54 = vadd.f32 %v339_v39, %v307_v44  ;;  %v272_v58 = vmul.f32 %v599_v0, %v233_v41  ;;  %v344_v7 = vld [vmem:[%s611_s26 + $0x58] sm:$0xff]  ;;  %v345_v8 = vld [vmem:[%s611_s26 + $0x60] sm:$0xff] }
  0x18   : > { %432 = vst.msk [vmem:[%s647_s5 + $0x10] sm:$0xff] %vm429_vm0, %v399_v42  ;;  %v402_v53 = vmax.f32 %v370_v43, 0.0  ;;  %v372_v55 = vadd.f32 %v340_v40, %v308_v45  ;;  %433 = vst.msk [vmem:[%s647_s5 + $0x18] sm:$0xff] %vm429_vm0, %v400_v48  ;;  %v309_v59 = vadd.f32 %v617_v2, %v270_v50  ;;  %v273_v62 = vmul.f32 %v599_v0, %v234_v46  ;;  %v346_v14 = vld [vmem:[%s611_s26 + $0x68] sm:$0xff]  ;;  %v239_v19 = vld [vmem:[%s605_s23 + $0x80] sm:$0xff] }
  0x19   : > { %434 = vst.msk [vmem:[%s647_s5 + $0x20] sm:$0xff] %vm429_vm0, %v401_v49  ;;  %v310_v60 = vadd.f32 %v617_v2, %v271_v51  ;;  %v274_v63 = vmul.f32 %v599_v0, %v235_v47  ;;  %v403_v4 = vmax.f32 %v371_v54, 0.0  ;;  %v311_v6 = vadd.f32 %v617_v2, %v272_v58  ;;  %v240_v20 = vld [vmem:[%s605_s23 + $0x88] sm:$0xff]  ;;  %v347_v25 = vld [vmem:[%s611_s26 + $0x70] sm:$0xff]  ;;  %v348_v26 = vld [vmem:[%s611_s26 + $0x78] sm:$0xff] }
  0x1a   : > { %435 = vst.msk [vmem:[%s647_s5 + $0x28] sm:$0xff] %vm429_vm0, %v402_v53  ;;  %v404_v5 = vmax.f32 %v372_v55, 0.0  ;;  %v275_v9 = vmul.f32 %v599_v0, %v236_v52  ;;  %v373_v10 = vadd.f32 %v341_v56, %v309_v59  ;;  %v312_v12 = vadd.f32 %v617_v2, %v273_v62  ;;  %v241_v27 = vld [vmem:[%s605_s23 + $0x90] sm:$0xff]  ;;  %v242_v32 = vld [vmem:[%s605_s23 + $0x98] sm:$0xff]  ;;  %v243_v33 = vld [vmem:[%s605_s23 + $0xa0] sm:$0xff] }
  0x1b   : > { %v374_v11 = vadd.f32 %v342_v57, %v310_v60  ;;  %v313_v13 = vadd.f32 %v617_v2, %v274_v63  ;;  %436 = vst.msk [vmem:[%s647_s5 + $0x30] sm:$0xff] %vm429_vm0, %v403_v4  ;;  %v375_v15 = vadd.f32 %v343_v61, %v311_v6  ;;  %v276_v17 = vmul.f32 %v599_v0, %v237_v1  ;;  %v244_v38 = vld [vmem:[%s605_s23 + $0xa8] sm:$0xff]  ;;  %v349_v42 = vld [vmem:[%s611_s26 + $0x80] sm:$0xff]  ;;  %v351_v47 = vld [vmem:[%s611_s26 + $0x90] sm:$0xff] }
  0x1c   : > { %437 = vst.msk [vmem:[%s647_s5 + $0x38] sm:$0xff] %vm429_vm0, %v404_v5  ;;  %v314_v16 = vadd.f32 %v617_v2, %v275_v9  ;;  %v277_v18 = vmul.f32 %v599_v0, %v238_v3  ;;  %v405_v21 = vmax.f32 %v373_v10, 0.0  ;;  %v376_v23 = vadd.f32 %v344_v7, %v312_v12  ;;  %v350_v43 = vld [vmem:[%s611_s26 + $0x88] sm:$0xff]  ;;  %v245_v50 = vld [vmem:[%s605_s23 + $0xb0] sm:$0xff]  ;;  %v246_v51 = vld [vmem:[%s605_s23 + $0xb8] sm:$0xff] }
  0x1d   : > { %v406_v22 = vmax.f32 %v374_v11, 0.0  ;;  %v377_v24 = vadd.f32 %v345_v8, %v313_v13  ;;  %v407_v28 = vmax.f32 %v375_v15, 0.0  ;;  %v315_v30 = vadd.f32 %v617_v2, %v276_v17  ;;  %v352_v55 = vld [vmem:[%s611_s26 + $0x98] sm:$0xff]  ;;  %v353_v56 = vld [vmem:[%s611_s26 + $0xa0] sm:$0xff]  ;;  %v354_v62 = vld [vmem:[%s611_s26 + $0xa8] sm:$0xff] }
  0x1e   : > { %v378_v29 = vadd.f32 %v346_v14, %v314_v16  ;;  %v316_v31 = vadd.f32 %v617_v2, %v277_v18  ;;  %438 = vst.msk [vmem:[%s647_s5 + $0x40] sm:$0xff] %vm429_vm0, %v405_v21  ;;  %v408_v34 = vmax.f32 %v376_v23, 0.0  ;;  %v278_v36 = vmul.f32 %v599_v0, %v239_v19  ;;  %v247_v5 = vld [vmem:[%s605_s23 + $0xc0] sm:$0xff]  ;;  %v248_v6 = vld [vmem:[%s605_s23 + $0xc8] sm:$0xff]  ;;  %v355_v11 = vld [vmem:[%s611_s26 + $0xb0] sm:$0xff] }
  0x1f   : > { %439 = vst.msk [vmem:[%s647_s5 + $0x48] sm:$0xff] %vm429_vm0, %v406_v22  ;;  %v409_v35 = vmax.f32 %v377_v24, 0.0  ;;  %v279_v37 = vmul.f32 %v599_v0, %v240_v20  ;;  %440 = vst.msk [vmem:[%s647_s5 + $0x50] sm:$0xff] %vm429_vm0, %v407_v28  ;;  %v379_v40 = vadd.f32 %v347_v25, %v315_v30  ;;  %v280_v44 = vmul.f32 %v599_v0, %v241_v27  ;;  %v356_v12 = vld [vmem:[%s611_s26 + $0xb8] sm:$0xff]  ;;  %v249_v13 = vld [vmem:[%s605_s23 + $0xd0] sm:$0xff] }
  0x20   : > { %v410_v39 = vmax.f32 %v378_v29, 0.0  ;;  %v380_v41 = vadd.f32 %v348_v26, %v316_v31  ;;  %441 = vst.msk [vmem:[%s647_s5 + $0x58] sm:$0xff] %vm429_vm0, %v408_v34  ;;  %v317_v45 = vadd.f32 %v617_v2, %v278_v36  ;;  %v281_v48 = vmul.f32 %v599_v0, %v242_v32  ;;  %v250_v18 = vld [vmem:[%s605_s23 + $0xd8] sm:$0xff]  ;;  %v251_v19 = vld [vmem:[%s605_s23 + $0xe0] sm:$0xff]  ;;  %v252_v24 = vld [vmem:[%s605_s23 + $0xe8] sm:$0xff] }
  0x21   : > { %442 = vst.msk [vmem:[%s647_s5 + $0x60] sm:$0xff] %vm429_vm0, %v409_v35  ;;  %v318_v46 = vadd.f32 %v617_v2, %v279_v37  ;;  %v282_v49 = vmul.f32 %v599_v0, %v243_v33  ;;  %v411_v52 = vmax.f32 %v379_v40, 0.0  ;;  %v319_v54 = vadd.f32 %v617_v2, %v280_v44  ;;  %v357_v28 = vld [vmem:[%s611_s26 + $0xc0] sm:$0xff]  ;;  %v358_v29 = vld [vmem:[%s611_s26 + $0xc8] sm:$0xff]  ;;  %v359_v33 = vld [vmem:[%s611_s26 + $0xd0] sm:$0xff] }
  0x22   : > { %443 = vst.msk [vmem:[%s647_s5 + $0x68] sm:$0xff] %vm429_vm0, %v410_v39  ;;  %v412_v53 = vmax.f32 %v380_v41, 0.0  ;;  %v283_v57 = vmul.f32 %v599_v0, %v244_v38  ;;  %v381_v58 = vadd.f32 %v349_v42, %v317_v45  ;;  %v320_v60 = vadd.f32 %v617_v2, %v281_v48  ;;  %v253_v36 = vld [vmem:[%s605_s23 + $0xf0] sm:$0xff]  ;;  %v254_v37 = vld [vmem:[%s605_s23 + $0xf8] sm:$0xff]  ;;  %v361_v42 = vld [vmem:[%s611_s26 + $0xe0] sm:$0xff] }
  0x23   : > { %v382_v59 = vadd.f32 %v350_v43, %v318_v46  ;;  %v321_v61 = vadd.f32 %v617_v2, %v282_v49  ;;  %444 = vst.msk [vmem:[%s647_s5 + $0x70] sm:$0xff] %vm429_vm0, %v411_v52  ;;  %v383_v63 = vadd.f32 %v351_v47, %v319_v54  ;;  %v284_v3 = vmul.f32 %v599_v0, %v245_v50  ;;  %v360_v41 = vld [vmem:[%s611_s26 + $0xd8] sm:$0xff]  ;;  %v362_v48 = vld [vmem:[%s611_s26 + $0xe8] sm:$0xff] }
  0x24   : > { %445 = vst.msk [vmem:[%s647_s5 + $0x78] sm:$0xff] %vm429_vm0, %v412_v53  ;;  %v322_v1 = vadd.f32 %v617_v2, %v283_v57  ;;  %v285_v4 = vmul.f32 %v599_v0, %v246_v51  ;;  %v413_v7 = vmax.f32 %v381_v58, 0.0  ;;  %v384_v9 = vadd.f32 %v352_v55, %v320_v60  ;;  %v363_v57 = vld [vmem:[%s611_s26 + $0xf0] sm:$0xff]  ;;  %v364_v58 = vld [vmem:[%s611_s26 + $0xf8] sm:$0xff] }
  0x25   : > { %v414_v8 = vmax.f32 %v382_v59, 0.0  ;;  %v385_v10 = vadd.f32 %v353_v56, %v321_v61  ;;  %v415_v14 = vmax.f32 %v383_v63, 0.0  ;;  %v323_v16 = vadd.f32 %v617_v2, %v284_v3 }
  0x26   : > { %v386_v15 = vadd.f32 %v354_v62, %v322_v1  ;;  %v324_v17 = vadd.f32 %v617_v2, %v285_v4  ;;  %446 = vst.msk [vmem:[%s647_s5 + $0x80] sm:$0xff] %vm429_vm0, %v413_v7  ;;  %v416_v20 = vmax.f32 %v384_v9, 0.0  ;;  %v286_v22 = vmul.f32 %v599_v0, %v247_v5 }
  0x27   : > { %447 = vst.msk [vmem:[%s647_s5 + $0x88] sm:$0xff] %vm429_vm0, %v414_v8  ;;  %v417_v21 = vmax.f32 %v385_v10, 0.0  ;;  %v287_v23 = vmul.f32 %v599_v0, %v248_v6  ;;  %448 = vst.msk [vmem:[%s647_s5 + $0x90] sm:$0xff] %vm429_vm0, %v415_v14  ;;  %v387_v26 = vadd.f32 %v355_v11, %v323_v16  ;;  %v288_v30 = vmul.f32 %v599_v0, %v249_v13 }
  0x28   : > { %v418_v25 = vmax.f32 %v386_v15, 0.0  ;;  %v388_v27 = vadd.f32 %v356_v12, %v324_v17  ;;  %449 = vst.msk [vmem:[%s647_s5 + $0x98] sm:$0xff] %vm429_vm0, %v416_v20  ;;  %v325_v31 = vadd.f32 %v617_v2, %v286_v22  ;;  %v289_v34 = vmul.f32 %v599_v0, %v250_v18 }
  0x29   : > { %450 = vst.msk [vmem:[%s647_s5 + $0xa0] sm:$0xff] %vm429_vm0, %v417_v21  ;;  %v326_v32 = vadd.f32 %v617_v2, %v287_v23  ;;  %v290_v35 = vmul.f32 %v599_v0, %v251_v19  ;;  %v419_v38 = vmax.f32 %v387_v26, 0.0  ;;  %v327_v40 = vadd.f32 %v617_v2, %v288_v30 }
  0x2a   : > { %451 = vst.msk [vmem:[%s647_s5 + $0xa8] sm:$0xff] %vm429_vm0, %v418_v25  ;;  %v420_v39 = vmax.f32 %v388_v27, 0.0  ;;  %v291_v43 = vmul.f32 %v599_v0, %v252_v24  ;;  %v389_v44 = vadd.f32 %v357_v28, %v325_v31  ;;  %v328_v46 = vadd.f32 %v617_v2, %v289_v34 }
  0x2b   : > { %v390_v45 = vadd.f32 %v358_v29, %v326_v32  ;;  %v329_v47 = vadd.f32 %v617_v2, %v290_v35  ;;  %452 = vst.msk [vmem:[%s647_s5 + $0xb0] sm:$0xff] %vm429_vm0, %v419_v38  ;;  %v391_v49 = vadd.f32 %v359_v33, %v327_v40  ;;  %v292_v51 = vmul.f32 %v599_v0, %v253_v36 }
  0x2c   : > { %453 = vst.msk [vmem:[%s647_s5 + $0xb8] sm:$0xff] %vm429_vm0, %v420_v39  ;;  %v330_v50 = vadd.f32 %v617_v2, %v291_v43  ;;  %v293_v52 = vmul.f32 %v599_v0, %v254_v37  ;;  %v421_v53 = vmax.f32 %v389_v44, 0.0  ;;  %v392_v55 = vadd.f32 %v360_v41, %v328_v46 }
  0x2d   : > { %v422_v54 = vmax.f32 %v390_v45, 0.0  ;;  %v393_v56 = vadd.f32 %v361_v42, %v329_v47  ;;  %v423_v59 = vmax.f32 %v391_v49, 0.0  ;;  %v331_v61 = vadd.f32 %v617_v2, %v292_v51 }
  0x2e   : > { %v394_v60 = vadd.f32 %v362_v48, %v330_v50  ;;  %v332_v62 = vadd.f32 %v617_v2, %v293_v52  ;;  %454 = vst.msk [vmem:[%s647_s5 + $0xc0] sm:$0xff] %vm429_vm0, %v421_v53  ;;  %v424_v0 = vmax.f32 %v392_v55, 0.0 }
  0x2f   : > { %455 = vst.msk [vmem:[%s647_s5 + $0xc8] sm:$0xff] %vm429_vm0, %v422_v54  ;;  %v425_v63 = vmax.f32 %v393_v56, 0.0  ;;  %456 = vst.msk [vmem:[%s647_s5 + $0xd0] sm:$0xff] %vm429_vm0, %v423_v59  ;;  %v395_v3 = vadd.f32 %v363_v57, %v331_v61 }
  0x30   : > { %v426_v1 = vmax.f32 %v394_v60, 0.0  ;;  %v396_v4 = vadd.f32 %v364_v58, %v332_v62  ;;  %457 = vst.msk [vmem:[%s647_s5 + $0xd8] sm:$0xff] %vm429_vm0, %v424_v0 }
  0x31   : > { %458 = vst.msk [vmem:[%s647_s5 + $0xe0] sm:$0xff] %vm429_vm0, %v425_v63  ;;  %v427_v5 = vmax.f32 %v395_v3, 0.0 }
  0x32   : > { %459 = vst.msk [vmem:[%s647_s5 + $0xe8] sm:$0xff] %vm429_vm0, %v426_v1  ;;  %v428_v6 = vmax.f32 %v396_v4, 0.0 }
  0x33   : > { %460 = vst.msk [vmem:[%s647_s5 + $0xf0] sm:$0xff] %vm429_vm0, %v427_v5 }
  0x34   : > { %461 = vst.msk [vmem:[%s647_s5 + $0xf8] sm:$0xff] %vm429_vm0, %v428_v6 }
  0x35 PF: > { %s14_s15 = sadd.s32 1, %s559_s15  }
  0x36   : > { %p11_p4 = scmp.ge.s32.totalorder %s14_s15, 4  }
  0x38   :  { %13 = sbr.rel (!%p11_p4) target bundleno = 1 (0x1), region = 69 }

</bundles_post_ra>
